<compile_context>
chip_gen: v7x
topology: tpu7x:2x2x1
jax: 0.10.0
libtpu: 0.0.40
codegen_flags: <defaults>
</compile_context>

<pallas_src>
import math

import jax
import jax.numpy as jnp
from jax.experimental import pallas as pl
from jax.experimental.pallas import tpu as pltpu

jax.config.update("jax_default_matmul_precision", "highest")

# ----------------------------- model config (small) -----------------------------
B, S, H = 2, 8, 32          # batch, seq_len (max_len), hidden
N_HEADS = 2
D_K = H // N_HEADS
N_LAYERS = 2
NUM_ITEMS = 64
VOCAB = NUM_ITEMS + 2       # items + [PAD]=0 + [MASK]
FF = 4 * H
NEG_INF = -1e9
PRED_PAD = 128              # lane-dense (multiple-of-128) padded prediction width


# ----------------------------- in-kernel helpers -----------------------------
def _layernorm(x, g, b, eps=1e-6):
    # BERT4Rec LayerNorm: gamma * (x - mean) / (std + eps) + beta (unbiased std, torch default)
    mean = jnp.mean(x, axis=-1, keepdims=True)
    d = x - mean
    var = jnp.sum(d * d, axis=-1, keepdims=True) / (x.shape[-1] - 1)
    return g * d / (jnp.sqrt(var) + eps) + b


def _gelu(x):
    # GELU tanh approximation (as used by BERT4Rec's GELU module)
    return 0.5 * x * (1.0 + jnp.tanh(0.7978845608028654 * (x + 0.044715 * x * x * x)))


# ----------------------------- fused Pallas kernel -----------------------------
def fused_bert_kernel(x_ref, bias_ref,
                      ln1_g_ref, ln1_b_ref,
                      wq_ref, bq_ref, wk_ref, bk_ref, wv_ref, bv_ref,
                      wo_ref, bo_ref,
                      ln2_g_ref, ln2_b_ref,
                      w1_ref, b1_ref, w2_ref, b2_ref,
                      pw_ref, pb_ref,
                      out_ref):
    # x_ref:   (B*S, H)      flattened hidden states
    # bias_ref:(B*S, B*S)    additive attention bias (0 attend / NEG_INF masked or cross-batch)
    # per-layer weights stacked along a leading layer (and head) dim, all resident in VMEM.
    scale = 1.0 / math.sqrt(D_K)
    x = x_ref[...]                                   # (BS, H)
    bias = bias_ref[...]                             # (BS, BS)

    for layer in range(N_LAYERS):                    # static unroll, weights stay in VMEM
        # ---- self-attention sublayer: x + MHA(LN(x)) ----
        h = _layernorm(x, ln1_g_ref[layer], ln1_b_ref[layer])
        attn = None
        for hd in range(N_HEADS):                    # static unroll; per-head weights ->
            # no sub-128 lane slicing of activations anywhere.
            q = jnp.dot(h, wq_ref[layer, hd],
                        preferred_element_type=jnp.float32) + bq_ref[layer, hd]
            k = jnp.dot(h, wk_ref[layer, hd],
                        preferred_element_type=jnp.float32) + bk_ref[layer, hd]
            v = jnp.dot(h, wv_ref[layer, hd],
                        preferred_element_type=jnp.float32) + bv_ref[layer, hd]
            # single (BS, BS) score matmul; cross-batch blocks killed by additive bias
            sc = jnp.dot(q, k.T, preferred_element_type=jnp.float32) * scale + bias
            m = jnp.max(sc, axis=-1, keepdims=True)
            e = jnp.exp(sc - m)
            denom = jnp.sum(e, axis=-1, keepdims=True)
            p = e * pl.reciprocal(denom, approx=True)          # EUP rcp, not a VALU divide
            ctx = jnp.dot(p, v, preferred_element_type=jnp.float32)      # (BS, D_K)
            head_out = jnp.dot(ctx, wo_ref[layer, hd],
                               preferred_element_type=jnp.float32)       # (BS, H)
            attn = head_out if attn is None else attn + head_out
        x = x + attn + bo_ref[layer]                 # dropout = identity (inference)

        # ---- feed-forward sublayer: x + FF(LN(x)) ----
        h2 = _layernorm(x, ln2_g_ref[layer], ln2_b_ref[layer])
        f = jnp.dot(h2, w1_ref[layer], preferred_element_type=jnp.float32) + b1_ref[layer]
        f = _gelu(f)
        f = jnp.dot(f, w2_ref[layer], preferred_element_type=jnp.float32) + b2_ref[layer]
        x = x + f

    # ---- prediction head, lane-dense 128-wide padded output ----
    out_ref[...] = jnp.dot(x, pw_ref[...], preferred_element_type=jnp.float32) + pb_ref[...]


# ----------------------------- wrapper -----------------------------
def pack_kernel_params(params):
    """Repack per-layer params into layer/head-stacked arrays for the fused kernel."""
    layers = params["layers"]

    def st(i):
        return jnp.stack([p[i] for p in layers])

    def per_head_w(i):   # (H, H) -> (L, NH, H, D_K); head hd slab == W[:, hd*D_K:(hd+1)*D_K]
        return jnp.stack([jnp.transpose(p[i].reshape(H, N_HEADS, D_K), (1, 0, 2))
                          for p in layers])

    def per_head_b(i):   # (1, H) -> (L, NH, 1, D_K)
        return jnp.stack([jnp.transpose(p[i].reshape(1, N_HEADS, D_K), (1, 0, 2))
                          for p in layers])

    ln1_g, ln1_b = st(0), st(1)                                  # (L, 1, H)
    wq, bq = per_head_w(2), per_head_b(3)
    wk, bk = per_head_w(4), per_head_b(5)
    wv, bv = per_head_w(6), per_head_b(7)
    wo = jnp.stack([p[8].reshape(N_HEADS, D_K, H) for p in layers])  # (L, NH, D_K, H)
    bo = st(9)                                                   # (L, 1, H)
    ln2_g, ln2_b = st(10), st(11)
    w1, b1 = st(12), st(13)                                      # (L, H, FF), (L, 1, FF)
    w2, b2 = st(14), st(15)                                      # (L, FF, H), (L, 1, H)

    pw = jnp.pad(params["pred_w"], ((0, 0), (0, PRED_PAD - NUM_ITEMS)))   # (H, 128)
    pb = jnp.pad(params["pred_b"], ((0, 0), (0, PRED_PAD - NUM_ITEMS)))   # (1, 128)

    return (ln1_g, ln1_b, wq, bq, wk, bk, wv, bv, wo, bo,
            ln2_g, ln2_b, w1, b1, w2, b2, pw, pb)


def bert_model_forward(ids, params):
    # embedding (glue: gather + positional add); dropout omitted (inference)
    x = jnp.take(params["tok"], ids, axis=0) + params["pos"][None, :, :]   # (B, S, H)
    x2d = x.reshape(B * S, H)

    # additive attention bias on flattened rows:
    #   0       -> same batch AND key is a real (non-pad) token
    #   NEG_INF -> padded key or cross-batch pair
    batch_of_row = jnp.repeat(jnp.arange(B, dtype=jnp.int32), S)            # (BS,)
    same_batch = batch_of_row[:, None] == batch_of_row[None, :]             # (BS, BS)
    key_ok = (ids.reshape(-1) > 0)[None, :]                                 # (1, BS)
    bias = jnp.where(same_batch & key_ok, 0.0, NEG_INF).astype(jnp.float32)

    args = (x2d, bias) + pack_kernel_params(params)
    logits_pad = pl.pallas_call(
        fused_bert_kernel,
        out_shape=jax.ShapeDtypeStruct((B * S, PRED_PAD), jnp.float32),
        in_specs=[pl.BlockSpec(memory_space=pltpu.MemorySpace.VMEM)] * len(args),
        out_specs=pl.BlockSpec(memory_space=pltpu.MemorySpace.VMEM),
    )(*args)

    # slice the lane-padded logits back to NUM_ITEMS
    return logits_pad[:, :NUM_ITEMS].reshape(B, S, NUM_ITEMS)


# ----------------------------- params -----------------------------
def init_params(key):
    std = 0.02
    keys = jax.random.split(key, 3 + N_LAYERS)

    tok = std * jax.random.normal(keys[0], (VOCAB, H), jnp.float32)
    tok = tok.at[0].set(0.0)                                  # padding_idx=0
    pos = std * jax.random.normal(keys[1], (S, H), jnp.float32)

    def lin(k, fan_in, fan_out):
        w = std * jax.random.normal(k, (fan_in, fan_out), jnp.float32)
        b = jnp.zeros((1, fan_out), jnp.float32)
        return w, b

    layers = []
    for i in range(N_LAYERS):
        lk = jax.random.split(keys[2 + i], 6)
        wq, bq = lin(lk[0], H, H)
        wk, bk = lin(lk[1], H, H)
        wv, bv = lin(lk[2], H, H)
        wo, bo = lin(lk[3], H, H)
        w1, b1 = lin(lk[4], H, FF)
        w2, b2 = lin(lk[5], FF, H)
        ln1_g = jnp.ones((1, H), jnp.float32)
        ln1_b = jnp.zeros((1, H), jnp.float32)
        ln2_g = jnp.ones((1, H), jnp.float32)
        ln2_b = jnp.zeros((1, H), jnp.float32)
        layers.append((ln1_g, ln1_b, wq, bq, wk, bk, wv, bv, wo, bo,
                       ln2_g, ln2_b, w1, b1, w2, b2))

    pred_w, pred_b = lin(keys[2 + N_LAYERS], H, NUM_ITEMS)
    return dict(tok=tok, pos=pos, layers=layers, pred_w=pred_w, pred_b=pred_b)


# ----------------------------- pure-JAX reference (for sanity) -----------------------------
def _ref_block(x, mask, p):
    (ln1_g, ln1_b, wq, bq, wk, bk, wv, bv, wo, bo, ln2_g, ln2_b, w1, b1, w2, b2) = p
    h = _layernorm(x, ln1_g, ln1_b)
    q = h @ wq + bq
    k = h @ wk + bk
    v = h @ wv + bv
    outs = []
    for hd in range(N_HEADS):
        sl = slice(hd * D_K, (hd + 1) * D_K)
        sc = jnp.einsum("bqd,bkd->bqk", q[..., sl], k[..., sl]) / math.sqrt(D_K)
        sc = jnp.where(mask > 0.5, sc, NEG_INF)
        p_ = jax.nn.softmax(sc, axis=-1)
        outs.append(jnp.einsum("bqk,bkd->bqd", p_, v[..., sl]))
    attn = jnp.concatenate(outs, axis=-1) @ wo + bo
    x1 = x + attn
    f = _gelu(_layernorm(x1, ln2_g, ln2_b) @ w1 + b1) @ w2 + b2
    return x1 + f


def bert_model_reference(ids, params):
    x = jnp.take(params["tok"], ids, axis=0) + params["pos"][None, :, :]
    key_mask = (ids > 0).astype(jnp.float32)
    mask = jnp.broadcast_to(key_mask[:, None, :], (B, S, S))
    for lp in params["layers"]:
        x = _ref_block(x, mask, lp)
    return (x.reshape(B * S, H) @ params["pred_w"] + params["pred_b"]).reshape(B, S, NUM_ITEMS)


# ----------------------------- main -----------------------------
if __name__ == "__main__":
    key = jax.random.PRNGKey(0)
    k_param, k_ids = jax.random.split(key)
    params = init_params(k_param)
    ids = jax.random.randint(k_ids, (B, S), 0, VOCAB, dtype=jnp.int32)

    scores = jax.jit(bert_model_forward)(ids, params)
    scores = jax.block_until_ready(scores)
    assert scores.shape == (B, S, NUM_ITEMS) and scores.dtype == jnp.float32

    ref = jax.block_until_ready(bert_model_reference(ids, params))
    # 2e-3: approx-reciprocal softmax denominator (EUP) introduces a tiny extra error vs. the
    # exact-division reference; structural semantics are unchanged.
    if not jnp.allclose(scores, ref, rtol=2e-3, atol=2e-3):
        raise AssertionError("Pallas output diverges from JAX reference")

    print("KERNEL_OK")
</pallas_src>

<mosaic_0001>
module attributes {stable_mosaic.version = 11 : i64} {
  func.func @fused_bert_kernel(%arg0: memref<16x32xf32, #tpu.memory_space<vmem>>, %arg1: memref<16x16xf32, #tpu.memory_space<vmem>>, %arg2: memref<2x1x32xf32, #tpu.memory_space<vmem>>, %arg3: memref<2x1x32xf32, #tpu.memory_space<vmem>>, %arg4: memref<2x2x32x16xf32, #tpu.memory_space<vmem>>, %arg5: memref<2x2x1x16xf32, #tpu.memory_space<vmem>>, %arg6: memref<2x2x32x16xf32, #tpu.memory_space<vmem>>, %arg7: memref<2x2x1x16xf32, #tpu.memory_space<vmem>>, %arg8: memref<2x2x32x16xf32, #tpu.memory_space<vmem>>, %arg9: memref<2x2x1x16xf32, #tpu.memory_space<vmem>>, %arg10: memref<2x2x16x32xf32, #tpu.memory_space<vmem>>, %arg11: memref<2x1x32xf32, #tpu.memory_space<vmem>>, %arg12: memref<2x1x32xf32, #tpu.memory_space<vmem>>, %arg13: memref<2x1x32xf32, #tpu.memory_space<vmem>>, %arg14: memref<2x32x128xf32, #tpu.memory_space<vmem>>, %arg15: memref<2x1x128xf32, #tpu.memory_space<vmem>>, %arg16: memref<2x128x32xf32, #tpu.memory_space<vmem>>, %arg17: memref<2x1x32xf32, #tpu.memory_space<vmem>>, %arg18: memref<32x128xf32, #tpu.memory_space<vmem>>, %arg19: memref<1x128xf32, #tpu.memory_space<vmem>>, %arg20: memref<16x128xf32, #tpu.memory_space<vmem>>) attributes {dimension_semantics = [], scalar_prefetch = 0 : i64, scratch_operands = 0 : i64, tpu.core_type = #tpu.core_type<tc>} {
    %c0 = arith.constant 0 : index
    %c0_0 = arith.constant 0 : index
    %0 = vector.load %arg0[%c0, %c0_0] : memref<16x32xf32, #tpu.memory_space<vmem>>, vector<16x32xf32>
    %c0_1 = arith.constant 0 : index
    %c0_2 = arith.constant 0 : index
    %1 = vector.load %arg1[%c0_1, %c0_2] : memref<16x16xf32, #tpu.memory_space<vmem>>, vector<16x16xf32>
    %c0_3 = arith.constant 0 : index
    %c0_4 = arith.constant 0 : index
    %c0_5 = arith.constant 0 : index
    %2 = vector.load %arg2[%c0_3, %c0_4, %c0_5] : memref<2x1x32xf32, #tpu.memory_space<vmem>>, vector<1x1x32xf32>
    %3 = vector.shape_cast %2 : vector<1x1x32xf32> to vector<1x32xf32>
    %c0_6 = arith.constant 0 : index
    %c0_7 = arith.constant 0 : index
    %c0_8 = arith.constant 0 : index
    %4 = vector.load %arg3[%c0_6, %c0_7, %c0_8] : memref<2x1x32xf32, #tpu.memory_space<vmem>>, vector<1x1x32xf32>
    %5 = vector.shape_cast %4 : vector<1x1x32xf32> to vector<1x32xf32>
    %cst = arith.constant dense<0.000000e+00> : vector<16xf32>
    %6 = vector.multi_reduction <add>, %0, %cst [1] : vector<16x32xf32> to vector<16xf32>
    %7 = vector.shape_cast %6 : vector<16xf32> to vector<16x1xf32>
    %cst_9 = arith.constant 3.200000e+01 : f32
    %8 = vector.broadcast %cst_9 : f32 to vector<16x1xf32>
    %9 = arith.divf %7, %8 : vector<16x1xf32>
    %10 = vector.broadcast %9 : vector<16x1xf32> to vector<16x32xf32>
    %11 = arith.subf %0, %10 : vector<16x32xf32>
    %12 = arith.mulf %11, %11 : vector<16x32xf32>
    %cst_10 = arith.constant dense<0.000000e+00> : vector<16xf32>
    %13 = vector.multi_reduction <add>, %12, %cst_10 [1] : vector<16x32xf32> to vector<16xf32>
    %14 = vector.shape_cast %13 : vector<16xf32> to vector<16x1xf32>
    %cst_11 = arith.constant 3.100000e+01 : f32
    %15 = vector.broadcast %cst_11 : f32 to vector<16x1xf32>
    %16 = arith.divf %14, %15 : vector<16x1xf32>
    %17 = vector.broadcast %3 : vector<1x32xf32> to vector<16x32xf32>
    %18 = arith.mulf %17, %11 : vector<16x32xf32>
    %19 = math.sqrt %16 : vector<16x1xf32>
    %cst_12 = arith.constant 9.99999997E-7 : f32
    %20 = vector.broadcast %cst_12 : f32 to vector<16x1xf32>
    %21 = arith.addf %19, %20 : vector<16x1xf32>
    %22 = vector.broadcast %21 : vector<16x1xf32> to vector<16x32xf32>
    %23 = arith.divf %18, %22 : vector<16x32xf32>
    %24 = vector.broadcast %5 : vector<1x32xf32> to vector<16x32xf32>
    %25 = arith.addf %23, %24 : vector<16x32xf32>
    %c0_13 = arith.constant 0 : index
    %c0_14 = arith.constant 0 : index
    %c0_15 = arith.constant 0 : index
    %c0_16 = arith.constant 0 : index
    %26 = vector.load %arg4[%c0_13, %c0_14, %c0_15, %c0_16] : memref<2x2x32x16xf32, #tpu.memory_space<vmem>>, vector<1x1x32x16xf32>
    %27 = vector.shape_cast %26 : vector<1x1x32x16xf32> to vector<32x16xf32>
    %cst_17 = arith.constant dense<0.000000e+00> : vector<16x16xf32>
    %28 = tpu.matmul %25, %27, %cst_17 {dimension_numbers = #tpu.dot_dimension_numbers<[1], [0], [0], [1], [0, 0, 1, 1], [], []>, precision = #tpu.contract_precision<fp32>} : vector<16x32xf32>, vector<32x16xf32>, vector<16x16xf32> -> vector<16x16xf32>
    %c0_18 = arith.constant 0 : index
    %c0_19 = arith.constant 0 : index
    %c0_20 = arith.constant 0 : index
    %c0_21 = arith.constant 0 : index
    %29 = vector.load %arg5[%c0_18, %c0_19, %c0_20, %c0_21] : memref<2x2x1x16xf32, #tpu.memory_space<vmem>>, vector<1x1x1x16xf32>
    %30 = vector.shape_cast %29 : vector<1x1x1x16xf32> to vector<1x16xf32>
    %31 = vector.broadcast %30 : vector<1x16xf32> to vector<16x16xf32>
    %32 = arith.addf %28, %31 : vector<16x16xf32>
    %c0_22 = arith.constant 0 : index
    %c0_23 = arith.constant 0 : index
    %c0_24 = arith.constant 0 : index
    %c0_25 = arith.constant 0 : index
    %33 = vector.load %arg6[%c0_22, %c0_23, %c0_24, %c0_25] : memref<2x2x32x16xf32, #tpu.memory_space<vmem>>, vector<1x1x32x16xf32>
    %34 = vector.shape_cast %33 : vector<1x1x32x16xf32> to vector<32x16xf32>
    %cst_26 = arith.constant dense<0.000000e+00> : vector<16x16xf32>
    %35 = tpu.matmul %25, %34, %cst_26 {dimension_numbers = #tpu.dot_dimension_numbers<[1], [0], [0], [1], [0, 0, 1, 1], [], []>, precision = #tpu.contract_precision<fp32>} : vector<16x32xf32>, vector<32x16xf32>, vector<16x16xf32> -> vector<16x16xf32>
    %c0_27 = arith.constant 0 : index
    %c0_28 = arith.constant 0 : index
    %c0_29 = arith.constant 0 : index
    %c0_30 = arith.constant 0 : index
    %36 = vector.load %arg7[%c0_27, %c0_28, %c0_29, %c0_30] : memref<2x2x1x16xf32, #tpu.memory_space<vmem>>, vector<1x1x1x16xf32>
    %37 = vector.shape_cast %36 : vector<1x1x1x16xf32> to vector<1x16xf32>
    %38 = vector.broadcast %37 : vector<1x16xf32> to vector<16x16xf32>
    %39 = arith.addf %35, %38 : vector<16x16xf32>
    %c0_31 = arith.constant 0 : index
    %c0_32 = arith.constant 0 : index
    %c0_33 = arith.constant 0 : index
    %c0_34 = arith.constant 0 : index
    %40 = vector.load %arg8[%c0_31, %c0_32, %c0_33, %c0_34] : memref<2x2x32x16xf32, #tpu.memory_space<vmem>>, vector<1x1x32x16xf32>
    %41 = vector.shape_cast %40 : vector<1x1x32x16xf32> to vector<32x16xf32>
    %cst_35 = arith.constant dense<0.000000e+00> : vector<16x16xf32>
    %42 = tpu.matmul %25, %41, %cst_35 {dimension_numbers = #tpu.dot_dimension_numbers<[1], [0], [0], [1], [0, 0, 1, 1], [], []>, precision = #tpu.contract_precision<fp32>} : vector<16x32xf32>, vector<32x16xf32>, vector<16x16xf32> -> vector<16x16xf32>
    %c0_36 = arith.constant 0 : index
    %c0_37 = arith.constant 0 : index
    %c0_38 = arith.constant 0 : index
    %c0_39 = arith.constant 0 : index
    %43 = vector.load %arg9[%c0_36, %c0_37, %c0_38, %c0_39] : memref<2x2x1x16xf32, #tpu.memory_space<vmem>>, vector<1x1x1x16xf32>
    %44 = vector.shape_cast %43 : vector<1x1x1x16xf32> to vector<1x16xf32>
    %45 = vector.broadcast %44 : vector<1x16xf32> to vector<16x16xf32>
    %46 = arith.addf %42, %45 : vector<16x16xf32>
    %47 = tpu.transpose %39, [1, 0] : vector<16x16xf32> -> vector<16x16xf32>
    %cst_40 = arith.constant dense<0.000000e+00> : vector<16x16xf32>
    %48 = tpu.matmul %32, %47, %cst_40 {dimension_numbers = #tpu.dot_dimension_numbers<[1], [0], [0], [1], [0, 0, 1, 1], [], []>, precision = #tpu.contract_precision<fp32>} : vector<16x16xf32>, vector<16x16xf32>, vector<16x16xf32> -> vector<16x16xf32>
    %cst_41 = arith.constant 2.500000e-01 : f32
    %49 = vector.broadcast %cst_41 : f32 to vector<16x16xf32>
    %50 = arith.mulf %48, %49 : vector<16x16xf32>
    %51 = arith.addf %50, %1 : vector<16x16xf32>
    %cst_42 = arith.constant dense<0xFF800000> : vector<16xf32>
    %52 = vector.multi_reduction <maximumf>, %51, %cst_42 [1] : vector<16x16xf32> to vector<16xf32>
    %53 = vector.shape_cast %52 : vector<16xf32> to vector<16x1xf32>
    %54 = vector.broadcast %53 : vector<16x1xf32> to vector<16x16xf32>
    %55 = arith.subf %51, %54 : vector<16x16xf32>
    %56 = math.exp %55 : vector<16x16xf32>
    %cst_43 = arith.constant dense<0.000000e+00> : vector<16xf32>
    %57 = vector.multi_reduction <add>, %56, %cst_43 [1] : vector<16x16xf32> to vector<16xf32>
    %58 = vector.shape_cast %57 : vector<16xf32> to vector<16x1xf32>
    %59 = tpu.reciprocal %58 {approx = true} : vector<16x1xf32> -> vector<16x1xf32>
    %60 = vector.broadcast %59 : vector<16x1xf32> to vector<16x16xf32>
    %61 = arith.mulf %56, %60 : vector<16x16xf32>
    %cst_44 = arith.constant dense<0.000000e+00> : vector<16x16xf32>
    %62 = tpu.matmul %61, %46, %cst_44 {dimension_numbers = #tpu.dot_dimension_numbers<[1], [0], [0], [1], [0, 0, 1, 1], [], []>, precision = #tpu.contract_precision<fp32>} : vector<16x16xf32>, vector<16x16xf32>, vector<16x16xf32> -> vector<16x16xf32>
    %c0_45 = arith.constant 0 : index
    %c0_46 = arith.constant 0 : index
    %c0_47 = arith.constant 0 : index
    %c0_48 = arith.constant 0 : index
    %63 = vector.load %arg10[%c0_45, %c0_46, %c0_47, %c0_48] : memref<2x2x16x32xf32, #tpu.memory_space<vmem>>, vector<1x1x16x32xf32>
    %64 = vector.shape_cast %63 : vector<1x1x16x32xf32> to vector<16x32xf32>
    %cst_49 = arith.constant dense<0.000000e+00> : vector<16x32xf32>
    %65 = tpu.matmul %62, %64, %cst_49 {dimension_numbers = #tpu.dot_dimension_numbers<[1], [0], [0], [1], [0, 0, 1, 1], [], []>, precision = #tpu.contract_precision<fp32>} : vector<16x16xf32>, vector<16x32xf32>, vector<16x32xf32> -> vector<16x32xf32>
    %c0_50 = arith.constant 0 : index
    %c1 = arith.constant 1 : index
    %c0_51 = arith.constant 0 : index
    %c0_52 = arith.constant 0 : index
    %66 = vector.load %arg4[%c0_50, %c1, %c0_51, %c0_52] : memref<2x2x32x16xf32, #tpu.memory_space<vmem>>, vector<1x1x32x16xf32>
    %67 = vector.shape_cast %66 : vector<1x1x32x16xf32> to vector<32x16xf32>
    %cst_53 = arith.constant dense<0.000000e+00> : vector<16x16xf32>
    %68 = tpu.matmul %25, %67, %cst_53 {dimension_numbers = #tpu.dot_dimension_numbers<[1], [0], [0], [1], [0, 0, 1, 1], [], []>, precision = #tpu.contract_precision<fp32>} : vector<16x32xf32>, vector<32x16xf32>, vector<16x16xf32> -> vector<16x16xf32>
    %c0_54 = arith.constant 0 : index
    %c1_55 = arith.constant 1 : index
    %c0_56 = arith.constant 0 : index
    %c0_57 = arith.constant 0 : index
    %69 = vector.load %arg5[%c0_54, %c1_55, %c0_56, %c0_57] : memref<2x2x1x16xf32, #tpu.memory_space<vmem>>, vector<1x1x1x16xf32>
    %70 = vector.shape_cast %69 : vector<1x1x1x16xf32> to vector<1x16xf32>
    %71 = vector.broadcast %70 : vector<1x16xf32> to vector<16x16xf32>
    %72 = arith.addf %68, %71 : vector<16x16xf32>
    %c0_58 = arith.constant 0 : index
    %c1_59 = arith.constant 1 : index
    %c0_60 = arith.constant 0 : index
    %c0_61 = arith.constant 0 : index
    %73 = vector.load %arg6[%c0_58, %c1_59, %c0_60, %c0_61] : memref<2x2x32x16xf32, #tpu.memory_space<vmem>>, vector<1x1x32x16xf32>
    %74 = vector.shape_cast %73 : vector<1x1x32x16xf32> to vector<32x16xf32>
    %cst_62 = arith.constant dense<0.000000e+00> : vector<16x16xf32>
    %75 = tpu.matmul %25, %74, %cst_62 {dimension_numbers = #tpu.dot_dimension_numbers<[1], [0], [0], [1], [0, 0, 1, 1], [], []>, precision = #tpu.contract_precision<fp32>} : vector<16x32xf32>, vector<32x16xf32>, vector<16x16xf32> -> vector<16x16xf32>
    %c0_63 = arith.constant 0 : index
    %c1_64 = arith.constant 1 : index
    %c0_65 = arith.constant 0 : index
    %c0_66 = arith.constant 0 : index
    %76 = vector.load %arg7[%c0_63, %c1_64, %c0_65, %c0_66] : memref<2x2x1x16xf32, #tpu.memory_space<vmem>>, vector<1x1x1x16xf32>
    %77 = vector.shape_cast %76 : vector<1x1x1x16xf32> to vector<1x16xf32>
    %78 = vector.broadcast %77 : vector<1x16xf32> to vector<16x16xf32>
    %79 = arith.addf %75, %78 : vector<16x16xf32>
    %c0_67 = arith.constant 0 : index
    %c1_68 = arith.constant 1 : index
    %c0_69 = arith.constant 0 : index
    %c0_70 = arith.constant 0 : index
    %80 = vector.load %arg8[%c0_67, %c1_68, %c0_69, %c0_70] : memref<2x2x32x16xf32, #tpu.memory_space<vmem>>, vector<1x1x32x16xf32>
    %81 = vector.shape_cast %80 : vector<1x1x32x16xf32> to vector<32x16xf32>
    %cst_71 = arith.constant dense<0.000000e+00> : vector<16x16xf32>
    %82 = tpu.matmul %25, %81, %cst_71 {dimension_numbers = #tpu.dot_dimension_numbers<[1], [0], [0], [1], [0, 0, 1, 1], [], []>, precision = #tpu.contract_precision<fp32>} : vector<16x32xf32>, vector<32x16xf32>, vector<16x16xf32> -> vector<16x16xf32>
    %c0_72 = arith.constant 0 : index
    %c1_73 = arith.constant 1 : index
    %c0_74 = arith.constant 0 : index
    %c0_75 = arith.constant 0 : index
    %83 = vector.load %arg9[%c0_72, %c1_73, %c0_74, %c0_75] : memref<2x2x1x16xf32, #tpu.memory_space<vmem>>, vector<1x1x1x16xf32>
    %84 = vector.shape_cast %83 : vector<1x1x1x16xf32> to vector<1x16xf32>
    %85 = vector.broadcast %84 : vector<1x16xf32> to vector<16x16xf32>
    %86 = arith.addf %82, %85 : vector<16x16xf32>
    %87 = tpu.transpose %79, [1, 0] : vector<16x16xf32> -> vector<16x16xf32>
    %cst_76 = arith.constant dense<0.000000e+00> : vector<16x16xf32>
    %88 = tpu.matmul %72, %87, %cst_76 {dimension_numbers = #tpu.dot_dimension_numbers<[1], [0], [0], [1], [0, 0, 1, 1], [], []>, precision = #tpu.contract_precision<fp32>} : vector<16x16xf32>, vector<16x16xf32>, vector<16x16xf32> -> vector<16x16xf32>
    %cst_77 = arith.constant 2.500000e-01 : f32
    %89 = vector.broadcast %cst_77 : f32 to vector<16x16xf32>
    %90 = arith.mulf %88, %89 : vector<16x16xf32>
    %91 = arith.addf %90, %1 : vector<16x16xf32>
    %cst_78 = arith.constant dense<0xFF800000> : vector<16xf32>
    %92 = vector.multi_reduction <maximumf>, %91, %cst_78 [1] : vector<16x16xf32> to vector<16xf32>
    %93 = vector.shape_cast %92 : vector<16xf32> to vector<16x1xf32>
    %94 = vector.broadcast %93 : vector<16x1xf32> to vector<16x16xf32>
    %95 = arith.subf %91, %94 : vector<16x16xf32>
    %96 = math.exp %95 : vector<16x16xf32>
    %cst_79 = arith.constant dense<0.000000e+00> : vector<16xf32>
    %97 = vector.multi_reduction <add>, %96, %cst_79 [1] : vector<16x16xf32> to vector<16xf32>
    %98 = vector.shape_cast %97 : vector<16xf32> to vector<16x1xf32>
    %99 = tpu.reciprocal %98 {approx = true} : vector<16x1xf32> -> vector<16x1xf32>
    %100 = vector.broadcast %99 : vector<16x1xf32> to vector<16x16xf32>
    %101 = arith.mulf %96, %100 : vector<16x16xf32>
    %cst_80 = arith.constant dense<0.000000e+00> : vector<16x16xf32>
    %102 = tpu.matmul %101, %86, %cst_80 {dimension_numbers = #tpu.dot_dimension_numbers<[1], [0], [0], [1], [0, 0, 1, 1], [], []>, precision = #tpu.contract_precision<fp32>} : vector<16x16xf32>, vector<16x16xf32>, vector<16x16xf32> -> vector<16x16xf32>
    %c0_81 = arith.constant 0 : index
    %c1_82 = arith.constant 1 : index
    %c0_83 = arith.constant 0 : index
    %c0_84 = arith.constant 0 : index
    %103 = vector.load %arg10[%c0_81, %c1_82, %c0_83, %c0_84] : memref<2x2x16x32xf32, #tpu.memory_space<vmem>>, vector<1x1x16x32xf32>
    %104 = vector.shape_cast %103 : vector<1x1x16x32xf32> to vector<16x32xf32>
    %cst_85 = arith.constant dense<0.000000e+00> : vector<16x32xf32>
    %105 = tpu.matmul %102, %104, %cst_85 {dimension_numbers = #tpu.dot_dimension_numbers<[1], [0], [0], [1], [0, 0, 1, 1], [], []>, precision = #tpu.contract_precision<fp32>} : vector<16x16xf32>, vector<16x32xf32>, vector<16x32xf32> -> vector<16x32xf32>
    %106 = arith.addf %65, %105 : vector<16x32xf32>
    %107 = arith.addf %0, %106 : vector<16x32xf32>
    %c0_86 = arith.constant 0 : index
    %c0_87 = arith.constant 0 : index
    %c0_88 = arith.constant 0 : index
    %108 = vector.load %arg11[%c0_86, %c0_87, %c0_88] : memref<2x1x32xf32, #tpu.memory_space<vmem>>, vector<1x1x32xf32>
    %109 = vector.shape_cast %108 : vector<1x1x32xf32> to vector<1x32xf32>
    %110 = vector.broadcast %109 : vector<1x32xf32> to vector<16x32xf32>
    %111 = arith.addf %107, %110 : vector<16x32xf32>
    %c0_89 = arith.constant 0 : index
    %c0_90 = arith.constant 0 : index
    %c0_91 = arith.constant 0 : index
    %112 = vector.load %arg12[%c0_89, %c0_90, %c0_91] : memref<2x1x32xf32, #tpu.memory_space<vmem>>, vector<1x1x32xf32>
    %113 = vector.shape_cast %112 : vector<1x1x32xf32> to vector<1x32xf32>
    %c0_92 = arith.constant 0 : index
    %c0_93 = arith.constant 0 : index
    %c0_94 = arith.constant 0 : index
    %114 = vector.load %arg13[%c0_92, %c0_93, %c0_94] : memref<2x1x32xf32, #tpu.memory_space<vmem>>, vector<1x1x32xf32>
    %115 = vector.shape_cast %114 : vector<1x1x32xf32> to vector<1x32xf32>
    %cst_95 = arith.constant dense<0.000000e+00> : vector<16xf32>
    %116 = vector.multi_reduction <add>, %111, %cst_95 [1] : vector<16x32xf32> to vector<16xf32>
    %117 = vector.shape_cast %116 : vector<16xf32> to vector<16x1xf32>
    %cst_96 = arith.constant 3.200000e+01 : f32
    %118 = vector.broadcast %cst_96 : f32 to vector<16x1xf32>
    %119 = arith.divf %117, %118 : vector<16x1xf32>
    %120 = vector.broadcast %119 : vector<16x1xf32> to vector<16x32xf32>
    %121 = arith.subf %111, %120 : vector<16x32xf32>
    %122 = arith.mulf %121, %121 : vector<16x32xf32>
    %cst_97 = arith.constant dense<0.000000e+00> : vector<16xf32>
    %123 = vector.multi_reduction <add>, %122, %cst_97 [1] : vector<16x32xf32> to vector<16xf32>
    %124 = vector.shape_cast %123 : vector<16xf32> to vector<16x1xf32>
    %cst_98 = arith.constant 3.100000e+01 : f32
    %125 = vector.broadcast %cst_98 : f32 to vector<16x1xf32>
    %126 = arith.divf %124, %125 : vector<16x1xf32>
    %127 = vector.broadcast %113 : vector<1x32xf32> to vector<16x32xf32>
    %128 = arith.mulf %127, %121 : vector<16x32xf32>
    %129 = math.sqrt %126 : vector<16x1xf32>
    %cst_99 = arith.constant 9.99999997E-7 : f32
    %130 = vector.broadcast %cst_99 : f32 to vector<16x1xf32>
    %131 = arith.addf %129, %130 : vector<16x1xf32>
    %132 = vector.broadcast %131 : vector<16x1xf32> to vector<16x32xf32>
    %133 = arith.divf %128, %132 : vector<16x32xf32>
    %134 = vector.broadcast %115 : vector<1x32xf32> to vector<16x32xf32>
    %135 = arith.addf %133, %134 : vector<16x32xf32>
    %c0_100 = arith.constant 0 : index
    %c0_101 = arith.constant 0 : index
    %c0_102 = arith.constant 0 : index
    %136 = vector.load %arg14[%c0_100, %c0_101, %c0_102] : memref<2x32x128xf32, #tpu.memory_space<vmem>>, vector<1x32x128xf32>
    %137 = vector.shape_cast %136 : vector<1x32x128xf32> to vector<32x128xf32>
    %cst_103 = arith.constant dense<0.000000e+00> : vector<16x128xf32>
    %138 = tpu.matmul %135, %137, %cst_103 {dimension_numbers = #tpu.dot_dimension_numbers<[1], [0], [0], [1], [0, 0, 1, 1], [], []>, precision = #tpu.contract_precision<fp32>} : vector<16x32xf32>, vector<32x128xf32>, vector<16x128xf32> -> vector<16x128xf32>
    %c0_104 = arith.constant 0 : index
    %c0_105 = arith.constant 0 : index
    %c0_106 = arith.constant 0 : index
    %139 = vector.load %arg15[%c0_104, %c0_105, %c0_106] : memref<2x1x128xf32, #tpu.memory_space<vmem>>, vector<1x1x128xf32>
    %140 = vector.shape_cast %139 : vector<1x1x128xf32> to vector<1x128xf32>
    %141 = vector.broadcast %140 : vector<1x128xf32> to vector<16x128xf32>
    %142 = arith.addf %138, %141 : vector<16x128xf32>
    %cst_107 = arith.constant 5.000000e-01 : f32
    %143 = vector.broadcast %cst_107 : f32 to vector<16x128xf32>
    %144 = arith.mulf %143, %142 : vector<16x128xf32>
    %cst_108 = arith.constant 4.471500e-02 : f32
    %145 = vector.broadcast %cst_108 : f32 to vector<16x128xf32>
    %146 = arith.mulf %145, %142 : vector<16x128xf32>
    %147 = arith.mulf %146, %142 : vector<16x128xf32>
    %148 = arith.mulf %147, %142 : vector<16x128xf32>
    %149 = arith.addf %142, %148 : vector<16x128xf32>
    %cst_109 = arith.constant 0.797884583 : f32
    %150 = vector.broadcast %cst_109 : f32 to vector<16x128xf32>
    %151 = arith.mulf %150, %149 : vector<16x128xf32>
    %152 = math.tanh %151 : vector<16x128xf32>
    %cst_110 = arith.constant 1.000000e+00 : f32
    %153 = vector.broadcast %cst_110 : f32 to vector<16x128xf32>
    %154 = arith.addf %153, %152 : vector<16x128xf32>
    %155 = arith.mulf %144, %154 : vector<16x128xf32>
    %c0_111 = arith.constant 0 : index
    %c0_112 = arith.constant 0 : index
    %c0_113 = arith.constant 0 : index
    %156 = vector.load %arg16[%c0_111, %c0_112, %c0_113] : memref<2x128x32xf32, #tpu.memory_space<vmem>>, vector<1x128x32xf32>
    %157 = vector.shape_cast %156 : vector<1x128x32xf32> to vector<128x32xf32>
    %cst_114 = arith.constant dense<0.000000e+00> : vector<16x32xf32>
    %158 = tpu.matmul %155, %157, %cst_114 {dimension_numbers = #tpu.dot_dimension_numbers<[1], [0], [0], [1], [0, 0, 1, 1], [], []>, precision = #tpu.contract_precision<fp32>} : vector<16x128xf32>, vector<128x32xf32>, vector<16x32xf32> -> vector<16x32xf32>
    %c0_115 = arith.constant 0 : index
    %c0_116 = arith.constant 0 : index
    %c0_117 = arith.constant 0 : index
    %159 = vector.load %arg17[%c0_115, %c0_116, %c0_117] : memref<2x1x32xf32, #tpu.memory_space<vmem>>, vector<1x1x32xf32>
    %160 = vector.shape_cast %159 : vector<1x1x32xf32> to vector<1x32xf32>
    %161 = vector.broadcast %160 : vector<1x32xf32> to vector<16x32xf32>
    %162 = arith.addf %158, %161 : vector<16x32xf32>
    %163 = arith.addf %111, %162 : vector<16x32xf32>
    %c1_118 = arith.constant 1 : index
    %c0_119 = arith.constant 0 : index
    %c0_120 = arith.constant 0 : index
    %164 = vector.load %arg2[%c1_118, %c0_119, %c0_120] : memref<2x1x32xf32, #tpu.memory_space<vmem>>, vector<1x1x32xf32>
    %165 = vector.shape_cast %164 : vector<1x1x32xf32> to vector<1x32xf32>
    %c1_121 = arith.constant 1 : index
    %c0_122 = arith.constant 0 : index
    %c0_123 = arith.constant 0 : index
    %166 = vector.load %arg3[%c1_121, %c0_122, %c0_123] : memref<2x1x32xf32, #tpu.memory_space<vmem>>, vector<1x1x32xf32>
    %167 = vector.shape_cast %166 : vector<1x1x32xf32> to vector<1x32xf32>
    %cst_124 = arith.constant dense<0.000000e+00> : vector<16xf32>
    %168 = vector.multi_reduction <add>, %163, %cst_124 [1] : vector<16x32xf32> to vector<16xf32>
    %169 = vector.shape_cast %168 : vector<16xf32> to vector<16x1xf32>
    %cst_125 = arith.constant 3.200000e+01 : f32
    %170 = vector.broadcast %cst_125 : f32 to vector<16x1xf32>
    %171 = arith.divf %169, %170 : vector<16x1xf32>
    %172 = vector.broadcast %171 : vector<16x1xf32> to vector<16x32xf32>
    %173 = arith.subf %163, %172 : vector<16x32xf32>
    %174 = arith.mulf %173, %173 : vector<16x32xf32>
    %cst_126 = arith.constant dense<0.000000e+00> : vector<16xf32>
    %175 = vector.multi_reduction <add>, %174, %cst_126 [1] : vector<16x32xf32> to vector<16xf32>
    %176 = vector.shape_cast %175 : vector<16xf32> to vector<16x1xf32>
    %cst_127 = arith.constant 3.100000e+01 : f32
    %177 = vector.broadcast %cst_127 : f32 to vector<16x1xf32>
    %178 = arith.divf %176, %177 : vector<16x1xf32>
    %179 = vector.broadcast %165 : vector<1x32xf32> to vector<16x32xf32>
    %180 = arith.mulf %179, %173 : vector<16x32xf32>
    %181 = math.sqrt %178 : vector<16x1xf32>
    %cst_128 = arith.constant 9.99999997E-7 : f32
    %182 = vector.broadcast %cst_128 : f32 to vector<16x1xf32>
    %183 = arith.addf %181, %182 : vector<16x1xf32>
    %184 = vector.broadcast %183 : vector<16x1xf32> to vector<16x32xf32>
    %185 = arith.divf %180, %184 : vector<16x32xf32>
    %186 = vector.broadcast %167 : vector<1x32xf32> to vector<16x32xf32>
    %187 = arith.addf %185, %186 : vector<16x32xf32>
    %c1_129 = arith.constant 1 : index
    %c0_130 = arith.constant 0 : index
    %c0_131 = arith.constant 0 : index
    %c0_132 = arith.constant 0 : index
    %188 = vector.load %arg4[%c1_129, %c0_130, %c0_131, %c0_132] : memref<2x2x32x16xf32, #tpu.memory_space<vmem>>, vector<1x1x32x16xf32>
    %189 = vector.shape_cast %188 : vector<1x1x32x16xf32> to vector<32x16xf32>
    %cst_133 = arith.constant dense<0.000000e+00> : vector<16x16xf32>
    %190 = tpu.matmul %187, %189, %cst_133 {dimension_numbers = #tpu.dot_dimension_numbers<[1], [0], [0], [1], [0, 0, 1, 1], [], []>, precision = #tpu.contract_precision<fp32>} : vector<16x32xf32>, vector<32x16xf32>, vector<16x16xf32> -> vector<16x16xf32>
    %c1_134 = arith.constant 1 : index
    %c0_135 = arith.constant 0 : index
    %c0_136 = arith.constant 0 : index
    %c0_137 = arith.constant 0 : index
    %191 = vector.load %arg5[%c1_134, %c0_135, %c0_136, %c0_137] : memref<2x2x1x16xf32, #tpu.memory_space<vmem>>, vector<1x1x1x16xf32>
    %192 = vector.shape_cast %191 : vector<1x1x1x16xf32> to vector<1x16xf32>
    %193 = vector.broadcast %192 : vector<1x16xf32> to vector<16x16xf32>
    %194 = arith.addf %190, %193 : vector<16x16xf32>
    %c1_138 = arith.constant 1 : index
    %c0_139 = arith.constant 0 : index
    %c0_140 = arith.constant 0 : index
    %c0_141 = arith.constant 0 : index
    %195 = vector.load %arg6[%c1_138, %c0_139, %c0_140, %c0_141] : memref<2x2x32x16xf32, #tpu.memory_space<vmem>>, vector<1x1x32x16xf32>
    %196 = vector.shape_cast %195 : vector<1x1x32x16xf32> to vector<32x16xf32>
    %cst_142 = arith.constant dense<0.000000e+00> : vector<16x16xf32>
    %197 = tpu.matmul %187, %196, %cst_142 {dimension_numbers = #tpu.dot_dimension_numbers<[1], [0], [0], [1], [0, 0, 1, 1], [], []>, precision = #tpu.contract_precision<fp32>} : vector<16x32xf32>, vector<32x16xf32>, vector<16x16xf32> -> vector<16x16xf32>
    %c1_143 = arith.constant 1 : index
    %c0_144 = arith.constant 0 : index
    %c0_145 = arith.constant 0 : index
    %c0_146 = arith.constant 0 : index
    %198 = vector.load %arg7[%c1_143, %c0_144, %c0_145, %c0_146] : memref<2x2x1x16xf32, #tpu.memory_space<vmem>>, vector<1x1x1x16xf32>
    %199 = vector.shape_cast %198 : vector<1x1x1x16xf32> to vector<1x16xf32>
    %200 = vector.broadcast %199 : vector<1x16xf32> to vector<16x16xf32>
    %201 = arith.addf %197, %200 : vector<16x16xf32>
    %c1_147 = arith.constant 1 : index
    %c0_148 = arith.constant 0 : index
    %c0_149 = arith.constant 0 : index
    %c0_150 = arith.constant 0 : index
    %202 = vector.load %arg8[%c1_147, %c0_148, %c0_149, %c0_150] : memref<2x2x32x16xf32, #tpu.memory_space<vmem>>, vector<1x1x32x16xf32>
    %203 = vector.shape_cast %202 : vector<1x1x32x16xf32> to vector<32x16xf32>
    %cst_151 = arith.constant dense<0.000000e+00> : vector<16x16xf32>
    %204 = tpu.matmul %187, %203, %cst_151 {dimension_numbers = #tpu.dot_dimension_numbers<[1], [0], [0], [1], [0, 0, 1, 1], [], []>, precision = #tpu.contract_precision<fp32>} : vector<16x32xf32>, vector<32x16xf32>, vector<16x16xf32> -> vector<16x16xf32>
    %c1_152 = arith.constant 1 : index
    %c0_153 = arith.constant 0 : index
    %c0_154 = arith.constant 0 : index
    %c0_155 = arith.constant 0 : index
    %205 = vector.load %arg9[%c1_152, %c0_153, %c0_154, %c0_155] : memref<2x2x1x16xf32, #tpu.memory_space<vmem>>, vector<1x1x1x16xf32>
    %206 = vector.shape_cast %205 : vector<1x1x1x16xf32> to vector<1x16xf32>
    %207 = vector.broadcast %206 : vector<1x16xf32> to vector<16x16xf32>
    %208 = arith.addf %204, %207 : vector<16x16xf32>
    %209 = tpu.transpose %201, [1, 0] : vector<16x16xf32> -> vector<16x16xf32>
    %cst_156 = arith.constant dense<0.000000e+00> : vector<16x16xf32>
    %210 = tpu.matmul %194, %209, %cst_156 {dimension_numbers = #tpu.dot_dimension_numbers<[1], [0], [0], [1], [0, 0, 1, 1], [], []>, precision = #tpu.contract_precision<fp32>} : vector<16x16xf32>, vector<16x16xf32>, vector<16x16xf32> -> vector<16x16xf32>
    %cst_157 = arith.constant 2.500000e-01 : f32
    %211 = vector.broadcast %cst_157 : f32 to vector<16x16xf32>
    %212 = arith.mulf %210, %211 : vector<16x16xf32>
    %213 = arith.addf %212, %1 : vector<16x16xf32>
    %cst_158 = arith.constant dense<0xFF800000> : vector<16xf32>
    %214 = vector.multi_reduction <maximumf>, %213, %cst_158 [1] : vector<16x16xf32> to vector<16xf32>
    %215 = vector.shape_cast %214 : vector<16xf32> to vector<16x1xf32>
    %216 = vector.broadcast %215 : vector<16x1xf32> to vector<16x16xf32>
    %217 = arith.subf %213, %216 : vector<16x16xf32>
    %218 = math.exp %217 : vector<16x16xf32>
    %cst_159 = arith.constant dense<0.000000e+00> : vector<16xf32>
    %219 = vector.multi_reduction <add>, %218, %cst_159 [1] : vector<16x16xf32> to vector<16xf32>
    %220 = vector.shape_cast %219 : vector<16xf32> to vector<16x1xf32>
    %221 = tpu.reciprocal %220 {approx = true} : vector<16x1xf32> -> vector<16x1xf32>
    %222 = vector.broadcast %221 : vector<16x1xf32> to vector<16x16xf32>
    %223 = arith.mulf %218, %222 : vector<16x16xf32>
    %cst_160 = arith.constant dense<0.000000e+00> : vector<16x16xf32>
    %224 = tpu.matmul %223, %208, %cst_160 {dimension_numbers = #tpu.dot_dimension_numbers<[1], [0], [0], [1], [0, 0, 1, 1], [], []>, precision = #tpu.contract_precision<fp32>} : vector<16x16xf32>, vector<16x16xf32>, vector<16x16xf32> -> vector<16x16xf32>
    %c1_161 = arith.constant 1 : index
    %c0_162 = arith.constant 0 : index
    %c0_163 = arith.constant 0 : index
    %c0_164 = arith.constant 0 : index
    %225 = vector.load %arg10[%c1_161, %c0_162, %c0_163, %c0_164] : memref<2x2x16x32xf32, #tpu.memory_space<vmem>>, vector<1x1x16x32xf32>
    %226 = vector.shape_cast %225 : vector<1x1x16x32xf32> to vector<16x32xf32>
    %cst_165 = arith.constant dense<0.000000e+00> : vector<16x32xf32>
    %227 = tpu.matmul %224, %226, %cst_165 {dimension_numbers = #tpu.dot_dimension_numbers<[1], [0], [0], [1], [0, 0, 1, 1], [], []>, precision = #tpu.contract_precision<fp32>} : vector<16x16xf32>, vector<16x32xf32>, vector<16x32xf32> -> vector<16x32xf32>
    %c1_166 = arith.constant 1 : index
    %c1_167 = arith.constant 1 : index
    %c0_168 = arith.constant 0 : index
    %c0_169 = arith.constant 0 : index
    %228 = vector.load %arg4[%c1_166, %c1_167, %c0_168, %c0_169] : memref<2x2x32x16xf32, #tpu.memory_space<vmem>>, vector<1x1x32x16xf32>
    %229 = vector.shape_cast %228 : vector<1x1x32x16xf32> to vector<32x16xf32>
    %cst_170 = arith.constant dense<0.000000e+00> : vector<16x16xf32>
    %230 = tpu.matmul %187, %229, %cst_170 {dimension_numbers = #tpu.dot_dimension_numbers<[1], [0], [0], [1], [0, 0, 1, 1], [], []>, precision = #tpu.contract_precision<fp32>} : vector<16x32xf32>, vector<32x16xf32>, vector<16x16xf32> -> vector<16x16xf32>
    %c1_171 = arith.constant 1 : index
    %c1_172 = arith.constant 1 : index
    %c0_173 = arith.constant 0 : index
    %c0_174 = arith.constant 0 : index
    %231 = vector.load %arg5[%c1_171, %c1_172, %c0_173, %c0_174] : memref<2x2x1x16xf32, #tpu.memory_space<vmem>>, vector<1x1x1x16xf32>
    %232 = vector.shape_cast %231 : vector<1x1x1x16xf32> to vector<1x16xf32>
    %233 = vector.broadcast %232 : vector<1x16xf32> to vector<16x16xf32>
    %234 = arith.addf %230, %233 : vector<16x16xf32>
    %c1_175 = arith.constant 1 : index
    %c1_176 = arith.constant 1 : index
    %c0_177 = arith.constant 0 : index
    %c0_178 = arith.constant 0 : index
    %235 = vector.load %arg6[%c1_175, %c1_176, %c0_177, %c0_178] : memref<2x2x32x16xf32, #tpu.memory_space<vmem>>, vector<1x1x32x16xf32>
    %236 = vector.shape_cast %235 : vector<1x1x32x16xf32> to vector<32x16xf32>
    %cst_179 = arith.constant dense<0.000000e+00> : vector<16x16xf32>
    %237 = tpu.matmul %187, %236, %cst_179 {dimension_numbers = #tpu.dot_dimension_numbers<[1], [0], [0], [1], [0, 0, 1, 1], [], []>, precision = #tpu.contract_precision<fp32>} : vector<16x32xf32>, vector<32x16xf32>, vector<16x16xf32> -> vector<16x16xf32>
    %c1_180 = arith.constant 1 : index
    %c1_181 = arith.constant 1 : index
    %c0_182 = arith.constant 0 : index
    %c0_183 = arith.constant 0 : index
    %238 = vector.load %arg7[%c1_180, %c1_181, %c0_182, %c0_183] : memref<2x2x1x16xf32, #tpu.memory_space<vmem>>, vector<1x1x1x16xf32>
    %239 = vector.shape_cast %238 : vector<1x1x1x16xf32> to vector<1x16xf32>
    %240 = vector.broadcast %239 : vector<1x16xf32> to vector<16x16xf32>
    %241 = arith.addf %237, %240 : vector<16x16xf32>
    %c1_184 = arith.constant 1 : index
    %c1_185 = arith.constant 1 : index
    %c0_186 = arith.constant 0 : index
    %c0_187 = arith.constant 0 : index
    %242 = vector.load %arg8[%c1_184, %c1_185, %c0_186, %c0_187] : memref<2x2x32x16xf32, #tpu.memory_space<vmem>>, vector<1x1x32x16xf32>
    %243 = vector.shape_cast %242 : vector<1x1x32x16xf32> to vector<32x16xf32>
    %cst_188 = arith.constant dense<0.000000e+00> : vector<16x16xf32>
    %244 = tpu.matmul %187, %243, %cst_188 {dimension_numbers = #tpu.dot_dimension_numbers<[1], [0], [0], [1], [0, 0, 1, 1], [], []>, precision = #tpu.contract_precision<fp32>} : vector<16x32xf32>, vector<32x16xf32>, vector<16x16xf32> -> vector<16x16xf32>
    %c1_189 = arith.constant 1 : index
    %c1_190 = arith.constant 1 : index
    %c0_191 = arith.constant 0 : index
    %c0_192 = arith.constant 0 : index
    %245 = vector.load %arg9[%c1_189, %c1_190, %c0_191, %c0_192] : memref<2x2x1x16xf32, #tpu.memory_space<vmem>>, vector<1x1x1x16xf32>
    %246 = vector.shape_cast %245 : vector<1x1x1x16xf32> to vector<1x16xf32>
    %247 = vector.broadcast %246 : vector<1x16xf32> to vector<16x16xf32>
    %248 = arith.addf %244, %247 : vector<16x16xf32>
    %249 = tpu.transpose %241, [1, 0] : vector<16x16xf32> -> vector<16x16xf32>
    %cst_193 = arith.constant dense<0.000000e+00> : vector<16x16xf32>
    %250 = tpu.matmul %234, %249, %cst_193 {dimension_numbers = #tpu.dot_dimension_numbers<[1], [0], [0], [1], [0, 0, 1, 1], [], []>, precision = #tpu.contract_precision<fp32>} : vector<16x16xf32>, vector<16x16xf32>, vector<16x16xf32> -> vector<16x16xf32>
    %cst_194 = arith.constant 2.500000e-01 : f32
    %251 = vector.broadcast %cst_194 : f32 to vector<16x16xf32>
    %252 = arith.mulf %250, %251 : vector<16x16xf32>
    %253 = arith.addf %252, %1 : vector<16x16xf32>
    %cst_195 = arith.constant dense<0xFF800000> : vector<16xf32>
    %254 = vector.multi_reduction <maximumf>, %253, %cst_195 [1] : vector<16x16xf32> to vector<16xf32>
    %255 = vector.shape_cast %254 : vector<16xf32> to vector<16x1xf32>
    %256 = vector.broadcast %255 : vector<16x1xf32> to vector<16x16xf32>
    %257 = arith.subf %253, %256 : vector<16x16xf32>
    %258 = math.exp %257 : vector<16x16xf32>
    %cst_196 = arith.constant dense<0.000000e+00> : vector<16xf32>
    %259 = vector.multi_reduction <add>, %258, %cst_196 [1] : vector<16x16xf32> to vector<16xf32>
    %260 = vector.shape_cast %259 : vector<16xf32> to vector<16x1xf32>
    %261 = tpu.reciprocal %260 {approx = true} : vector<16x1xf32> -> vector<16x1xf32>
    %262 = vector.broadcast %261 : vector<16x1xf32> to vector<16x16xf32>
    %263 = arith.mulf %258, %262 : vector<16x16xf32>
    %cst_197 = arith.constant dense<0.000000e+00> : vector<16x16xf32>
    %264 = tpu.matmul %263, %248, %cst_197 {dimension_numbers = #tpu.dot_dimension_numbers<[1], [0], [0], [1], [0, 0, 1, 1], [], []>, precision = #tpu.contract_precision<fp32>} : vector<16x16xf32>, vector<16x16xf32>, vector<16x16xf32> -> vector<16x16xf32>
    %c1_198 = arith.constant 1 : index
    %c1_199 = arith.constant 1 : index
    %c0_200 = arith.constant 0 : index
    %c0_201 = arith.constant 0 : index
    %265 = vector.load %arg10[%c1_198, %c1_199, %c0_200, %c0_201] : memref<2x2x16x32xf32, #tpu.memory_space<vmem>>, vector<1x1x16x32xf32>
    %266 = vector.shape_cast %265 : vector<1x1x16x32xf32> to vector<16x32xf32>
    %cst_202 = arith.constant dense<0.000000e+00> : vector<16x32xf32>
    %267 = tpu.matmul %264, %266, %cst_202 {dimension_numbers = #tpu.dot_dimension_numbers<[1], [0], [0], [1], [0, 0, 1, 1], [], []>, precision = #tpu.contract_precision<fp32>} : vector<16x16xf32>, vector<16x32xf32>, vector<16x32xf32> -> vector<16x32xf32>
    %268 = arith.addf %227, %267 : vector<16x32xf32>
    %269 = arith.addf %163, %268 : vector<16x32xf32>
    %c1_203 = arith.constant 1 : index
    %c0_204 = arith.constant 0 : index
    %c0_205 = arith.constant 0 : index
    %270 = vector.load %arg11[%c1_203, %c0_204, %c0_205] : memref<2x1x32xf32, #tpu.memory_space<vmem>>, vector<1x1x32xf32>
    %271 = vector.shape_cast %270 : vector<1x1x32xf32> to vector<1x32xf32>
    %272 = vector.broadcast %271 : vector<1x32xf32> to vector<16x32xf32>
    %273 = arith.addf %269, %272 : vector<16x32xf32>
    %c1_206 = arith.constant 1 : index
    %c0_207 = arith.constant 0 : index
    %c0_208 = arith.constant 0 : index
    %274 = vector.load %arg12[%c1_206, %c0_207, %c0_208] : memref<2x1x32xf32, #tpu.memory_space<vmem>>, vector<1x1x32xf32>
    %275 = vector.shape_cast %274 : vector<1x1x32xf32> to vector<1x32xf32>
    %c1_209 = arith.constant 1 : index
    %c0_210 = arith.constant 0 : index
    %c0_211 = arith.constant 0 : index
    %276 = vector.load %arg13[%c1_209, %c0_210, %c0_211] : memref<2x1x32xf32, #tpu.memory_space<vmem>>, vector<1x1x32xf32>
    %277 = vector.shape_cast %276 : vector<1x1x32xf32> to vector<1x32xf32>
    %cst_212 = arith.constant dense<0.000000e+00> : vector<16xf32>
    %278 = vector.multi_reduction <add>, %273, %cst_212 [1] : vector<16x32xf32> to vector<16xf32>
    %279 = vector.shape_cast %278 : vector<16xf32> to vector<16x1xf32>
    %cst_213 = arith.constant 3.200000e+01 : f32
    %280 = vector.broadcast %cst_213 : f32 to vector<16x1xf32>
    %281 = arith.divf %279, %280 : vector<16x1xf32>
    %282 = vector.broadcast %281 : vector<16x1xf32> to vector<16x32xf32>
    %283 = arith.subf %273, %282 : vector<16x32xf32>
    %284 = arith.mulf %283, %283 : vector<16x32xf32>
    %cst_214 = arith.constant dense<0.000000e+00> : vector<16xf32>
    %285 = vector.multi_reduction <add>, %284, %cst_214 [1] : vector<16x32xf32> to vector<16xf32>
    %286 = vector.shape_cast %285 : vector<16xf32> to vector<16x1xf32>
    %cst_215 = arith.constant 3.100000e+01 : f32
    %287 = vector.broadcast %cst_215 : f32 to vector<16x1xf32>
    %288 = arith.divf %286, %287 : vector<16x1xf32>
    %289 = vector.broadcast %275 : vector<1x32xf32> to vector<16x32xf32>
    %290 = arith.mulf %289, %283 : vector<16x32xf32>
    %291 = math.sqrt %288 : vector<16x1xf32>
    %cst_216 = arith.constant 9.99999997E-7 : f32
    %292 = vector.broadcast %cst_216 : f32 to vector<16x1xf32>
    %293 = arith.addf %291, %292 : vector<16x1xf32>
    %294 = vector.broadcast %293 : vector<16x1xf32> to vector<16x32xf32>
    %295 = arith.divf %290, %294 : vector<16x32xf32>
    %296 = vector.broadcast %277 : vector<1x32xf32> to vector<16x32xf32>
    %297 = arith.addf %295, %296 : vector<16x32xf32>
    %c1_217 = arith.constant 1 : index
    %c0_218 = arith.constant 0 : index
    %c0_219 = arith.constant 0 : index
    %298 = vector.load %arg14[%c1_217, %c0_218, %c0_219] : memref<2x32x128xf32, #tpu.memory_space<vmem>>, vector<1x32x128xf32>
    %299 = vector.shape_cast %298 : vector<1x32x128xf32> to vector<32x128xf32>
    %cst_220 = arith.constant dense<0.000000e+00> : vector<16x128xf32>
    %300 = tpu.matmul %297, %299, %cst_220 {dimension_numbers = #tpu.dot_dimension_numbers<[1], [0], [0], [1], [0, 0, 1, 1], [], []>, precision = #tpu.contract_precision<fp32>} : vector<16x32xf32>, vector<32x128xf32>, vector<16x128xf32> -> vector<16x128xf32>
    %c1_221 = arith.constant 1 : index
    %c0_222 = arith.constant 0 : index
    %c0_223 = arith.constant 0 : index
    %301 = vector.load %arg15[%c1_221, %c0_222, %c0_223] : memref<2x1x128xf32, #tpu.memory_space<vmem>>, vector<1x1x128xf32>
    %302 = vector.shape_cast %301 : vector<1x1x128xf32> to vector<1x128xf32>
    %303 = vector.broadcast %302 : vector<1x128xf32> to vector<16x128xf32>
    %304 = arith.addf %300, %303 : vector<16x128xf32>
    %cst_224 = arith.constant 5.000000e-01 : f32
    %305 = vector.broadcast %cst_224 : f32 to vector<16x128xf32>
    %306 = arith.mulf %305, %304 : vector<16x128xf32>
    %cst_225 = arith.constant 4.471500e-02 : f32
    %307 = vector.broadcast %cst_225 : f32 to vector<16x128xf32>
    %308 = arith.mulf %307, %304 : vector<16x128xf32>
    %309 = arith.mulf %308, %304 : vector<16x128xf32>
    %310 = arith.mulf %309, %304 : vector<16x128xf32>
    %311 = arith.addf %304, %310 : vector<16x128xf32>
    %cst_226 = arith.constant 0.797884583 : f32
    %312 = vector.broadcast %cst_226 : f32 to vector<16x128xf32>
    %313 = arith.mulf %312, %311 : vector<16x128xf32>
    %314 = math.tanh %313 : vector<16x128xf32>
    %cst_227 = arith.constant 1.000000e+00 : f32
    %315 = vector.broadcast %cst_227 : f32 to vector<16x128xf32>
    %316 = arith.addf %315, %314 : vector<16x128xf32>
    %317 = arith.mulf %306, %316 : vector<16x128xf32>
    %c1_228 = arith.constant 1 : index
    %c0_229 = arith.constant 0 : index
    %c0_230 = arith.constant 0 : index
    %318 = vector.load %arg16[%c1_228, %c0_229, %c0_230] : memref<2x128x32xf32, #tpu.memory_space<vmem>>, vector<1x128x32xf32>
    %319 = vector.shape_cast %318 : vector<1x128x32xf32> to vector<128x32xf32>
    %cst_231 = arith.constant dense<0.000000e+00> : vector<16x32xf32>
    %320 = tpu.matmul %317, %319, %cst_231 {dimension_numbers = #tpu.dot_dimension_numbers<[1], [0], [0], [1], [0, 0, 1, 1], [], []>, precision = #tpu.contract_precision<fp32>} : vector<16x128xf32>, vector<128x32xf32>, vector<16x32xf32> -> vector<16x32xf32>
    %c1_232 = arith.constant 1 : index
    %c0_233 = arith.constant 0 : index
    %c0_234 = arith.constant 0 : index
    %321 = vector.load %arg17[%c1_232, %c0_233, %c0_234] : memref<2x1x32xf32, #tpu.memory_space<vmem>>, vector<1x1x32xf32>
    %322 = vector.shape_cast %321 : vector<1x1x32xf32> to vector<1x32xf32>
    %323 = vector.broadcast %322 : vector<1x32xf32> to vector<16x32xf32>
    %324 = arith.addf %320, %323 : vector<16x32xf32>
    %325 = arith.addf %273, %324 : vector<16x32xf32>
    %c0_235 = arith.constant 0 : index
    %c0_236 = arith.constant 0 : index
    %326 = vector.load %arg18[%c0_235, %c0_236] : memref<32x128xf32, #tpu.memory_space<vmem>>, vector<32x128xf32>
    %cst_237 = arith.constant dense<0.000000e+00> : vector<16x128xf32>
    %327 = tpu.matmul %325, %326, %cst_237 {dimension_numbers = #tpu.dot_dimension_numbers<[1], [0], [0], [1], [0, 0, 1, 1], [], []>, precision = #tpu.contract_precision<fp32>} : vector<16x32xf32>, vector<32x128xf32>, vector<16x128xf32> -> vector<16x128xf32>
    %c0_238 = arith.constant 0 : index
    %c0_239 = arith.constant 0 : index
    %328 = vector.load %arg19[%c0_238, %c0_239] : memref<1x128xf32, #tpu.memory_space<vmem>>, vector<1x128xf32>
    %329 = vector.broadcast %328 : vector<1x128xf32> to vector<16x128xf32>
    %330 = arith.addf %327, %329 : vector<16x128xf32>
    %c0_240 = arith.constant 0 : index
    %c0_241 = arith.constant 0 : index
    %331 = vector.load %arg20[%c0_240, %c0_241] : memref<16x128xf32, #tpu.memory_space<vmem>>, vector<16x128xf32>
    tpu.vector_store %arg20[%c0_240, %c0_241], %330 {strides = array<i32>} : memref<16x128xf32, #tpu.memory_space<vmem>>, vector<16x128xf32>,
    return
  }
}

</mosaic_0001>

<bundles_post_ra>
// kernel: bert_model_forward.1
= control target key start
LH: loop header
LB: loop body
LE: loop exit
PB: predicated region body
PF: predicated region fallthrough
CT: control target
= control target key end

     0   :  { %vm71_vm0 = vcmask 261120   ;;  %vm1753_vm5 = vcmask 130048   ;;  %s22924_s0 = inlined_call_operand.vmem [shape: f32[16,32], index: 0, kind: input, shape index: {}]   ;;  %s22925_s4 = inlined_call_operand.vmem [shape: f32[2,2,32,16], index: 4, kind: input, shape index: {}]   ;;  %s22926_s6 = inlined_call_operand.vmem [shape: f32[2,2,32,16], index: 6, kind: input, shape index: {}]   ;;  %s22927_s2 = inlined_call_operand.vmem [shape: f32[2,1,32], index: 2, kind: input, shape index: {}]   ;;  %s22928_s3 = inlined_call_operand.vmem [shape: f32[2,1,32], index: 3, kind: input, shape index: {}]   ;;  %s22929_s8 = inlined_call_operand.vmem [shape: f32[2,2,32,16], index: 8, kind: input, shape index: {}]   ;;  %s22930_s5 = inlined_call_operand.vmem [shape: f32[2,2,1,16], index: 5, kind: input, shape index: {}]   ;;  %s22931_s7 = inlined_call_operand.vmem [shape: f32[2,2,1,16], index: 7, kind: input, shape index: {}]   ;;  %s22932_s9 = inlined_call_operand.vmem [shape: f32[2,2,1,16], index: 9, kind: input, shape index: {}]   ;;  %s22933_s1 = inlined_call_operand.vmem [shape: f32[16,16], index: 1, kind: input, shape index: {}]   ;;  %s22934_s10 = inlined_call_operand.vmem [shape: f32[2,2,16,32], index: 10, kind: input, shape index: {}]   ;;  %s22935_s11 = inlined_call_operand.vmem [shape: f32[2,1,32], index: 11, kind: input, shape index: {}]   ;;  %s22936_s14 = inlined_call_operand.vmem [shape: f32[2,32,128], index: 14, kind: input, shape index: {}]   ;;  %s22937_s12 = inlined_call_operand.vmem [shape: f32[2,1,32], index: 12, kind: input, shape index: {}]   ;;  %s22938_s13 = inlined_call_operand.vmem [shape: f32[2,1,32], index: 13, kind: input, shape index: {}]   ;;  %s22939_s16 = inlined_call_operand.vmem [shape: f32[2,128,32], index: 16, kind: input, shape index: {}]   ;;  %s22940_s15 = inlined_call_operand.vmem [shape: f32[2,1,128], index: 15, kind: input, shape index: {}]   ;;  %s22941_s17 = inlined_call_operand.vmem [shape: f32[2,1,32], index: 17, kind: input, shape index: {}]   ;;  %s22942_s18 = inlined_call_operand.vmem [shape: f32[32,128], index: 18, kind: input, shape index: {}]   ;;  %s22943_s19 = inlined_call_operand.vmem [shape: f32[1,128], index: 19, kind: input, shape index: {}]   ;;  %s22944_s20 = inlined_call_operand.vmem [shape: f32[16,128], index: 20, kind: output, shape index: {}]  }
   0x1   :  { %22965 = sst [smem:[#allocation2_spill]] %s22924_s0 }
   0x2   :  { %22966 = sst [smem:[#allocation3_spill]] %s22925_s4  ;;  %s22970_s23 = sld [smem:[#allocation2_spill]] }
   0x3   :  { %22967 = sst [smem:[#allocation4_spill]] %s22926_s6  ;;  %s22971_s26 = sld [smem:[#allocation3_spill]] }
   0x4   :  { %22968 = sst [smem:[#allocation5_spill]] %s22927_s2  ;;  %s22972_s22 = sld [smem:[#allocation4_spill]] }
   0x5   :  { %22969 = sst [smem:[#allocation6_spill]] %s22928_s3  ;;  %s22973_s27 = sld [smem:[#allocation5_spill]] }
   0x6   :  { %s22974_s29 = sld [smem:[#allocation6_spill]] }
   0x8   :  { %v65_v0 = vld [vmem:[%s22970_s23] sm:$0xff]  ;;  %v66_v1 = vld [vmem:[%s22970_s23 + $0x8] sm:$0xff] }
   0x9   :  { %v72_v2 = vsel %vm71_vm0, %v65_v0, 0.0  ;;  %v75_v3 = vsel %vm71_vm0, %v66_v1, 0.0  ;;  %v130_v14 = vld [vmem:[%s22971_s26] sm:$0xff]  ;;  %v131_v15 = vld [vmem:[%s22971_s26 + $0x8] sm:$0xff]  ;;  %v132_v20 = vld [vmem:[%s22971_s26 + $0x10] sm:$0xff] }
   0xa   :  { %73 = vadd.xlane.f32.xlu0 %v72_v2  ;;  %v148_v16 = vand.u32 4294901760, %v130_v14  ;;  %v151_v17 = vand.u32 4294901760, %v131_v15  ;;  %v133_v21 = vld [vmem:[%s22971_s26 + $0x18] sm:$0xff]  ;;  %v154_v24 = vand.u32 4294901760, %v132_v20  ;;  %v675_v44 = vld [vmem:[%s22972_s22] sm:$0xff]  ;;  %v676_v45 = vld [vmem:[%s22972_s22 + $0x8] sm:$0xff] }
   0xb   :  { %v157_v25 = vand.u32 4294901760, %v133_v21  ;;  %v687_v46 = vand.u32 4294901760, %v675_v44  ;;  %v690_v47 = vand.u32 4294901760, %v676_v45 }
   0xc   :  { %v238_v18 = vsub.f32 %v130_v14, %v148_v16  ;;  %v245_v19 = vsub.f32 %v131_v15, %v151_v17  ;;  %v252_v28 = vsub.f32 %v132_v20, %v154_v24  ;;  %v21158_v40 = vpack.c.bf16 %v151_v17, %v148_v16  ;;  %v16164_v16 = vld [vmem:[%s22973_s27] ss:$0 sm:$0xff] }
   0xd   :  { %v259_v29 = vsub.f32 %v133_v21, %v157_v25  ;;  %v21164_v42 = vpack.c.bf16 %v157_v25, %v154_v24  ;;  %v21177_v48 = vpack.c.bf16 %v690_v47, %v687_v46  ;;  %v777_v49 = vsub.f32 %v675_v44, %v687_v46  ;;  %v677_v24 = vld [vmem:[%s22972_s22 + $0x10] sm:$0xff]  ;;  %v678_v25 = vld [vmem:[%s22972_s22 + $0x18] sm:$0xff] }
   0xe   :  { %76 = vadd.xlane.f32.xlu0 %v75_v3  ;;  %v239_v22 = vand.u32 4294901760, %v238_v18  ;;  %v246_v23 = vand.u32 4294901760, %v245_v19  ;;  %v253_v32 = vand.u32 4294901760, %v252_v28  ;;  %v21160_v41 = vpack.c.bf16 %v245_v19, %v238_v18  ;;  %19228 = vmatprep.subr.bf16.mxu1 %v21158_v40 }
   0xf   :  { %v260_v33 = vand.u32 4294901760, %v259_v29  ;;  %19230 = vmatpush3.bf16.msra.mxu1 %v21158_v40  ;;  %v21167_v43 = vpack.c.bf16 %v259_v29, %v252_v28  ;;  %v784_v50 = vsub.f32 %v676_v45, %v690_v47  ;;  %v778_v51 = vand.u32 4294901760, %v777_v49 }
  0x10   :  { %v240_v26 = vsub.f32 %v238_v18, %v239_v22  ;;  %v247_v27 = vsub.f32 %v245_v19, %v246_v23  ;;  %v254_v35 = vsub.f32 %v252_v28, %v253_v32  ;;  %19232 = vmatprep.subr.bf16.mxu1 %v21164_v42  ;;  %v21180_v57 = vpack.c.bf16 %v246_v23, %v239_v22  ;;  %v16165_v19 = vld [vmem:[%s22974_s29] ss:$0 sm:$0xff] }
  0x11   :  { %v261_v36 = vsub.f32 %v259_v29, %v260_v33  ;;  %v785_v52 = vand.u32 4294901760, %v784_v50  ;;  %v779_v53 = vsub.f32 %v777_v49, %v778_v51  ;;  %v21184_v59 = vpack.c.bf16 %v260_v33, %v253_v32 }
  0x12   :  { %v241_v30 = vand.u32 4294901760, %v240_v26  ;;  %v248_v31 = vand.u32 4294901760, %v247_v27  ;;  %v255_v37 = vand.u32 4294901760, %v254_v35  ;;  %v21186_v60 = vpack.c.bf16 %v784_v50, %v777_v49 }
  0x13   :  { %v262_v38 = vand.u32 4294901760, %v261_v36  ;;  %19234 = vmatpush3.bf16.msra.mxu1 %v21164_v42  ;;  %v786_v54 = vsub.f32 %v784_v50, %v785_v52  ;;  %v780_v55 = vand.u32 4294901760, %v779_v53  ;;  %v21188_v61 = vpack.c.bf16 %v785_v52, %v778_v51  ;;  %v1214_v52 = vld [vmem:[%s22929_s8] sm:$0xff]  ;;  %v1215_v53 = vld [vmem:[%s22929_s8 + $0x8] sm:$0xff] }
  0x14   :  { %v19235_v34 = vpack.c.bf16 %v248_v31, %v241_v30  ;;  %19276 = vmatprep.subr.bf16.mxu1 %v21177_v48  ;;  %v693_v29 = vand.u32 4294901760, %v677_v24  ;;  %v696_v30 = vand.u32 4294901760, %v678_v25 }
  0x15   :  { %v19239_v39 = vpack.c.bf16 %v262_v38, %v255_v37  ;;  %v787_v56 = vand.u32 4294901760, %v786_v54 }
  0x16   :  { %19236 = vmatprep.subr.bf16.mxu0 %v19235_v34  ;;  %v21219_v35 = vsub.f32 %v678_v25, %v696_v30  ;;  %v21244_v47 = vpack.c.bf16 %v696_v30, %v693_v29 }
  0x17   :  { %19238 = vmatpush3.bf16.msra.mxu0 %v19235_v34  ;;  %v21182_v58 = vpack.c.bf16 %v787_v56, %v780_v55  ;;  %v21217_v34 = vsub.f32 %v677_v24, %v693_v29  ;;  %v1226_v55 = vand.u32 4294901760, %v1214_v52  ;;  %v1229_v56 = vand.u32 4294901760, %v1215_v53  ;;  %v16166_v24 = vld [vmem:[%s22930_s5] ss:$0 sm:$0xff] }
  0x18   :  { %19240 = vmatprep.subr.bf16.mxu0 %v19239_v39  ;;  %v799_v45 = vand.u32 4294901760, %v21219_v35 }
  0x19   :  { %v792_v44 = vand.u32 4294901760, %v21217_v34 }
  0x1a   :  { %v800_v50 = vsub.f32 %v21219_v35, %v799_v45 }
  0x1b   :  { %19242 = vmatpush3.bf16.msra.mxu0 %v19239_v39  ;;  %v793_v49 = vsub.f32 %v21217_v34, %v792_v44 }
  0x1c   :  { %19244 = vmatprep.subr.bf16.mxu0 %v21160_v41  ;;  %v801_v51 = vand.u32 4294901760, %v800_v50 }
  0x97   :  { %v74_v4 = vpop.xlane.xlu0 %73 }
  0x98   :  { %v79_v5 = vmul.f32 0.03125, %v74_v4 }
  0x9a   :  { %v21136_v6 = vsub.f32 %v65_v0, %v79_v5 }
  0x9b   :  { %v77_v7 = vpop.xlane.xlu0 %76 }
  0x9c   :  { %v80_v8 = vmul.f32 0.03125, %v77_v7  ;;  %v83_v9 = vmul.f32 %v21136_v6, %v21136_v6  ;;  %v100_v17 = vmul.f32 %v16164_v16, %v21136_v6 }
  0x9e   :  { %v21140_v10 = vsub.f32 %v66_v1, %v80_v8  ;;  %v85_v11 = vsel %vm71_vm0, %v83_v9, 0.0 }
  0x9f   :  { %86 = vadd.xlane.f32.xlu1 %v85_v11 }
  0xa0   :  { %v84_v12 = vmul.f32 %v21140_v10, %v21140_v10  ;;  %v101_v21 = vmul.f32 %v16164_v16, %v21140_v10 }
  0xa2   :  { %v88_v13 = vsel %vm71_vm0, %v84_v12, 0.0 }
  0xa3   :  { %89 = vadd.xlane.f32.xlu1 %v88_v13 }
 0x12c   :  { %v87_v62 = vpop.xlane.xlu1 %86 }
 0x12d   :  { %v92_v63 = vmul.f32 0.032258064, %v87_v62  ;;  %v1216_v62 = vld [vmem:[%s22929_s8 + $0x10] sm:$0xff] }
 0x12f   :  { %20947 = vrsqrt.f32 %v92_v63  ;;  %vm104_vm1 = vcmp.eq.f32.partialorder %v92_v63, inf  ;;  %v107_v4 = vand.u32 2147483648, %v92_v63  ;;  %vm106_vm2 = vcmp.eq.f32.partialorder %v92_v63, 0.0 }
 0x130   :  { %v90_v0 = vpop.xlane.xlu1 %89 }
 0x131   :  { %v93_v1 = vmul.f32 0.032258064, %v90_v0  ;;  %v21283_v0 = vsub.f32 %v1214_v52, %v1226_v55 }
 0x133   :  { %20949 = vrsqrt.f32 %v93_v1  ;;  %vm111_vm3 = vcmp.eq.f32.partialorder %v93_v1, inf  ;;  %v114_v12 = vand.u32 2147483648, %v93_v1  ;;  %vm113_vm4 = vcmp.eq.f32.partialorder %v93_v1, 0.0 }
 0x139   :  { %v20948_v2 = vpop.eup %20947 }
 0x13a   :  { %v103_v3 = vmul.f32 %v20948_v2, %v92_v63  ;;  %v19295_v2 = vpack.c.bf16 %v21219_v35, %v21217_v34 }
 0x13c   :  { %v105_v5 = vsel %vm104_vm1, %v92_v63, %v103_v3  ;;  %v1217_v63 = vld [vmem:[%s22929_s8 + $0x18] sm:$0xff]  ;;  %v1317_v3 = vand.u32 4294901760, %v21283_v0 }
 0x13d   :  { %v20950_v7 = vpop.eup %20949  ;;  %v108_v8 = vsel %vm106_vm2, %v107_v4, %v105_v5 }
 0x13e   :  { %v116_v9 = vadd.f32 1e-06, %v108_v8  ;;  %v110_v11 = vmul.f32 %v20950_v7, %v93_v1  ;;  %v1318_v8 = vsub.f32 %v21283_v0, %v1317_v3 }
 0x140   :  { %20951 = vrcp.f32 %v116_v9  ;;  %v112_v13 = vsel %vm111_vm3, %v93_v1, %v110_v11  ;;  %v1235_v1 = vand.u32 4294901760, %v1217_v63 }
 0x141   :  { %v115_v14 = vsel %vm113_vm4, %v114_v12, %v112_v13  ;;  %v1319_v12 = vand.u32 4294901760, %v1318_v8 }
 0x142   :  { %v117_v15 = vadd.f32 1e-06, %v115_v14  ;;  %v21298_v7 = vsub.f32 %v1217_v63, %v1235_v1 }
 0x144   :  { %20953 = vrcp.f32 %v117_v15 }
 0x14a   :  { %v20952_v18 = vpop.eup %20951 }
 0x14b   :  { %v119_v20 = vmul.f32 %v20952_v18, %v100_v17  ;;  %v19311_v18 = vpack.c.bf16 %v799_v45, %v792_v44 }
 0x14d   :  { %v128_v22 = vadd.f32 %v16165_v19, %v119_v20 }
 0x14e   :  { %v20954_v23 = vpop.eup %20953 }
 0x14f   :  { %v142_v6 = vsel %vm71_vm0, %v128_v22, 0  ;;  %v121_v26 = vmul.f32 %v20954_v23, %v101_v21 }
 0x150   :  { %v21205_v27 = vand.u32 4294901760, %v142_v6 }
 0x151   :  { %v129_v28 = vadd.f32 %v16165_v19, %v121_v26 }
 0x152   :  { %17332 = vmatprep.mubr.f32.mxu0 %v21205_v27  ;;  %v21209_v10 = vsub.f32 %v142_v6, %v21205_v27 }
 0x153   :  { %v145_v31 = vsel %vm71_vm0, %v129_v28, 0 }
 0x154   :  { %v21212_v32 = vand.u32 4294901760, %v145_v31  ;;  %v21215_v33 = vand.u32 4294901760, %v21209_v10 }
 0x156   :  { %v21222_v36 = vsub.f32 %v145_v31, %v21212_v32  ;;  %17333 = vmatmul.mubr.f32.vlgmr.msra.gmra.mrb[0].mxu0 %v21212_v32  ;;  %v219_v37 = vsub.f32 %v21209_v10, %v21215_v33 }
 0x157   :  { %19246 = vmatpush3.bf16.msra.mxu0 %v21160_v41  ;;  %17343 = vmatprep.mubr.f32.mxu0 %v21209_v10 }
 0x158   :  { %19248 = vmatprep.subr.bf16.mxu0 %v21167_v43  ;;  %v21230_v38 = vand.u32 4294901760, %v219_v37  ;;  %v21233_v39 = vand.u32 4294901760, %v21222_v36 }
 0x15a   :  { %17321 = vmatprep.mubr.f32.mxu1 %v21230_v38  ;;  %v229_v46 = vsub.f32 %v21222_v36, %v21233_v39 }
 0x15b   :  { %19250 = vmatpush3.bf16.msra.mxu0 %v21167_v43  ;;  %v794_v43 = vand.u32 4294901760, %v793_v49 }
 0x15c   :  { %19252 = vmatprep.subr.bf16.mxu0 %v21158_v40  ;;  %v21242_v41 = vand.u32 4294901760, %v229_v46 }
 0x15d   :  { %v19287_v54 = vpack.c.bf16 %v801_v51, %v794_v43 }
 0x15e   :  { %17322 = vmatmul.mubr.f32.vlgmr.msra.gmra.mrb[0].mxu1 %v21242_v41  ;;  %17344 = vmatmul.mubr.f32.vlgmr.msra.gmra.mrb[0].mxu0 %v21222_v36 }
 0x15f   :  { %19254 = vmatpush3.bf16.msra.mxu0 %v21158_v40  ;;  %19278 = vmatpush3.bf16.msra.mxu1 %v21177_v48 }
 0x160   :  { %17354 = vmatprep.mubr.f32.mxu0 %v21215_v33  ;;  %17387 = vmatprep.mubr.f32.mxu1 %v21230_v38 }
 0x161   :  { %19256 = vmatprep.subr.bf16.mxu0 %v21164_v42  ;;  %19280 = vmatprep.subr.bf16.mxu1 %v21244_v47 }
 0x163   :  { %19258 = vmatpush3.bf16.msra.mxu0 %v21164_v42  ;;  %19282 = vmatpush3.bf16.msra.mxu1 %v21244_v47 }
 0x164   :  { %19260 = vmatprep.subr.bf16.mxu0 %v21180_v57  ;;  %19284 = vmatprep.subr.bf16.mxu1 %v21182_v58 }
 0x166   :  { %17388 = vmatmul.mubr.f32.vlgmr.msra.gmra.mrb[2].mxu1 %v21242_v41  ;;  %17355 = vmatmul.mubr.f32.vlgmr.msra.gmra.mrb[0].mxu0 %v21233_v39 }
 0x167   :  { %19262 = vmatpush3.bf16.msra.mxu0 %v21180_v57  ;;  %19286 = vmatpush3.bf16.msra.mxu1 %v21182_v58  ;;  %v21285_v57 = vsub.f32 %v1215_v53, %v1229_v56  ;;  %v1232_v58 = vand.u32 4294901760, %v1216_v62 }
 0x168   :  { %17398 = vmatprep.mubr.f32.mxu1 %v21205_v27  ;;  %17365 = vmatprep.mubr.f32.mxu0 %v21205_v27 }
 0x169   :  { %19264 = vmatprep.subr.bf16.mxu0 %v21184_v59  ;;  %19288 = vmatprep.subr.bf16.mxu1 %v19287_v54  ;;  %v1324_v4 = vand.u32 4294901760, %v21285_v57  ;;  %v21296_v5 = vsub.f32 %v1216_v62, %v1232_v58  ;;  %v21318_v11 = vpack.c.bf16 %v1235_v1, %v1232_v58  ;;  %v19339_v20 = vpack.c.bf16 %v21285_v57, %v21283_v0 }
 0x16b   :  { %19266 = vmatpush3.bf16.msra.mxu0 %v21184_v59  ;;  %19290 = vmatpush3.bf16.msra.mxu1 %v19287_v54  ;;  %v21304_v59 = vpack.c.bf16 %v1229_v56, %v1226_v55  ;;  %v1325_v9 = vsub.f32 %v21285_v57, %v1324_v4 }
 0x16c   :  { %19268 = vmatprep.subr.bf16.mxu0 %v21158_v40  ;;  %19292 = vmatprep.subr.bf16.mxu1 %v21186_v60 }
 0x16d   :  { %v1326_v13 = vand.u32 4294901760, %v1325_v9 }
 0x16e   :  { %17399 = vmatmul.mubr.f32.vlgmr.msra.gmra.mrb[2].mxu1 %v21212_v32  ;;  %17366 = vmatmul.mubr.f32.vlgmr.msra.gmra.mrb[0].mxu0 %v21212_v32 }
 0x16f   :  { %19270 = vmatpush3.bf16.msra.mxu0 %v21158_v40  ;;  %19294 = vmatpush3.bf16.msra.mxu1 %v21186_v60  ;;  %v1331_v40 = vand.u32 4294901760, %v21296_v5  ;;  %v1338_v60 = vand.u32 4294901760, %v21298_v7 }
 0x170   :  { %17409 = vmatprep.mubr.f32.mxu1 %v21209_v10  ;;  %17376 = vmatprep.mubr.f32.mxu0 %v21205_v27 }
 0x171   :  { %19272 = vmatprep.subr.bf16.mxu0 %v21164_v42  ;;  %19296 = vmatprep.subr.bf16.mxu1 %v19295_v2  ;;  %v1332_v14 = vsub.f32 %v21296_v5, %v1331_v40  ;;  %v1339_v15 = vsub.f32 %v21298_v7, %v1338_v60  ;;  %v19359_v21 = vpack.c.bf16 %v1338_v60, %v1331_v40 }
 0x173   :  { %19274 = vmatpush3.bf16.msra.mxu0 %v21164_v42  ;;  %19298 = vmatpush3.bf16.msra.mxu1 %v19295_v2  ;;  %v19331_v42 = vpack.c.bf16 %v1326_v13, %v1319_v12  ;;  %v1333_v16 = vand.u32 4294901760, %v1332_v14  ;;  %v1340_v17 = vand.u32 4294901760, %v1339_v15 }
 0x174   :  { %19300 = vmatprep.subr.bf16.mxu1 %v21177_v48  ;;  %19324 = vmatprep.subr.bf16.mxu0 %v21304_v59 }
 0x175   :  { %v19335_v19 = vpack.c.bf16 %v1340_v17, %v1333_v16 }
 0x176   :  { %17410 = vmatmul.mubr.f32.vlgmr.msra.gmra.mrb[2].mxu1 %v21222_v36  ;;  %17377 = vmatmul.mubr.f32.vlgmr.msra.gmra.mrb[0].mxu0 %v21212_v32 }
 0x177   :  { %19302 = vmatpush3.bf16.msra.mxu1 %v21177_v48  ;;  %17420 = vmatprep.mubr.f32.mxu1 %v21215_v33 }
 0x178   :  { %19326 = vmatpush3.bf16.msra.mxu0 %v21304_v59  ;;  %17453 = vmatprep.mubr.f32.mxu0 %v21230_v38 }
 0x179   :  { %19304 = vmatprep.subr.bf16.mxu1 %v21244_v47  ;;  %19328 = vmatprep.subr.bf16.mxu0 %v21318_v11 }
 0x17b   :  { %19306 = vmatpush3.bf16.msra.mxu1 %v21244_v47 }
 0x17c   :  { %19330 = vmatpush3.bf16.msra.mxu0 %v21318_v11  ;;  %19308 = vmatprep.subr.bf16.mxu1 %v21188_v61 }
 0x17d   :  { %19332 = vmatprep.subr.bf16.mxu0 %v19331_v42 }
 0x17e   :  { %17421 = vmatmul.mubr.f32.vlgmr.msra.gmra.mrb[2].mxu1 %v21233_v39 }
 0x17f   :  { %17454 = vmatmul.mubr.f32.vlgmr.msra.gmra.mrb[2].mxu0 %v21242_v41  ;;  %19310 = vmatpush3.bf16.msra.mxu1 %v21188_v61  ;;  %v19343_v61 = vpack.c.bf16 %v21298_v7, %v21296_v5 }
 0x180   :  { %17431 = vmatprep.mubr.f32.mxu1 %v21205_v27  ;;  %19334 = vmatpush3.bf16.msra.mxu0 %v19331_v42 }
 0x181   :  { %17464 = vmatprep.mubr.f32.mxu0 %v21205_v27  ;;  %19312 = vmatprep.subr.bf16.mxu1 %v19311_v18 }
 0x182   :  { %19336 = vmatprep.subr.bf16.mxu0 %v19335_v19 }
 0x183   :  { %19314 = vmatpush3.bf16.msra.mxu1 %v19311_v18 }
 0x184   :  { %19338 = vmatpush3.bf16.msra.mxu0 %v19335_v19  ;;  %19316 = vmatprep.subr.bf16.mxu1 %v21177_v48 }
 0x185   :  { %19340 = vmatprep.subr.bf16.mxu0 %v19339_v20 }
 0x186   :  { %17432 = vmatmul.mubr.f32.vlgmr.msra.gmra.mrb[2].mxu1 %v21212_v32 }
 0x187   :  { %17465 = vmatmul.mubr.f32.vlgmr.msra.gmra.mrb[2].mxu0 %v21212_v32  ;;  %19318 = vmatpush3.bf16.msra.mxu1 %v21177_v48  ;;  %v19355_v48 = vpack.c.bf16 %v1324_v4, %v1317_v3 }
 0x188   :  { %17442 = vmatprep.mubr.f32.mxu1 %v21205_v27  ;;  %19342 = vmatpush3.bf16.msra.mxu0 %v19339_v20 }
 0x189   :  { %17475 = vmatprep.mubr.f32.mxu0 %v21209_v10  ;;  %19320 = vmatprep.subr.bf16.mxu1 %v21244_v47 }
 0x18a   :  { %19344 = vmatprep.subr.bf16.mxu0 %v19343_v61 }
 0x18b   :  { %19322 = vmatpush3.bf16.msra.mxu1 %v21244_v47  ;;  %v16167_v47 = vld [vmem:[%s22931_s7] ss:$0 sm:$0xff] }
 0x18c   :  { %19346 = vmatpush3.bf16.msra.mxu0 %v19343_v61 }
 0x18d   :  { %19348 = vmatprep.subr.bf16.mxu0 %v21304_v59 }
 0x18e   :  { %17443 = vmatmul.mubr.f32.vlgmr.msra.gmra.mrb[2].mxu1 %v21212_v32 }
 0x18f   :  { %17476 = vmatmul.mubr.f32.vlgmr.msra.gmra.mrb[2].mxu0 %v21222_v36 }
 0x190   :  { %19350 = vmatpush3.bf16.msra.mxu0 %v21304_v59  ;;  %17486 = vmatprep.mubr.f32.mxu0 %v21215_v33 }
 0x191   :  { %19352 = vmatprep.subr.bf16.mxu0 %v21318_v11 }
 0x194   :  { %19354 = vmatpush3.bf16.msra.mxu0 %v21318_v11 }
 0x195   :  { %19356 = vmatprep.subr.bf16.mxu0 %v19355_v48 }
 0x197   :  { %17487 = vmatmul.mubr.f32.vlgmr.msra.gmra.mrb[2].mxu0 %v21233_v39 }
 0x198   :  { %19358 = vmatpush3.bf16.msra.mxu0 %v19355_v48  ;;  %17497 = vmatprep.mubr.f32.mxu0 %v21205_v27 }
 0x199   :  { %19360 = vmatprep.subr.bf16.mxu0 %v19359_v21 }
 0x19c   :  { %19362 = vmatpush3.bf16.msra.mxu0 %v19359_v21 }
 0x19d   :  { %19364 = vmatprep.subr.bf16.mxu0 %v21304_v59 }
 0x19f   :  { %17498 = vmatmul.mubr.f32.vlgmr.msra.gmra.mrb[2].mxu0 %v21212_v32 }
 0x1a0   :  { %19366 = vmatpush3.bf16.msra.mxu0 %v21304_v59  ;;  %17508 = vmatprep.mubr.f32.mxu0 %v21205_v27 }
 0x1a1   :  { %19368 = vmatprep.subr.bf16.mxu0 %v21318_v11 }
 0x1a4   :  { %19370 = vmatpush3.bf16.msra.mxu0 %v21318_v11  ;;  %v16168_v11 = vld [vmem:[%s22932_s9] ss:$0 sm:$0xff] }
 0x1a7   :  { %17509 = vmatmul.mubr.f32.vlgmr.msra.gmra.mrb[2].mxu0 %v21212_v32 }
 0x231   :  { %v17323_v22 = vpop.f32.mrb[0].mxu1 }
 0x232   :  { %v222_v23 = vpop.f32.mrb[1].mxu1  ;;  %v233_v25 = vadd.f32 %v17323_v22, %v16166_v24 }
 0x233   :  { %v223_v6 = vadd.f32 %v16166_v24, %v222_v23 }
 0x249   :  { %v17378_v26 = vpop.f32.mrb[0].mxu0 }
 0x24a   :  { %v20620_v28 = vadd.f32 %v17378_v26, %v233_v25  ;;  %v665_v29 = vpop.f32.mrb[1].mxu0  ;;  %v16169_v25 = vld [vmem:[%s22971_s26 + $0x20] sm:$0xff] }
 0x24b   :  { %v20622_v30 = vadd.f32 %v665_v29, %v223_v6  ;;  %v16170_v6 = vld [vmem:[%s22971_s26 + $0x28] sm:$0xff]  ;;  %v2818_v29 = vand.u32 4294901760, %v16169_v25 }
 0x24c   :  { %v1758_v46 = vsel %vm1753_vm5, %v20620_v28, 0 }
 0x24d   :  { %v1755_v31 = vsel %vm1753_vm5, %v20622_v30, 0  ;;  %v21389_v49 = vand.u32 4294901760, %v1758_v46  ;;  %v2821_v30 = vand.u32 4294901760, %v16170_v6 }
 0x24e   :  { %v21378_v34 = vand.u32 4294901760, %v1755_v31 }
 0x24f   :  { %v21392_v53 = vsub.f32 %v1758_v46, %v21389_v49  ;;  %v2915_v46 = vsub.f32 %v16170_v6, %v2821_v30 }
 0x250   :  { %v21381_v35 = vsub.f32 %v1755_v31, %v21378_v34  ;;  %v16171_v31 = vld [vmem:[%s22971_s26 + $0x30] sm:$0xff] }
 0x251   :  { %v1845_v0 = vand.u32 4294901760, %v21392_v53 }
 0x252   :  { %v1835_v37 = vand.u32 4294901760, %v21381_v35 }
 0x253   :  { %v1846_v5 = vsub.f32 %v21392_v53, %v1845_v0 }
 0x254   :  { %v1836_v44 = vsub.f32 %v21381_v35, %v1835_v37 }
 0x255   :  { %v1847_v40 = vand.u32 4294901760, %v1846_v5 }
 0x256   :  { %v1837_v45 = vand.u32 4294901760, %v1836_v44 }
 0x258   :  { %17515 = vmatprep.mubr.f32.mxu1 %v1837_v45  ;;  %v2908_v45 = vsub.f32 %v16169_v25, %v2818_v29 }
 0x261   :  { %v17444_v50 = vpop.f32.mrb[2].mxu1 }
 0x262   :  { %v20623_v43 = vadd.f32 %v17444_v50, %v16167_v47  ;;  %v1204_v51 = vpop.f32.mrb[3].mxu1  ;;  %v2909_v50 = vand.u32 4294901760, %v2908_v45 }
 0x263   :  { %v20624_v52 = vadd.f32 %v16167_v47, %v1204_v51  ;;  %v21436_v47 = vpack.c.bf16 %v2821_v30, %v2818_v29 }
 0x264   :  { %v1764_v54 = vsel %vm1753_vm5, %v20623_v43, 0  ;;  %v2916_v43 = vand.u32 4294901760, %v2915_v46 }
 0x265   :  { %v1770_v55 = vand.u32 4294901760, %v1764_v54  ;;  %v1761_v56 = vsel %vm1753_vm5, %v20624_v52, 0 }
 0x266   :  { %v1767_v62 = vand.u32 4294901760, %v1761_v56  ;;  %v19451_v5 = vpack.c.bf16 %v2916_v43, %v2909_v50 }
 0x267   :  { %v1862_v63 = vsub.f32 %v1764_v54, %v1770_v55  ;;  %v2917_v54 = vsub.f32 %v2915_v46, %v2916_v43 }
 0x268   :  { %v21397_v57 = vpack.c.bf16 %v1770_v55, %v1767_v62  ;;  %v1855_v58 = vsub.f32 %v1761_v56, %v1767_v62 }
 0x269   :  { %v1863_v1 = vand.u32 4294901760, %v1862_v63 }
 0x26a   :  { %v1856_v2 = vand.u32 4294901760, %v1855_v58  ;;  %19372 = vmatprep.subr.bf16.mxu1 %v21397_v57  ;;  %v19379_v3 = vpack.c.bf16 %v1862_v63, %v1855_v58 }
 0x26b   :  { %19374 = vmatpush3.bf16.xpose.msra.mxu1 %v21397_v57  ;;  %v1864_v4 = vsub.f32 %v1862_v63, %v1863_v1 }
 0x26c   :  { %v1857_v7 = vsub.f32 %v1855_v58, %v1856_v2  ;;  %v19387_v59 = vpack.c.bf16 %v1863_v1, %v1856_v2 }
 0x26d   :  { %v1865_v8 = vand.u32 4294901760, %v1864_v4 }
 0x26e   :  { %v1858_v9 = vand.u32 4294901760, %v1857_v7  ;;  %v16181_v7 = vld [vmem:[%s22929_s8 + $0x20] sm:$0xff] }
 0x270   :  { %v19375_v60 = vpack.c.bf16 %v1865_v8, %v1858_v9  ;;  %v3900_v9 = vand.u32 4294901760, %v16181_v7 }
 0x272   :  { %17516 = vmatmul.mubr.f32.vlgmr.msra.gmra.mrb[4].mxu1 %v1847_v40  ;;  %19376 = vmatprep.subr.bf16.mxu1 %v19375_v60 }
 0x273   :  { %19378 = vmatpush3.bf16.xpose.msra.mxu1 %v19375_v60  ;;  %17522 = vmatprep.mubr.f32.mxu1 %v21378_v34  ;;  %v16183_v60 = vld [vmem:[%s22929_s8 + $0x30] sm:$0xff] }
 0x274   :  { %19380 = vmatprep.subr.bf16.mxu1 %v19379_v3 }
 0x27a   :  { %v17510_v12 = vpop.f32.mrb[2].mxu0  ;;  %17523 = vmatmul.mubr.f32.vlgmr.msra.gmra.mrb[4].mxu1 %v21389_v49 }
 0x27b   :  { %v20625_v13 = vadd.f32 %v17510_v12, %v16168_v11  ;;  %v1743_v14 = vpop.f32.mrb[3].mxu0  ;;  %19382 = vmatpush3.bf16.xpose.msra.mxu1 %v19379_v3  ;;  %17529 = vmatprep.mubr.f32.mxu1 %v21381_v35  ;;  %v16172_v35 = vld [vmem:[%s22971_s26 + $0x38] sm:$0xff]  ;;  %v3906_v12 = vand.u32 4294901760, %v16183_v60 }
 0x27c   :  { %v20626_v15 = vadd.f32 %v16168_v11, %v1743_v14  ;;  %19384 = vmatprep.subr.bf16.mxu1 %v21397_v57  ;;  %v2827_v44 = vand.u32 4294901760, %v16172_v35  ;;  %v16184_v11 = vld [vmem:[%s22929_s8 + $0x38] sm:$0xff]  ;;  %v3990_v14 = vsub.f32 %v16181_v7, %v3900_v9 }
 0x27d   :  { %v2304_v42 = vand.u32 4294901760, %v20625_v13 }
 0x27e   :  { %v2301_v16 = vand.u32 4294901760, %v20626_v15  ;;  %v2929_v52 = vsub.f32 %v16172_v35, %v2827_v44 }
 0x27f   :  { %v2396_v17 = vsub.f32 %v20625_v13, %v2304_v42  ;;  %v3909_v13 = vand.u32 4294901760, %v16184_v11 }
 0x280   :  { %v21409_v18 = vpack.c.bf16 %v2304_v42, %v2301_v16  ;;  %v2389_v19 = vsub.f32 %v20626_v15, %v2301_v16  ;;  %v2930_v56 = vand.u32 4294901760, %v2929_v52  ;;  %v3991_v42 = vand.u32 4294901760, %v3990_v14 }
 0x281   :  { %v2397_v20 = vand.u32 4294901760, %v2396_v17  ;;  %v19519_v25 = vpack.c.bf16 %v3909_v13, %v3906_v12 }
 0x282   :  { %v2390_v61 = vand.u32 4294901760, %v2389_v19  ;;  %19396 = vmatprep.subr.bf16.mxu0 %v21409_v18  ;;  %17530 = vmatmul.mubr.f32.vlgmr.msra.gmra.mrb[4].mxu1 %v21392_v53  ;;  %v21413_v48 = vpack.c.bf16 %v2396_v17, %v2389_v19  ;;  %v2910_v53 = vsub.f32 %v2908_v45, %v2909_v50  ;;  %v2931_v1 = vsub.f32 %v2929_v52, %v2930_v56 }
 0x283   :  { %19398 = vmatpush3.bf16.msra.mxu0 %v21409_v18  ;;  %19386 = vmatpush3.bf16.xpose.msra.mxu1 %v21397_v57  ;;  %v2398_v21 = vsub.f32 %v2396_v17, %v2397_v20  ;;  %v4004_v17 = vsub.f32 %v16183_v60, %v3906_v12 }
 0x284   :  { %17536 = vmatprep.mubr.f32.mxu1 %v1835_v37  ;;  %19388 = vmatprep.subr.bf16.mxu1 %v19387_v59  ;;  %v2391_v22 = vsub.f32 %v2389_v19, %v2390_v61  ;;  %v21417_v23 = vpack.c.bf16 %v2397_v20, %v2390_v61  ;;  %v2824_v37 = vand.u32 4294901760, %v16171_v31  ;;  %v2911_v63 = vand.u32 4294901760, %v2910_v53 }
 0x285   :  { %v2399_v24 = vand.u32 4294901760, %v2398_v21  ;;  %v2932_v2 = vand.u32 4294901760, %v2931_v1  ;;  %v4011_v19 = vsub.f32 %v16184_v11, %v3909_v13  ;;  %v3992_v61 = vsub.f32 %v3990_v14, %v3991_v42 }
 0x286   :  { %v2392_v26 = vand.u32 4294901760, %v2391_v22  ;;  %v2922_v51 = vsub.f32 %v16171_v31, %v2824_v37  ;;  %v21442_v62 = vpack.c.bf16 %v2827_v44, %v2824_v37  ;;  %v4005_v22 = vand.u32 4294901760, %v4004_v17 }
 0x287   :  { %v3993_v6 = vand.u32 4294901760, %v3992_v61 }
 0x288   :  { %v21425_v28 = vpack.c.bf16 %v2399_v24, %v2392_v26  ;;  %v2923_v55 = vand.u32 4294901760, %v2922_v51  ;;  %v19439_v4 = vpack.c.bf16 %v2929_v52, %v2922_v51  ;;  %v4012_v24 = vand.u32 4294901760, %v4011_v19 }
 0x289   :  { %v4006_v29 = vsub.f32 %v4004_v17, %v4005_v22 }
 0x28a   :  { %19400 = vmatprep.subr.bf16.mxu0 %v21425_v28  ;;  %17537 = vmatmul.mubr.f32.vlgmr.msra.gmra.mrb[4].mxu1 %v1845_v0  ;;  %v2918_v0 = vand.u32 4294901760, %v2917_v54  ;;  %v2924_v58 = vsub.f32 %v2922_v51, %v2923_v55  ;;  %v19455_v8 = vpack.c.bf16 %v2930_v56, %v2923_v55  ;;  %v4013_v30 = vsub.f32 %v4011_v19, %v4012_v24  ;;  %v21495_v51 = vld [vmem:[%s22933_s1 + $0x8] sm:$0xff]  ;;  %v21500_v54 = vld [vmem:[%s22933_s1] sm:$0xff] }
 0x28b   :  { %19390 = vmatpush3.bf16.xpose.msra.mxu1 %v19387_v59  ;;  %17543 = vmatprep.mubr.f32.mxu1 %v21378_v34  ;;  %v16182_v59 = vld [vmem:[%s22929_s8 + $0x28] sm:$0xff]  ;;  %v4007_v35 = vand.u32 4294901760, %v4006_v29  ;;  %v19551_v50 = vpack.c.bf16 %v4012_v24, %v4005_v22 }
 0x28c   :  { %19392 = vmatprep.subr.bf16.mxu1 %v21397_v57  ;;  %v3903_v40 = vand.u32 4294901760, %v16182_v59  ;;  %v4014_v37 = vand.u32 4294901760, %v4013_v30 }
 0x28e   :  { %v3997_v15 = vsub.f32 %v16182_v59, %v3903_v40  ;;  %v19515_v20 = vpack.c.bf16 %v3903_v40, %v3900_v9  ;;  %v19527_v44 = vpack.c.bf16 %v4014_v37, %v4007_v35 }
 0x290   :  { %v3998_v16 = vand.u32 4294901760, %v3997_v15 }
 0x292   :  { %17544 = vmatmul.mubr.f32.vlgmr.msra.gmra.mrb[4].mxu1 %v21389_v49  ;;  %v3999_v21 = vsub.f32 %v3997_v15, %v3998_v16 }
 0x293   :  { %19394 = vmatpush3.bf16.xpose.msra.mxu1 %v21397_v57  ;;  %17550 = vmatprep.mubr.f32.mxu1 %v21378_v34  ;;  %v19427_v34 = vpack.c.bf16 %v2918_v0, %v2911_v63  ;;  %v2925_v57 = vand.u32 4294901760, %v2924_v58  ;;  %v21509_v58 = vld [vmem:[%s22930_s5 + $0x1] ss:$0 sm:$0xff] }
 0x294   :  { %19420 = vmatprep.subr.bf16.mxu1 %v21436_v47  ;;  %v4000_v26 = vand.u32 4294901760, %v3999_v21 }
 0x295   :  { %v19431_v3 = vpack.c.bf16 %v2932_v2, %v2925_v57  ;;  %v16186_v2 = vld [vmem:[%s22932_s9 + $0x1] ss:$0 sm:$0xff] }
 0x296   :  { %v19523_v31 = vpack.c.bf16 %v4000_v26, %v3993_v6 }
 0x29a   :  { %17551 = vmatmul.mubr.f32.vlgmr.msra.gmra.mrb[4].mxu1 %v21389_v49  ;;  %v19435_v49 = vpack.c.bf16 %v2915_v46, %v2908_v45  ;;  %v19531_v45 = vpack.c.bf16 %v3997_v15, %v3990_v14  ;;  %v19535_v46 = vpack.c.bf16 %v4011_v19, %v4004_v17 }
 0x29b   :  { %19422 = vmatpush3.bf16.msra.mxu1 %v21436_v47  ;;  %17603 = vmatprep.mubr.f32.mxu1 %v21230_v38 }
 0x29c   :  { %19424 = vmatprep.subr.bf16.mxu1 %v21442_v62 }
 0x29f   :  { %19426 = vmatpush3.bf16.msra.mxu1 %v21442_v62 }
 0x2a0   :  { %19428 = vmatprep.subr.bf16.mxu1 %v19427_v34 }
 0x2a2   :  { %17604 = vmatmul.mubr.f32.vlgmr.msra.gmra.mrb[6].mxu1 %v21242_v41 }
 0x2a3   :  { %19430 = vmatpush3.bf16.msra.mxu1 %v19427_v34  ;;  %17614 = vmatprep.mubr.f32.mxu1 %v21205_v27 }
 0x2a4   :  { %19432 = vmatprep.subr.bf16.mxu1 %v19431_v3 }
 0x2a7   :  { %19434 = vmatpush3.bf16.msra.mxu1 %v19431_v3 }
 0x2a8   :  { %19436 = vmatprep.subr.bf16.mxu1 %v19435_v49 }
 0x2aa   :  { %17615 = vmatmul.mubr.f32.vlgmr.msra.gmra.mrb[6].mxu1 %v21212_v32 }
 0x2ab   :  { %19438 = vmatpush3.bf16.msra.mxu1 %v19435_v49  ;;  %17625 = vmatprep.mubr.f32.mxu1 %v21209_v10 }
 0x2ac   :  { %19440 = vmatprep.subr.bf16.mxu1 %v19439_v4 }
 0x2af   :  { %19442 = vmatpush3.bf16.msra.mxu1 %v19439_v4 }
 0x2b0   :  { %19444 = vmatprep.subr.bf16.mxu1 %v21436_v47 }
 0x2b2   :  { %17626 = vmatmul.mubr.f32.vlgmr.msra.gmra.mrb[6].mxu1 %v21222_v36 }
 0x2b3   :  { %19446 = vmatpush3.bf16.msra.mxu1 %v21436_v47  ;;  %17636 = vmatprep.mubr.f32.mxu1 %v21215_v33 }
 0x2b4   :  { %19448 = vmatprep.subr.bf16.mxu1 %v21442_v62 }
 0x2b7   :  { %19450 = vmatpush3.bf16.msra.mxu1 %v21442_v62 }
 0x2b8   :  { %19452 = vmatprep.subr.bf16.mxu1 %v19451_v5 }
 0x2ba   :  { %17637 = vmatmul.mubr.f32.vlgmr.msra.gmra.mrb[6].mxu1 %v21233_v39 }
 0x2bb   :  { %19454 = vmatpush3.bf16.msra.mxu1 %v19451_v5  ;;  %17647 = vmatprep.mubr.f32.mxu1 %v21205_v27 }
 0x2bc   :  { %19456 = vmatprep.subr.bf16.mxu1 %v19455_v8 }
 0x2bf   :  { %19458 = vmatpush3.bf16.msra.mxu1 %v19455_v8 }
 0x2c0   :  { %19460 = vmatprep.subr.bf16.mxu1 %v21436_v47 }
 0x2c2   :  { %17648 = vmatmul.mubr.f32.vlgmr.msra.gmra.mrb[6].mxu1 %v21212_v32 }
 0x2c3   :  { %19462 = vmatpush3.bf16.msra.mxu1 %v21436_v47  ;;  %17658 = vmatprep.mubr.f32.mxu1 %v21205_v27  ;;  %v19547_v47 = vpack.c.bf16 %v3998_v16, %v3991_v42 }
 0x2c4   :  { %19464 = vmatprep.subr.bf16.mxu1 %v21442_v62 }
 0x2c7   :  { %19466 = vmatpush3.bf16.msra.mxu1 %v21442_v62 }
 0x2c8   :  { %19516 = vmatprep.subr.bf16.mxu1 %v19515_v20 }
 0x2ca   :  { %17659 = vmatmul.mubr.f32.vlgmr.msra.gmra.mrb[6].mxu1 %v21212_v32 }
 0x2cb   :  { %19518 = vmatpush3.bf16.msra.mxu1 %v19515_v20  ;;  %17735 = vmatprep.mubr.f32.mxu1 %v21230_v38 }
 0x2cc   :  { %19520 = vmatprep.subr.bf16.mxu1 %v19519_v25 }
 0x2cf   :  { %19522 = vmatpush3.bf16.msra.mxu1 %v19519_v25 }
 0x2d0   :  { %19524 = vmatprep.subr.bf16.mxu1 %v19523_v31 }
 0x2d2   :  { %17736 = vmatmul.mubr.f32.vlgmr.msra.gmra.mrb[8].mxu1 %v21242_v41 }
 0x2d3   :  { %19526 = vmatpush3.bf16.msra.mxu1 %v19523_v31  ;;  %17746 = vmatprep.mubr.f32.mxu1 %v21205_v27 }
 0x2d4   :  { %19528 = vmatprep.subr.bf16.mxu1 %v19527_v44 }
 0x2d7   :  { %19530 = vmatpush3.bf16.msra.mxu1 %v19527_v44 }
 0x2d8   :  { %19532 = vmatprep.subr.bf16.mxu1 %v19531_v45 }
 0x2da   :  { %17747 = vmatmul.mubr.f32.vlgmr.msra.gmra.mrb[8].mxu1 %v21212_v32 }
 0x2db   :  { %19534 = vmatpush3.bf16.msra.mxu1 %v19531_v45  ;;  %17757 = vmatprep.mubr.f32.mxu1 %v21209_v10 }
 0x2dc   :  { %19536 = vmatprep.subr.bf16.mxu1 %v19535_v46 }
 0x2df   :  { %19538 = vmatpush3.bf16.msra.mxu1 %v19535_v46 }
 0x2e0   :  { %19540 = vmatprep.subr.bf16.mxu1 %v19515_v20 }
 0x2e2   :  { %17758 = vmatmul.mubr.f32.vlgmr.msra.gmra.mrb[8].mxu1 %v21222_v36 }
 0x2e3   :  { %19542 = vmatpush3.bf16.msra.mxu1 %v19515_v20  ;;  %17768 = vmatprep.mubr.f32.mxu1 %v21215_v33 }
 0x2e4   :  { %19544 = vmatprep.subr.bf16.mxu1 %v19519_v25 }
 0x2e7   :  { %19546 = vmatpush3.bf16.msra.mxu1 %v19519_v25 }
 0x2e8   :  { %19548 = vmatprep.subr.bf16.mxu1 %v19547_v47 }
 0x2ea   :  { %17769 = vmatmul.mubr.f32.vlgmr.msra.gmra.mrb[8].mxu1 %v21233_v39 }
 0x2eb   :  { %19550 = vmatpush3.bf16.msra.mxu1 %v19547_v47  ;;  %17779 = vmatprep.mubr.f32.mxu1 %v21205_v27 }
 0x2ec   :  { %19552 = vmatprep.subr.bf16.mxu1 %v19551_v50 }
 0x2ef   :  { %19554 = vmatpush3.bf16.msra.mxu1 %v19551_v50 }
 0x2f0   :  { %19556 = vmatprep.subr.bf16.mxu1 %v19515_v20 }
 0x2f2   :  { %17780 = vmatmul.mubr.f32.vlgmr.msra.gmra.mrb[8].mxu1 %v21212_v32 }
 0x2f3   :  { %19558 = vmatpush3.bf16.msra.mxu1 %v19515_v20  ;;  %17790 = vmatprep.mubr.f32.mxu1 %v21205_v27 }
 0x2f4   :  { %19560 = vmatprep.subr.bf16.mxu1 %v19519_v25 }
 0x2f7   :  { %19562 = vmatpush3.bf16.msra.mxu1 %v19519_v25 }
 0x2fa   :  { %17791 = vmatmul.mubr.f32.vlgmr.msra.gmra.mrb[8].mxu1 %v21212_v32 }
 0x36d   :  { %v17552_v43 = vpop.f32.mrb[4].mxu1 }
 0x36e   :  { %v2269_v52 = vmul.f32 0.25, %v17552_v43  ;;  %v2258_v53 = vpop.f32.mrb[5].mxu1 }
 0x36f   :  { %v2268_v55 = vmul.f32 0.25, %v2258_v53 }
 0x370   :  { %v2271_v56 = vadd.f32 %v2269_v52, %v21495_v51 }
 0x371   :  { %v2270_v62 = vadd.f32 %v2268_v55, %v21500_v54 }
 0x372   :  { %v2275_v63 = vsel %vm1753_vm5, %v2271_v56, -inf }
 0x373   :  { %2276 = vmax.xlane.f32.xlu1 %v2275_v63  ;;  %v2272_v0 = vsel %vm1753_vm5, %v2270_v62, -inf }
 0x374   :  { %2273 = vmax.xlane.f32.xlu0 %v2272_v0 }
 0x39d   :  { %v17660_v1 = vpop.f32.mrb[6].mxu1 }
 0x39e   :  { %v21512_v34 = vadd.f32 %v17660_v1, %v21509_v58  ;;  %v21514_v57 = vpop.f32.mrb[7].mxu1 }
 0x3cd   :  { %v17792_v3 = vpop.f32.mrb[8].mxu1 }
 0x3ce   :  { %v20631_v49 = vadd.f32 %v17792_v3, %v16186_v2  ;;  %v4417_v4 = vpop.f32.mrb[9].mxu1 }
 0x3cf   :  { %v20632_v5 = vadd.f32 %v16186_v2, %v4417_v4  ;;  %v16175_v2 = vld [vmem:[%s22972_s22 + $0x20] sm:$0xff]  ;;  %v16178_v4 = vld [vmem:[%s22972_s22 + $0x38] sm:$0xff] }
 0x3d0   :  { %v4977_v7 = vand.u32 4294901760, %v20631_v49  ;;  %v3359_v3 = vand.u32 4294901760, %v16175_v2 }
 0x3d1   :  { %v4974_v59 = vand.u32 4294901760, %v20632_v5 }
 0x3d2   :  { %v5069_v8 = vsub.f32 %v20631_v49, %v4977_v7 }
 0x3d3   :  { %v21519_v9 = vpack.c.bf16 %v4977_v7, %v4974_v59  ;;  %v5062_v40 = vsub.f32 %v20632_v5, %v4974_v59  ;;  %v3368_v7 = vand.u32 4294901760, %v16178_v4  ;;  %v3449_v59 = vsub.f32 %v16175_v2, %v3359_v3 }
 0x3d4   :  { %v5070_v60 = vand.u32 4294901760, %v5069_v8 }
 0x3d5   :  { %v5063_v11 = vand.u32 4294901760, %v5062_v40  ;;  %19588 = vmatprep.subr.bf16.mxu1 %v21519_v9  ;;  %v21522_v12 = vpack.c.bf16 %v5069_v8, %v5062_v40 }
 0x3d6   :  { %19590 = vmatpush3.bf16.msra.mxu1 %v21519_v9  ;;  %v5071_v13 = vsub.f32 %v5069_v8, %v5070_v60 }
 0x3d7   :  { %v5064_v14 = vsub.f32 %v5062_v40, %v5063_v11  ;;  %v21525_v15 = vpack.c.bf16 %v5070_v60, %v5063_v11  ;;  %v3450_v60 = vand.u32 4294901760, %v3449_v59 }
 0x3d8   :  { %v5072_v42 = vand.u32 4294901760, %v5071_v13 }
 0x3d9   :  { %v5065_v16 = vand.u32 4294901760, %v5064_v14  ;;  %v3470_v14 = vsub.f32 %v16178_v4, %v3368_v7 }
 0x3db   :  { %v21527_v17 = vpack.c.bf16 %v5072_v42, %v5065_v16  ;;  %v3451_v42 = vsub.f32 %v3449_v59, %v3450_v60 }
 0x3dd   :  { %19592 = vmatprep.subr.bf16.mxu1 %v21527_v17 }
 0x400   :  { %v2277_v19 = vpop.xlane.xlu1 %2276 }
 0x401   :  { %v2279_v20 = vsub.f32 %v2271_v56, %v2277_v19  ;;  %v2274_v61 = vpop.xlane.xlu0 %2273  ;;  %v3471_v19 = vand.u32 4294901760, %v3470_v14 }
 0x402   :  { %v2278_v21 = vsub.f32 %v2270_v62, %v2274_v61  ;;  %v3452_v61 = vand.u32 4294901760, %v3451_v42 }
 0x403   :  { %v2282_v22 = vmul.f32 1.442695, %v2279_v20 }
 0x404   :  { %v2280_v24 = vmul.f32 1.442695, %v2278_v21 }
 0x405   :  { %20955 = vpow2.f32 %v2282_v22 }
 0x406   :  { %20957 = vpow2.f32 %v2280_v24  ;;  %v3472_v24 = vsub.f32 %v3470_v14, %v3471_v19 }
 0x40f   :  { %v20956_v25 = vpop.eup %20955 }
 0x410   :  { %v20958_v6 = vpop.eup %20957  ;;  %v2287_v26 = vsel %vm1753_vm5, %v20956_v25, 0.0 }
 0x411   :  { %2288 = vadd.xlane.f32.xlu1 %v2287_v26  ;;  %v2284_v29 = vsel %vm1753_vm5, %v20958_v6, 0.0  ;;  %v3473_v26 = vand.u32 4294901760, %v3472_v24 }
 0x412   :  { %2285 = vadd.xlane.f32.xlu0 %v2284_v29 }
 0x49e   :  { %v2289_v30 = vpop.xlane.xlu1 %2288 }
 0x49f   :  { %20959 = vrcp.f32 %v2289_v30  ;;  %v2286_v31 = vpop.xlane.xlu0 %2285 }
 0x4a0   :  { %20961 = vrcp.f32 %v2286_v31 }
 0x4a9   :  { %v20960_v35 = vpop.eup %20959 }
 0x4aa   :  { %v20962_v37 = vpop.eup %20961  ;;  %v2293_v44 = vmul.f32 %v20960_v35, %v20956_v25 }
 0x4ab   :  { %v2292_v45 = vmul.f32 %v20962_v37, %v20958_v6 }
 0x4ac   :  { %v2298_v46 = vsel %vm1753_vm5, %v2293_v44, 0  ;;  %v4431_v44 = vsel %vm1753_vm5, %v21512_v34, 0 }
 0x4ad   :  { %v2295_v47 = vsel %vm1753_vm5, %v2292_v45, 0  ;;  %v2377_v50 = vand.u32 4294901760, %v2298_v46  ;;  %v16180_v45 = vld [vmem:[%s22931_s7 + $0x1] ss:$0 sm:$0xff] }
 0x4ae   :  { %v2367_v43 = vand.u32 4294901760, %v2295_v47 }
 0x4af   :  { %v2378_v52 = vsub.f32 %v2298_v46, %v2377_v50  ;;  %v4516_v46 = vand.u32 4294901760, %v4431_v44 }
 0x4b0   :  { %v2368_v53 = vsub.f32 %v2295_v47, %v2367_v43 }
 0x4b1   :  { %v2379_v55 = vand.u32 4294901760, %v2378_v52 }
 0x4b2   :  { %v2369_v56 = vand.u32 4294901760, %v2368_v53 }
 0x4b3   :  { %v2380_v62 = vsub.f32 %v2378_v52, %v2379_v55 }
 0x4b4   :  { %v2370_v63 = vsub.f32 %v2368_v53, %v2369_v56 }
 0x4b5   :  { %v2381_v1 = vand.u32 4294901760, %v2380_v62 }
 0x4b6   :  { %v2371_v0 = vand.u32 4294901760, %v2370_v63 }
 0x4b8   :  { %17557 = vmatprep.mubr.f32.mxu0 %v2371_v0 }
 0x4b9   :  { %17558 = vmatmul.mubr.f32.vlgmr.msra.gmra.mrb[4].mxu0 %v2381_v1 }
 0x4ba   :  { %19402 = vmatpush3.bf16.msra.mxu0 %v21425_v28  ;;  %17564 = vmatprep.mubr.f32.mxu0 %v2367_v43  ;;  %v16176_v28 = vld [vmem:[%s22972_s22 + $0x28] sm:$0xff] }
 0x4bb   :  { %19404 = vmatprep.subr.bf16.mxu0 %v21413_v48  ;;  %v3362_v49 = vand.u32 4294901760, %v16176_v28 }
 0x4bd   :  { %v3456_v8 = vsub.f32 %v16176_v28, %v3362_v49  ;;  %v19467_v40 = vpack.c.bf16 %v3362_v49, %v3359_v3 }
 0x4bf   :  { %v3457_v11 = vand.u32 4294901760, %v3456_v8  ;;  %v19483_v29 = vpack.c.bf16 %v3456_v8, %v3449_v59 }
 0x4c1   :  { %17565 = vmatmul.mubr.f32.vlgmr.msra.gmra.mrb[4].mxu0 %v2377_v50  ;;  %v3458_v16 = vsub.f32 %v3456_v8, %v3457_v11 }
 0x4c2   :  { %19406 = vmatpush3.bf16.msra.mxu0 %v21413_v48  ;;  %17571 = vmatprep.mubr.f32.mxu0 %v2368_v53  ;;  %v16177_v48 = vld [vmem:[%s22972_s22 + $0x30] sm:$0xff] }
 0x4c3   :  { %19408 = vmatprep.subr.bf16.mxu0 %v21409_v18  ;;  %v3365_v5 = vand.u32 4294901760, %v16177_v48  ;;  %v3459_v21 = vand.u32 4294901760, %v3458_v16 }
 0x4c5   :  { %v3463_v13 = vsub.f32 %v16177_v48, %v3365_v5  ;;  %v19471_v20 = vpack.c.bf16 %v3368_v7, %v3365_v5  ;;  %v19475_v25 = vpack.c.bf16 %v3459_v21, %v3452_v61 }
 0x4c7   :  { %v19487_v30 = vpack.c.bf16 %v3470_v14, %v3463_v13 }
 0x4c9   :  { %17572 = vmatmul.mubr.f32.vlgmr.msra.gmra.mrb[4].mxu0 %v2378_v52  ;;  %v4517_v52 = vsub.f32 %v4431_v44, %v4516_v46 }
 0x4ca   :  { %19410 = vmatpush3.bf16.msra.mxu0 %v21409_v18  ;;  %17578 = vmatprep.mubr.f32.mxu0 %v2369_v56 }
 0x4cb   :  { %19412 = vmatprep.subr.bf16.mxu0 %v21417_v23  ;;  %v4518_v63 = vand.u32 4294901760, %v4517_v52 }
 0x4cd   :  { %v4519_v49 = vsub.f32 %v4517_v52, %v4518_v63 }
 0x4cf   :  { %v4520_v59 = vand.u32 4294901760, %v4519_v49 }
 0x4d1   :  { %17579 = vmatmul.mubr.f32.vlgmr.msra.gmra.mrb[4].mxu0 %v2379_v55 }
 0x4d2   :  { %19414 = vmatpush3.bf16.msra.mxu0 %v21417_v23  ;;  %17585 = vmatprep.mubr.f32.mxu0 %v2367_v43  ;;  %v3464_v23 = vand.u32 4294901760, %v3463_v13 }
 0x4d3   :  { %19416 = vmatprep.subr.bf16.mxu0 %v21409_v18 }
 0x4d4   :  { %v3465_v22 = vsub.f32 %v3463_v13, %v3464_v23  ;;  %v19503_v35 = vpack.c.bf16 %v3471_v19, %v3464_v23 }
 0x4d6   :  { %v3466_v6 = vand.u32 4294901760, %v3465_v22 }
 0x4d9   :  { %17586 = vmatmul.mubr.f32.vlgmr.msra.gmra.mrb[4].mxu0 %v2377_v50 }
 0x4da   :  { %19418 = vmatpush3.bf16.msra.mxu0 %v21409_v18  ;;  %17592 = vmatprep.mubr.f32.mxu0 %v2367_v43  ;;  %v19479_v18 = vpack.c.bf16 %v3473_v26, %v3466_v6 }
 0x4db   :  { %19468 = vmatprep.subr.bf16.mxu0 %v19467_v40 }
 0x4e1   :  { %17593 = vmatmul.mubr.f32.vlgmr.msra.gmra.mrb[4].mxu0 %v2377_v50 }
 0x4e2   :  { %19470 = vmatpush3.bf16.msra.mxu0 %v19467_v40  ;;  %17669 = vmatprep.mubr.f32.mxu0 %v21230_v38  ;;  %v20628_v38 = vadd.f32 %v21509_v58, %v21514_v57 }
 0x4e3   :  { %19472 = vmatprep.subr.bf16.mxu0 %v19471_v20 }
 0x4e4   :  { %v4428_v31 = vsel %vm1753_vm5, %v20628_v38, 0 }
 0x4e5   :  { %v21565_v37 = vand.u32 4294901760, %v4428_v31 }
 0x4e6   :  { %19474 = vmatpush3.bf16.msra.mxu0 %v19471_v20 }
 0x4e7   :  { %19476 = vmatprep.subr.bf16.mxu0 %v19475_v25 }
 0x4e9   :  { %17670 = vmatmul.mubr.f32.vlgmr.msra.gmra.mrb[6].mxu0 %v21242_v41  ;;  %v19499_v41 = vpack.c.bf16 %v3457_v11, %v3450_v60 }
 0x4ea   :  { %19478 = vmatpush3.bf16.msra.mxu0 %v19475_v25  ;;  %17680 = vmatprep.mubr.f32.mxu0 %v21205_v27 }
 0x4eb   :  { %19480 = vmatprep.subr.bf16.mxu0 %v19479_v18 }
 0x4ee   :  { %19482 = vmatpush3.bf16.msra.mxu0 %v19479_v18 }
 0x4ef   :  { %19484 = vmatprep.subr.bf16.mxu0 %v19483_v29 }
 0x4f1   :  { %17681 = vmatmul.mubr.f32.vlgmr.msra.gmra.mrb[6].mxu0 %v21212_v32 }
 0x4f2   :  { %19486 = vmatpush3.bf16.msra.mxu0 %v19483_v29  ;;  %17691 = vmatprep.mubr.f32.mxu0 %v21209_v10  ;;  %v4507_v10 = vsub.f32 %v4428_v31, %v21565_v37 }
 0x4f3   :  { %19488 = vmatprep.subr.bf16.mxu0 %v19487_v30 }
 0x4f6   :  { %19490 = vmatpush3.bf16.msra.mxu0 %v19487_v30 }
 0x4f7   :  { %19492 = vmatprep.subr.bf16.mxu0 %v19467_v40 }
 0x4f9   :  { %17692 = vmatmul.mubr.f32.vlgmr.msra.gmra.mrb[6].mxu0 %v21222_v36 }
 0x4fa   :  { %19494 = vmatpush3.bf16.msra.mxu0 %v19467_v40  ;;  %17702 = vmatprep.mubr.f32.mxu0 %v21215_v33  ;;  %v4508_v33 = vand.u32 4294901760, %v4507_v10 }
 0x4fb   :  { %19496 = vmatprep.subr.bf16.mxu0 %v19471_v20 }
 0x4fc   :  { %v4509_v36 = vsub.f32 %v4507_v10, %v4508_v33 }
 0x4fe   :  { %19498 = vmatpush3.bf16.msra.mxu0 %v19471_v20  ;;  %v4510_v58 = vand.u32 4294901760, %v4509_v36 }
 0x4ff   :  { %19500 = vmatprep.subr.bf16.mxu0 %v19499_v41 }
 0x501   :  { %17703 = vmatmul.mubr.f32.vlgmr.msra.gmra.mrb[6].mxu0 %v21233_v39 }
 0x502   :  { %19502 = vmatpush3.bf16.msra.mxu0 %v19499_v41  ;;  %17713 = vmatprep.mubr.f32.mxu0 %v21205_v27 }
 0x503   :  { %19504 = vmatprep.subr.bf16.mxu0 %v19503_v35 }
 0x506   :  { %19506 = vmatpush3.bf16.msra.mxu0 %v19503_v35 }
 0x507   :  { %19508 = vmatprep.subr.bf16.mxu0 %v19467_v40 }
 0x509   :  { %17714 = vmatmul.mubr.f32.vlgmr.msra.gmra.mrb[6].mxu0 %v21212_v32 }
 0x50a   :  { %19510 = vmatpush3.bf16.msra.mxu0 %v19467_v40  ;;  %17724 = vmatprep.mubr.f32.mxu0 %v21205_v27 }
 0x50b   :  { %19512 = vmatprep.subr.bf16.mxu0 %v19471_v20 }
 0x50e   :  { %19514 = vmatpush3.bf16.msra.mxu0 %v19471_v20 }
 0x511   :  { %17725 = vmatmul.mubr.f32.vlgmr.msra.gmra.mrb[6].mxu0 %v21212_v32 }
 0x512   :  { %17797 = vmatprep.mubr.f32.mxu0 %v4510_v58 }
 0x5b4   :  { %v21573_v39 = vpop.f32.mrb[4].mxu0 }
 0x5b5   :  { %v21575_v57 = vpop.f32.mrb[5].mxu0 }
 0x5e4   :  { %v17726_v27 = vpop.f32.mrb[6].mxu0 }
 0x5e5   :  { %v20629_v47 = vadd.f32 %v17726_v27, %v16180_v45  ;;  %v3876_v50 = vpop.f32.mrb[7].mxu0 }
 0x5e6   :  { %v20630_v43 = vadd.f32 %v16180_v45, %v3876_v50 }
 0x5e7   :  { %v4437_v32 = vsel %vm1753_vm5, %v20629_v47, 0 }
 0x5e8   :  { %v4443_v53 = vand.u32 4294901760, %v4437_v32  ;;  %v4434_v55 = vsel %vm1753_vm5, %v20630_v43, 0 }
 0x5e9   :  { %v4440_v56 = vand.u32 4294901760, %v4434_v55 }
 0x5ea   :  { %v4535_v62 = vsub.f32 %v4437_v32, %v4443_v53 }
 0x5eb   :  { %v19563_v0 = vpack.c.bf16 %v4443_v53, %v4440_v56  ;;  %v4528_v34 = vsub.f32 %v4434_v55, %v4440_v56 }
 0x5ec   :  { %v4536_v1 = vand.u32 4294901760, %v4535_v62 }
 0x5ed   :  { %v4529_v2 = vand.u32 4294901760, %v4528_v34  ;;  %19564 = vmatprep.subr.bf16.mxu0 %v19563_v0  ;;  %v19571_v28 = vpack.c.bf16 %v4535_v62, %v4528_v34 }
 0x5ee   :  { %19566 = vmatpush3.bf16.xpose.msra.mxu0 %v19563_v0  ;;  %v4537_v3 = vsub.f32 %v4535_v62, %v4536_v1 }
 0x5ef   :  { %v4530_v48 = vsub.f32 %v4528_v34, %v4529_v2  ;;  %v19579_v4 = vpack.c.bf16 %v4536_v1, %v4529_v2 }
 0x5f0   :  { %v4538_v5 = vand.u32 4294901760, %v4537_v3 }
 0x5f1   :  { %v4531_v7 = vand.u32 4294901760, %v4530_v48 }
 0x5f3   :  { %v19567_v8 = vpack.c.bf16 %v4538_v5, %v4531_v7 }
 0x5f5   :  { %17798 = vmatmul.mubr.f32.vlgmr.msra.gmra.mrb[8].mxu0 %v4520_v59  ;;  %19568 = vmatprep.subr.bf16.mxu0 %v19567_v8 }
 0x5f6   :  { %19570 = vmatpush3.bf16.xpose.msra.mxu0 %v19567_v8  ;;  %17804 = vmatprep.mubr.f32.mxu0 %v21565_v37 }
 0x5f7   :  { %19572 = vmatprep.subr.bf16.mxu0 %v19571_v28 }
 0x5fd   :  { %17805 = vmatmul.mubr.f32.vlgmr.msra.gmra.mrb[8].mxu0 %v4516_v46 }
 0x5fe   :  { %19574 = vmatpush3.bf16.xpose.msra.mxu0 %v19571_v28  ;;  %17811 = vmatprep.mubr.f32.mxu0 %v4507_v10 }
 0x5ff   :  { %19576 = vmatprep.subr.bf16.mxu0 %v19563_v0 }
 0x605   :  { %17812 = vmatmul.mubr.f32.vlgmr.msra.gmra.mrb[8].mxu0 %v4517_v52 }
 0x606   :  { %19578 = vmatpush3.bf16.xpose.msra.mxu0 %v19563_v0  ;;  %17818 = vmatprep.mubr.f32.mxu0 %v4508_v33 }
 0x607   :  { %19580 = vmatprep.subr.bf16.mxu0 %v19579_v4 }
 0x60d   :  { %17819 = vmatmul.mubr.f32.vlgmr.msra.gmra.mrb[8].mxu0 %v4518_v63 }
 0x60e   :  { %19582 = vmatpush3.bf16.xpose.msra.mxu0 %v19579_v4  ;;  %17825 = vmatprep.mubr.f32.mxu0 %v21565_v37 }
 0x60f   :  { %19584 = vmatprep.subr.bf16.mxu0 %v19563_v0 }
 0x615   :  { %17826 = vmatmul.mubr.f32.vlgmr.msra.gmra.mrb[8].mxu0 %v4516_v46 }
 0x616   :  { %19586 = vmatpush3.bf16.xpose.msra.mxu0 %v19563_v0  ;;  %17832 = vmatprep.mubr.f32.mxu0 %v21565_v37 }
 0x61d   :  { %17833 = vmatmul.mubr.f32.vlgmr.msra.gmra.mrb[8].mxu0 %v4516_v46 }
 0x6f0   :  { %v17834_v40 = vpop.f32.mrb[8].mxu0 }
 0x6f1   :  { %v4942_v60 = vmul.f32 0.25, %v17834_v40  ;;  %v4931_v11 = vpop.f32.mrb[9].mxu0 }
 0x6f2   :  { %v4941_v13 = vmul.f32 0.25, %v4931_v11 }
 0x6f3   :  { %v4944_v14 = vadd.f32 %v4942_v60, %v21495_v51 }
 0x6f4   :  { %v4943_v42 = vadd.f32 %v4941_v13, %v21500_v54 }
 0x6f5   :  { %v4948_v16 = vsel %vm1753_vm5, %v4944_v14, -inf }
 0x6f6   :  { %4949 = vmax.xlane.f32.xlu1 %v4948_v16  ;;  %v4945_v23 = vsel %vm1753_vm5, %v4943_v42, -inf }
 0x6f7   :  { %4946 = vmax.xlane.f32.xlu0 %v4945_v23 }
 0x783   :  { %v4950_v19 = vpop.xlane.xlu1 %4949 }
 0x784   :  { %v4952_v20 = vsub.f32 %v4944_v14, %v4950_v19  ;;  %v4947_v61 = vpop.xlane.xlu0 %4946  ;;  %v2802_v14 = vld [vmem:[%s22934_s10] sm:$0xff]  ;;  %v5987_v19 = vsel %vm1753_vm5, %v21575_v57, 0 }
 0x785   :  { %v4951_v21 = vsub.f32 %v4943_v42, %v4947_v61  ;;  %v2803_v42 = vld [vmem:[%s22934_s10 + $0x8] sm:$0xff]  ;;  %v5993_v16 = vand.u32 4294901760, %v2802_v14 }
 0x786   :  { %v4955_v22 = vmul.f32 1.442695, %v4952_v20  ;;  %v5996_v23 = vand.u32 4294901760, %v2803_v42 }
 0x787   :  { %v4953_v24 = vmul.f32 1.442695, %v4951_v21  ;;  %v6081_v20 = vsub.f32 %v2802_v14, %v5993_v16  ;;  %v6059_v21 = vand.u32 4294901760, %v5987_v19 }
 0x788   :  { %20963 = vpow2.f32 %v4955_v22  ;;  %v6088_v61 = vsub.f32 %v2803_v42, %v5996_v23 }
 0x789   :  { %20965 = vpow2.f32 %v4953_v24  ;;  %v6082_v22 = vand.u32 4294901760, %v6081_v20 }
 0x78a   :  { %v6089_v24 = vand.u32 4294901760, %v6088_v61 }
 0x792   :  { %v20964_v25 = vpop.eup %20963 }
 0x793   :  { %v20966_v6 = vpop.eup %20965  ;;  %v4960_v51 = vsel %vm1753_vm5, %v20964_v25, 0.0 }
 0x794   :  { %4961 = vadd.xlane.f32.xlu1 %v4960_v51  ;;  %v4957_v54 = vsel %vm1753_vm5, %v20966_v6, 0.0 }
 0x795   :  { %4958 = vadd.xlane.f32.xlu0 %v4957_v54  ;;  %v19635_v54 = vpack.c.bf16 %v5996_v23, %v5993_v16 }
 0x821   :  { %v4962_v26 = vpop.xlane.xlu1 %4961 }
 0x822   :  { %20967 = vrcp.f32 %v4962_v26  ;;  %v4959_v18 = vpop.xlane.xlu0 %4958  ;;  %v6083_v26 = vsub.f32 %v6081_v20, %v6082_v22 }
 0x823   :  { %20969 = vrcp.f32 %v4959_v18  ;;  %v6090_v18 = vsub.f32 %v6088_v61, %v6089_v24 }
 0x82c   :  { %v20968_v29 = vpop.eup %20967 }
 0x82d   :  { %v20970_v30 = vpop.eup %20969  ;;  %v4966_v38 = vmul.f32 %v20968_v29, %v20964_v25  ;;  %v5990_v25 = vsel %vm1753_vm5, %v21573_v39, 0 }
 0x82e   :  { %v4965_v41 = vmul.f32 %v20970_v30, %v20966_v6  ;;  %v6060_v6 = vsub.f32 %v5987_v19, %v6059_v21  ;;  %v6069_v51 = vand.u32 4294901760, %v5990_v25  ;;  %v6084_v30 = vand.u32 4294901760, %v6083_v26 }
 0x82f   :  { %v4971_v31 = vsel %vm1753_vm5, %v4966_v38, 0  ;;  %v6091_v38 = vand.u32 4294901760, %v6090_v18 }
 0x830   :  { %v4968_v35 = vsel %vm1753_vm5, %v4965_v41, 0  ;;  %v5050_v37 = vand.u32 4294901760, %v4971_v31  ;;  %v6061_v29 = vand.u32 4294901760, %v6060_v6  ;;  %v6070_v57 = vsub.f32 %v5990_v25, %v6069_v51 }
 0x831   :  { %v5040_v10 = vand.u32 4294901760, %v4968_v35 }
 0x832   :  { %v5051_v33 = vsub.f32 %v4971_v31, %v5050_v37  ;;  %v6062_v41 = vsub.f32 %v6060_v6, %v6061_v29  ;;  %v6071_v31 = vand.u32 4294901760, %v6070_v57 }
 0x833   :  { %v5041_v36 = vsub.f32 %v4968_v35, %v5040_v10  ;;  %v19639_v35 = vpack.c.bf16 %v6091_v38, %v6084_v30 }
 0x834   :  { %v5052_v58 = vand.u32 4294901760, %v5051_v33  ;;  %v6072_v39 = vsub.f32 %v6070_v57, %v6071_v31 }
 0x835   :  { %v5042_v44 = vand.u32 4294901760, %v5041_v36 }
 0x836   :  { %v5053_v45 = vsub.f32 %v5051_v33, %v5052_v58 }
 0x837   :  { %v5043_v46 = vsub.f32 %v5041_v36, %v5042_v44 }
 0x838   :  { %v5054_v47 = vand.u32 4294901760, %v5053_v45  ;;  %v21019_v45 = vld [vmem:[%s22970_s23 + $0x8] sm:$0xff] }
 0x839   :  { %v5044_v27 = vand.u32 4294901760, %v5043_v46 }
 0x83b   :  { %17839 = vmatprep.mubr.f32.mxu1 %v5044_v27 }
 0x83c   :  { %17840 = vmatmul.mubr.f32.vlgmr.msra.gmra.mrb[10].mxu1 %v5054_v47  ;;  %v21020_v47 = vld [vmem:[%s22970_s23] sm:$0xff] }
 0x83d   :  { %19594 = vmatpush3.bf16.msra.mxu1 %v21527_v17  ;;  %17846 = vmatprep.mubr.f32.mxu1 %v5040_v10  ;;  %v16188_v17 = vld [vmem:[%s22934_s10 + $0x18] sm:$0xff] }
 0x83e   :  { %19596 = vmatprep.subr.bf16.mxu1 %v21522_v12  ;;  %v5488_v43 = vand.u32 4294901760, %v16188_v17 }
 0x840   :  { %v5580_v32 = vsub.f32 %v16188_v17, %v5488_v43 }
 0x844   :  { %17847 = vmatmul.mubr.f32.vlgmr.msra.gmra.mrb[10].mxu1 %v5050_v37 }
 0x845   :  { %19598 = vmatpush3.bf16.msra.mxu1 %v21522_v12  ;;  %17853 = vmatprep.mubr.f32.mxu1 %v5041_v36  ;;  %v16187_v12 = vld [vmem:[%s22934_s10 + $0x10] sm:$0xff]  ;;  %v19651_v36 = vpack.c.bf16 %v6089_v24, %v6082_v22 }
 0x846   :  { %19600 = vmatprep.subr.bf16.mxu1 %v21519_v9  ;;  %v5485_v50 = vand.u32 4294901760, %v16187_v12 }
 0x848   :  { %v21610_v52 = vpack.c.bf16 %v5488_v43, %v5485_v50 }
 0x84a   :  { %19612 = vmatprep.subr.bf16.mxu0 %v21610_v52 }
 0x84b   :  { %19614 = vmatpush3.bf16.msra.mxu0 %v21610_v52 }
 0x84c   :  { %17854 = vmatmul.mubr.f32.vlgmr.msra.gmra.mrb[10].mxu1 %v5051_v33  ;;  %v19643_v33 = vpack.c.bf16 %v6088_v61, %v6081_v20 }
 0x84d   :  { %19602 = vmatpush3.bf16.msra.mxu1 %v21519_v9  ;;  %17860 = vmatprep.mubr.f32.mxu1 %v5042_v44  ;;  %v16189_v44 = vld [vmem:[%s22935_s11] ss:$0 sm:$0xff] }
 0x84e   :  { %19604 = vmatprep.subr.bf16.mxu1 %v21525_v15 }
 0x854   :  { %17861 = vmatmul.mubr.f32.vlgmr.msra.gmra.mrb[10].mxu1 %v5052_v58 }
 0x855   :  { %19606 = vmatpush3.bf16.msra.mxu1 %v21525_v15  ;;  %17867 = vmatprep.mubr.f32.mxu1 %v5040_v10  ;;  %v5573_v15 = vsub.f32 %v16187_v12, %v5485_v50 }
 0x856   :  { %19608 = vmatprep.subr.bf16.mxu1 %v21519_v9 }
 0x857   :  { %v5574_v53 = vand.u32 4294901760, %v5573_v15  ;;  %v19619_v34 = vpack.c.bf16 %v5580_v32, %v5573_v15 }
 0x859   :  { %v5575_v55 = vsub.f32 %v5573_v15, %v5574_v53 }
 0x85b   :  { %v5576_v62 = vand.u32 4294901760, %v5575_v55 }
 0x85c   :  { %17868 = vmatmul.mubr.f32.vlgmr.msra.gmra.mrb[10].mxu1 %v5050_v37 }
 0x85d   :  { %19610 = vmatpush3.bf16.msra.mxu1 %v21519_v9  ;;  %17874 = vmatprep.mubr.f32.mxu1 %v5040_v10  ;;  %v5581_v9 = vand.u32 4294901760, %v5580_v32  ;;  %v6073_v10 = vand.u32 4294901760, %v6072_v39 }
 0x85f   :  { %v5582_v56 = vsub.f32 %v5580_v32, %v5581_v9  ;;  %v19627_v1 = vpack.c.bf16 %v5581_v9, %v5574_v53 }
 0x861   :  { %v5583_v63 = vand.u32 4294901760, %v5582_v56 }
 0x863   :  { %v19615_v0 = vpack.c.bf16 %v5583_v63, %v5576_v62 }
 0x864   :  { %17875 = vmatmul.mubr.f32.vlgmr.msra.gmra.mrb[10].mxu1 %v5050_v37  ;;  %v6063_v37 = vand.u32 4294901760, %v6062_v41 }
 0x865   :  { %19616 = vmatprep.subr.bf16.mxu0 %v19615_v0 }
 0x937   :  { %v17876_v2 = vpop.f32.mrb[10].mxu1 }
 0x938   :  { %v5482_v28 = vsel %vm1753_vm5, %v17876_v2, 0  ;;  %v5465_v3 = vpop.f32.mrb[11].mxu1  ;;  %v6564_v2 = vld [vmem:[%s22936_s14 + $0x8] sm:$0xff] }
 0x939   :  { %v5561_v49 = vand.u32 4294901760, %v5482_v28  ;;  %v5479_v48 = vsel %vm1753_vm5, %v5465_v3, 0 }
 0x93a   :  { %v5551_v4 = vand.u32 4294901760, %v5479_v48 }
 0x93b   :  { %v5562_v5 = vsub.f32 %v5482_v28, %v5561_v49  ;;  %v6565_v28 = vld [vmem:[%s22936_s14 + $0x10] sm:$0xff] }
 0x93c   :  { %v5552_v7 = vsub.f32 %v5479_v48, %v5551_v4  ;;  %v6566_v48 = vld [vmem:[%s22936_s14 + $0x18] sm:$0xff] }
 0x93d   :  { %v5563_v59 = vand.u32 4294901760, %v5562_v5 }
 0x93e   :  { %v5553_v8 = vand.u32 4294901760, %v5552_v7 }
 0x93f   :  { %v5564_v40 = vsub.f32 %v5562_v5, %v5563_v59 }
 0x940   :  { %v5554_v60 = vsub.f32 %v5552_v7, %v5553_v8 }
 0x941   :  { %v5565_v13 = vand.u32 4294901760, %v5564_v40 }
 0x942   :  { %v5555_v11 = vand.u32 4294901760, %v5554_v60 }
 0x944   :  { %17881 = vmatprep.mubr.f32.mxu0 %v5555_v11 }
 0x945   :  { %17882 = vmatmul.mubr.f32.vlgmr.msra.gmra.mrb[10].mxu0 %v5565_v13 }
 0x946   :  { %19618 = vmatpush3.bf16.msra.mxu0 %v19615_v0  ;;  %17888 = vmatprep.mubr.f32.mxu0 %v5551_v4 }
 0x947   :  { %19620 = vmatprep.subr.bf16.mxu0 %v19619_v34 }
 0x94d   :  { %17889 = vmatmul.mubr.f32.vlgmr.msra.gmra.mrb[10].mxu0 %v5561_v49 }
 0x94e   :  { %19622 = vmatpush3.bf16.msra.mxu0 %v19619_v34  ;;  %17895 = vmatprep.mubr.f32.mxu0 %v5552_v7 }
 0x94f   :  { %19624 = vmatprep.subr.bf16.mxu0 %v21610_v52 }
 0x955   :  { %17896 = vmatmul.mubr.f32.vlgmr.msra.gmra.mrb[10].mxu0 %v5562_v5  ;;  %v6590_v5 = vand.u32 4294901760, %v6566_v48 }
 0x956   :  { %19626 = vmatpush3.bf16.msra.mxu0 %v21610_v52  ;;  %17902 = vmatprep.mubr.f32.mxu0 %v5553_v8 }
 0x957   :  { %19628 = vmatprep.subr.bf16.mxu0 %v19627_v1  ;;  %v6692_v16 = vsub.f32 %v6566_v48, %v6590_v5 }
 0x959   :  { %v6693_v61 = vand.u32 4294901760, %v6692_v16 }
 0x95b   :  { %v6694_v24 = vsub.f32 %v6692_v16, %v6693_v61 }
 0x95d   :  { %17903 = vmatmul.mubr.f32.vlgmr.msra.gmra.mrb[10].mxu0 %v5563_v59 }
 0x95e   :  { %19630 = vmatpush3.bf16.msra.mxu0 %v19627_v1  ;;  %17909 = vmatprep.mubr.f32.mxu0 %v5551_v4  ;;  %v6563_v1 = vld [vmem:[%s22936_s14] sm:$0xff] }
 0x95f   :  { %19632 = vmatprep.subr.bf16.mxu0 %v21610_v52  ;;  %v6581_v3 = vand.u32 4294901760, %v6563_v1 }
 0x961   :  { %v6671_v8 = vsub.f32 %v6563_v1, %v6581_v3 }
 0x963   :  { %v6672_v60 = vand.u32 4294901760, %v6671_v8 }
 0x965   :  { %17910 = vmatmul.mubr.f32.vlgmr.msra.gmra.mrb[10].mxu0 %v5561_v49  ;;  %v6673_v13 = vsub.f32 %v6671_v8, %v6672_v60 }
 0x966   :  { %19634 = vmatpush3.bf16.msra.mxu0 %v21610_v52  ;;  %17916 = vmatprep.mubr.f32.mxu0 %v5551_v4  ;;  %v6587_v4 = vand.u32 4294901760, %v6565_v28 }
 0x967   :  { %19636 = vmatprep.subr.bf16.mxu0 %v19635_v54  ;;  %v6674_v23 = vand.u32 4294901760, %v6673_v13 }
 0x968   :  { %v21673_v59 = vpack.c.bf16 %v6590_v5, %v6587_v4  ;;  %v6685_v42 = vsub.f32 %v6565_v28, %v6587_v4 }
 0x96a   :  { %v6686_v20 = vand.u32 4294901760, %v6685_v42  ;;  %v19679_v26 = vpack.c.bf16 %v6692_v16, %v6685_v42 }
 0x96c   :  { %v6687_v22 = vsub.f32 %v6685_v42, %v6686_v20 }
 0x96d   :  { %17917 = vmatmul.mubr.f32.vlgmr.msra.gmra.mrb[10].mxu0 %v5561_v49  ;;  %v6584_v49 = vand.u32 4294901760, %v6564_v2 }
 0x96e   :  { %19638 = vmatpush3.bf16.msra.mxu0 %v19635_v54  ;;  %17923 = vmatprep.mubr.f32.mxu0 %v6063_v37  ;;  %v6688_v25 = vand.u32 4294901760, %v6687_v22 }
 0x96f   :  { %19640 = vmatprep.subr.bf16.mxu0 %v19639_v35  ;;  %v21671_v7 = vpack.c.bf16 %v6584_v49, %v6581_v3  ;;  %v6678_v40 = vsub.f32 %v6564_v2, %v6584_v49 }
 0x971   :  { %19660 = vmatprep.subr.bf16.mxu1 %v21671_v7  ;;  %v6679_v11 = vand.u32 4294901760, %v6678_v40 }
 0x972   :  { %19662 = vmatpush3.bf16.msra.mxu1 %v21671_v7 }
 0x973   :  { %19664 = vmatprep.subr.bf16.mxu1 %v21673_v59  ;;  %v6680_v14 = vsub.f32 %v6678_v40, %v6679_v11  ;;  %v21679_v18 = vpack.c.bf16 %v6679_v11, %v6672_v60 }
 0x975   :  { %17924 = vmatmul.mubr.f32.vlgmr.msra.gmra.mrb[10].mxu0 %v6073_v10  ;;  %v6681_v19 = vand.u32 4294901760, %v6680_v14 }
 0x976   :  { %19642 = vmatpush3.bf16.msra.mxu0 %v19639_v35  ;;  %17930 = vmatprep.mubr.f32.mxu0 %v6059_v21 }
 0x977   :  { %19644 = vmatprep.subr.bf16.mxu0 %v19643_v33  ;;  %19666 = vmatpush3.bf16.msra.mxu1 %v21673_v59 }
 0x97d   :  { %17931 = vmatmul.mubr.f32.vlgmr.msra.gmra.mrb[10].mxu0 %v6069_v51 }
 0x97e   :  { %19646 = vmatpush3.bf16.msra.mxu0 %v19643_v33  ;;  %17937 = vmatprep.mubr.f32.mxu0 %v6060_v6  ;;  %v6695_v6 = vand.u32 4294901760, %v6694_v24 }
 0x97f   :  { %19648 = vmatprep.subr.bf16.mxu0 %v19635_v54 }
 0x985   :  { %17938 = vmatmul.mubr.f32.vlgmr.msra.gmra.mrb[10].mxu0 %v6070_v57 }
 0x986   :  { %19650 = vmatpush3.bf16.msra.mxu0 %v19635_v54  ;;  %17944 = vmatprep.mubr.f32.mxu0 %v6061_v29  ;;  %v21681_v29 = vpack.c.bf16 %v6693_v61, %v6686_v20  ;;  %v7130_v61 = vld [vmem:[%s22939_s16 + $0x20] sm:$0xff] }
 0x987   :  { %19652 = vmatprep.subr.bf16.mxu0 %v19651_v36  ;;  %v7162_v24 = vand.u32 4294901760, %v7130_v61 }
 0x98d   :  { %17945 = vmatmul.mubr.f32.vlgmr.msra.gmra.mrb[10].mxu0 %v6071_v31 }
 0x98e   :  { %19654 = vmatpush3.bf16.msra.mxu0 %v19651_v36  ;;  %17951 = vmatprep.mubr.f32.mxu0 %v6059_v21 }
 0x98f   :  { %19656 = vmatprep.subr.bf16.mxu0 %v19635_v54 }
 0x995   :  { %17952 = vmatmul.mubr.f32.vlgmr.msra.gmra.mrb[10].mxu0 %v6069_v51 }
 0x996   :  { %19658 = vmatpush3.bf16.msra.mxu0 %v19635_v54  ;;  %17958 = vmatprep.mubr.f32.mxu0 %v6059_v21  ;;  %v19667_v21 = vpack.c.bf16 %v6681_v19, %v6674_v23  ;;  %v19675_v54 = vpack.c.bf16 %v6678_v40, %v6671_v8  ;;  %v7126_v8 = vld [vmem:[%s22939_s16] sm:$0xff]  ;;  %v7127_v40 = vld [vmem:[%s22939_s16 + $0x8] sm:$0xff] }
 0x997   :  { %v7150_v60 = vand.u32 4294901760, %v7126_v8  ;;  %v7153_v11 = vand.u32 4294901760, %v7127_v40 }
 0x998   :  { %19668 = vmatprep.subr.bf16.mxu1 %v19667_v21 }
 0x999   :  { %v21711_v13 = vsub.f32 %v7126_v8, %v7150_v60  ;;  %v21713_v14 = vsub.f32 %v7127_v40, %v7153_v11 }
 0x99b   :  { %v19771_v42 = vpack.c.bf16 %v21713_v14, %v21711_v13 }
 0x99d   :  { %17959 = vmatmul.mubr.f32.vlgmr.msra.gmra.mrb[10].mxu0 %v6069_v51  ;;  %v19671_v51 = vpack.c.bf16 %v6695_v6, %v6688_v25  ;;  %19772 = vmatprep.subr.bf16.mxu0 %v19771_v42  ;;  %v21735_v6 = vpack.c.bf16 %v7153_v11, %v7150_v60  ;;  %v7253_v60 = vand.u32 4294901760, %v21711_v13  ;;  %v7260_v11 = vand.u32 4294901760, %v21713_v14 }
 0x99e   :  { %19774 = vmatpush3.bf16.msra.mxu0 %v19771_v42 }
 0xa70   :  { %v17960_v58 = vpop.f32.mrb[10].mxu0 }
 0xa71   :  { %v6495_v46 = vadd.f32 %v21019_v45, %v17960_v58  ;;  %v6484_v27 = vpop.f32.mrb[11].mxu0 }
 0xa72   :  { %v6494_v12 = vadd.f32 %v21020_v47, %v6484_v27  ;;  %v16190_v47 = vld [vmem:[%s22937_s12] ss:$0 sm:$0xff] }
 0xa73   :  { %v21639_v17 = vadd.f32 %v16189_v44, %v6495_v46 }
 0xa74   :  { %v21641_v50 = vadd.f32 %v16189_v44, %v6494_v12 }
 0xa75   :  { %v6510_v43 = vsel %vm71_vm0, %v21639_v17, 0.0 }
 0xa76   :  { %6511 = vadd.xlane.f32.xlu1 %v6510_v43  ;;  %v6507_v52 = vsel %vm71_vm0, %v21641_v50, 0.0 }
 0xa77   :  { %6508 = vadd.xlane.f32.xlu0 %v6507_v52 }
 0xb03   :  { %v6512_v15 = vpop.xlane.xlu1 %6511 }
 0xb04   :  { %v6514_v32 = vmul.f32 0.03125, %v6512_v15  ;;  %v6509_v53 = vpop.xlane.xlu0 %6508  ;;  %v16191_v15 = vld [vmem:[%s22938_s13] ss:$0 sm:$0xff] }
 0xb05   :  { %v6513_v9 = vmul.f32 0.03125, %v6509_v53 }
 0xb06   :  { %v21648_v55 = vsub.f32 %v21639_v17, %v6514_v32 }
 0xb07   :  { %v21651_v56 = vsub.f32 %v21641_v50, %v6513_v9 }
 0xb08   :  { %v6518_v62 = vmul.f32 %v21648_v55, %v21648_v55  ;;  %v6534_v12 = vmul.f32 %v16190_v47, %v21648_v55 }
 0xb09   :  { %v6517_v63 = vmul.f32 %v21651_v56, %v21651_v56  ;;  %v6533_v52 = vmul.f32 %v16190_v47, %v21651_v56 }
 0xb0a   :  { %v6522_v0 = vsel %vm71_vm0, %v6518_v62, 0.0 }
 0xb0b   :  { %6523 = vadd.xlane.f32.xlu1 %v6522_v0  ;;  %v6519_v34 = vsel %vm71_vm0, %v6517_v63, 0.0 }
 0xb0c   :  { %6520 = vadd.xlane.f32.xlu0 %v6519_v34 }
 0xb98   :  { %v6524_v57 = vpop.xlane.xlu1 %6523 }
 0xb99   :  { %v6526_v30 = vmul.f32 0.032258064, %v6524_v57  ;;  %v6521_v38 = vpop.xlane.xlu0 %6520 }
 0xb9a   :  { %v6525_v41 = vmul.f32 0.032258064, %v6521_v38 }
 0xb9b   :  { %20971 = vrsqrt.f32 %v6526_v30  ;;  %vm6544_vm6 = vcmp.eq.f32.partialorder %v6526_v30, inf  ;;  %v6547_v39 = vand.u32 2147483648, %v6526_v30  ;;  %vm6546_vm7 = vcmp.eq.f32.partialorder %v6526_v30, 0.0 }
 0xb9c   :  { %20973 = vrsqrt.f32 %v6525_v41  ;;  %vm6537_vm8 = vcmp.eq.f32.partialorder %v6525_v41, inf  ;;  %v6540_v36 = vand.u32 2147483648, %v6525_v41  ;;  %vm6539_vm9 = vcmp.eq.f32.partialorder %v6525_v41, 0.0 }
 0xba5   :  { %v20972_v31 = vpop.eup %20971 }
 0xba6   :  { %v20974_v35 = vpop.eup %20973  ;;  %v6543_v37 = vmul.f32 %v20972_v31, %v6526_v30 }
 0xba7   :  { %v6536_v10 = vmul.f32 %v20974_v35, %v6525_v41  ;;  %v7134_v35 = vld [vmem:[%s22939_s16 + $0x40] sm:$0xff] }
 0xba8   :  { %v6545_v33 = vsel %vm6544_vm6, %v6526_v30, %v6543_v37  ;;  %v7135_v37 = vld [vmem:[%s22939_s16 + $0x48] sm:$0xff] }
 0xba9   :  { %v6548_v58 = vsel %vm6546_vm7, %v6547_v39, %v6545_v33  ;;  %v6538_v44 = vsel %vm6537_vm8, %v6525_v41, %v6536_v10  ;;  %v7174_v10 = vand.u32 4294901760, %v7134_v35  ;;  %v7177_v33 = vand.u32 4294901760, %v7135_v37 }
 0xbaa   :  { %v6550_v45 = vadd.f32 1e-06, %v6548_v58  ;;  %v6541_v46 = vsel %vm6539_vm9, %v6540_v36, %v6538_v44  ;;  %v7136_v58 = vld [vmem:[%s22939_s16 + $0x50] sm:$0xff]  ;;  %v7137_v44 = vld [vmem:[%s22939_s16 + $0x58] sm:$0xff] }
 0xbab   :  { %v6549_v27 = vadd.f32 1e-06, %v6541_v46  ;;  %v21782_v47 = vsub.f32 %v7135_v37, %v7177_v33 }
 0xbac   :  { %20975 = vrcp.f32 %v6550_v45  ;;  %v7138_v45 = vld [vmem:[%s22939_s16 + $0x60] sm:$0xff] }
 0xbad   :  { %20977 = vrcp.f32 %v6549_v27  ;;  %v21780_v27 = vsub.f32 %v7134_v35, %v7174_v10 }
 0xbb6   :  { %v20976_v43 = vpop.eup %20975 }
 0xbb7   :  { %v20978_v32 = vpop.eup %20977  ;;  %v6554_v53 = vmul.f32 %v20976_v43, %v6534_v12  ;;  %v7180_v12 = vand.u32 4294901760, %v7136_v58  ;;  %v7139_v43 = vld [vmem:[%s22939_s16 + $0x68] sm:$0xff] }
 0xbb8   :  { %v6552_v9 = vmul.f32 %v20978_v32, %v6533_v52  ;;  %v7140_v52 = vld [vmem:[%s22939_s16 + $0x70] sm:$0xff]  ;;  %v7183_v32 = vand.u32 4294901760, %v7137_v44 }
 0xbb9   :  { %v6562_v62 = vadd.f32 %v16191_v15, %v6554_v53  ;;  %v7186_v53 = vand.u32 4294901760, %v7138_v45 }
 0xbba   :  { %v6561_v63 = vadd.f32 %v16191_v15, %v6552_v9  ;;  %v7141_v15 = vld [vmem:[%s22939_s16 + $0x78] sm:$0xff]  ;;  %v7189_v9 = vand.u32 4294901760, %v7139_v43 }
 0xbbb   :  { %v6578_v0 = vsel %vm71_vm0, %v6562_v62, 0  ;;  %v19787_v62 = vpack.c.bf16 %v21782_v47, %v21780_v27 }
 0xbbc   :  { %v6575_v34 = vsel %vm71_vm0, %v6561_v63, 0  ;;  %v6659_v1 = vand.u32 4294901760, %v6578_v0  ;;  %v21796_v63 = vsub.f32 %v7136_v58, %v7180_v12  ;;  %v21823_v8 = vpack.c.bf16 %v7189_v9, %v7186_v53 }
 0xbbd   :  { %v6649_v2 = vand.u32 4294901760, %v6575_v34 }
 0xbbe   :  { %v6660_v28 = vsub.f32 %v6578_v0, %v6659_v1  ;;  %v7192_v0 = vand.u32 4294901760, %v7140_v52 }
 0xbbf   :  { %v6650_v55 = vsub.f32 %v6575_v34, %v6649_v2  ;;  %v7195_v34 = vand.u32 4294901760, %v7141_v15 }
 0xbc0   :  { %v6661_v3 = vand.u32 4294901760, %v6660_v28 }
 0xbc1   :  { %v6651_v49 = vand.u32 4294901760, %v6650_v55  ;;  %v21827_v40 = vpack.c.bf16 %v7195_v34, %v7192_v0 }
 0xbc2   :  { %v6662_v56 = vsub.f32 %v6660_v28, %v6661_v3 }
 0xbc3   :  { %v6652_v48 = vsub.f32 %v6650_v55, %v6651_v49 }
 0xbc4   :  { %v6663_v5 = vand.u32 4294901760, %v6662_v56  ;;  %v21812_v56 = vsub.f32 %v7140_v52, %v7192_v0 }
 0xbc5   :  { %v6653_v4 = vand.u32 4294901760, %v6652_v48  ;;  %v21814_v48 = vsub.f32 %v7141_v15, %v7195_v34  ;;  %v7323_v15 = vand.u32 4294901760, %v21796_v63 }
 0xbc7   :  { %17969 = vmatprep.mubr.f32.mxu1 %v6653_v4  ;;  %v21817_v4 = vpack.c.bf16 %v7183_v32, %v7180_v12 }
 0xbc8   :  { %17970 = vmatmul.mubr.f32.vlgmr.msra.gmra.mrb[12].mxu1 %v6663_v5  ;;  %v19799_v5 = vpack.c.bf16 %v21814_v48, %v21812_v56 }
 0xbc9   :  { %19670 = vmatpush3.bf16.msra.mxu1 %v19667_v21  ;;  %17980 = vmatprep.mubr.f32.mxu1 %v6649_v2  ;;  %v7131_v21 = vld [vmem:[%s22939_s16 + $0x28] sm:$0xff] }
 0xbca   :  { %19672 = vmatprep.subr.bf16.mxu1 %v19671_v51  ;;  %v7165_v25 = vand.u32 4294901760, %v7131_v21 }
 0xbcc   :  { %v21766_v36 = vpack.c.bf16 %v7165_v25, %v7162_v24 }
 0xbcd   :  { %19674 = vmatpush3.bf16.msra.mxu1 %v19671_v51  ;;  %v21737_v51 = vsub.f32 %v7130_v61, %v7162_v24 }
 0xbce   :  { %19676 = vmatprep.subr.bf16.mxu1 %v19675_v54 }
 0xbd0   :  { %17981 = vmatmul.mubr.f32.vlgmr.msra.gmra.mrb[12].mxu1 %v6659_v1 }
 0xbd1   :  { %19678 = vmatpush3.bf16.msra.mxu1 %v19675_v54  ;;  %17991 = vmatprep.mubr.f32.mxu1 %v6650_v55  ;;  %v21739_v54 = vsub.f32 %v7131_v21, %v7165_v25  ;;  %v21806_v55 = vsub.f32 %v7139_v43, %v7189_v9 }
 0xbd2   :  { %19680 = vmatprep.subr.bf16.mxu1 %v19679_v26 }
 0xbd5   :  { %19682 = vmatpush3.bf16.msra.mxu1 %v19679_v26  ;;  %v7132_v26 = vld [vmem:[%s22939_s16 + $0x30] sm:$0xff] }
 0xbd6   :  { %19684 = vmatprep.subr.bf16.mxu1 %v21671_v7  ;;  %v7168_v57 = vand.u32 4294901760, %v7132_v26 }
 0xbd8   :  { %17992 = vmatmul.mubr.f32.vlgmr.msra.gmra.mrb[12].mxu1 %v6660_v28  ;;  %v21753_v41 = vsub.f32 %v7132_v26, %v7168_v57  ;;  %v21803_v28 = vpack.c.bf16 %v7177_v33, %v7174_v10  ;;  %v7288_v26 = vand.u32 4294901760, %v21739_v54 }
 0xbd9   :  { %19686 = vmatpush3.bf16.msra.mxu1 %v21671_v7  ;;  %18002 = vmatprep.mubr.f32.mxu1 %v6651_v49 }
 0xbda   :  { %19688 = vmatprep.subr.bf16.mxu1 %v21673_v59 }
 0xbdd   :  { %19690 = vmatpush3.bf16.msra.mxu1 %v21673_v59 }
 0xbde   :  { %19692 = vmatprep.subr.bf16.mxu1 %v21679_v18 }
 0xbe0   :  { %18003 = vmatmul.mubr.f32.vlgmr.msra.gmra.mrb[12].mxu1 %v6661_v3 }
 0xbe1   :  { %19694 = vmatpush3.bf16.msra.mxu1 %v21679_v18  ;;  %18013 = vmatprep.mubr.f32.mxu1 %v6649_v2  ;;  %v7133_v18 = vld [vmem:[%s22939_s16 + $0x38] sm:$0xff] }
 0xbe2   :  { %19696 = vmatprep.subr.bf16.mxu1 %v21681_v29  ;;  %v7171_v30 = vand.u32 4294901760, %v7133_v18 }
 0xbe4   :  { %v21755_v31 = vsub.f32 %v7133_v18, %v7171_v30  ;;  %v21778_v46 = vpack.c.bf16 %v7171_v30, %v7168_v57  ;;  %v7289_v57 = vsub.f32 %v21739_v54, %v7288_v26 }
 0xbe5   :  { %19698 = vmatpush3.bf16.msra.mxu1 %v21681_v29  ;;  %v19779_v29 = vpack.c.bf16 %v21739_v54, %v21737_v51 }
 0xbe6   :  { %19700 = vmatprep.subr.bf16.mxu1 %v21671_v7  ;;  %v19783_v39 = vpack.c.bf16 %v21755_v31, %v21753_v41  ;;  %v7290_v35 = vand.u32 4294901760, %v7289_v57 }
 0xbe8   :  { %18014 = vmatmul.mubr.f32.vlgmr.msra.gmra.mrb[12].mxu1 %v6659_v1 }
 0xbe9   :  { %19702 = vmatpush3.bf16.msra.mxu1 %v21671_v7  ;;  %18024 = vmatprep.mubr.f32.mxu1 %v6649_v2  ;;  %v7128_v7 = vld [vmem:[%s22939_s16 + $0x10] sm:$0xff]  ;;  %v21801_v2 = vsub.f32 %v7138_v45, %v7186_v53 }
 0xbea   :  { %19704 = vmatprep.subr.bf16.mxu1 %v21673_v59  ;;  %v7156_v16 = vand.u32 4294901760, %v7128_v7 }
 0xbeb   :  { %v19795_v49 = vpack.c.bf16 %v21806_v55, %v21801_v2  ;;  %v7337_v0 = vand.u32 4294901760, %v21801_v2 }
 0xbec   :  { %v21723_v19 = vsub.f32 %v7128_v7, %v7156_v16  ;;  %v7254_v7 = vsub.f32 %v21711_v13, %v7253_v60 }
 0xbed   :  { %19706 = vmatpush3.bf16.msra.mxu1 %v21673_v59  ;;  %v7129_v59 = vld [vmem:[%s22939_s16 + $0x18] sm:$0xff] }
 0xbee   :  { %v7159_v23 = vand.u32 4294901760, %v7129_v59  ;;  %19708 = vmatprep.subr.bf16.mxu1 %v21735_v6  ;;  %v7255_v42 = vand.u32 4294901760, %v7254_v7  ;;  %v7351_v7 = vand.u32 4294901760, %v21812_v56 }
 0xbf0   :  { %18025 = vmatmul.mubr.f32.vlgmr.msra.gmra.mrb[12].mxu1 %v6659_v1  ;;  %v21725_v20 = vsub.f32 %v7129_v59, %v7159_v23  ;;  %v21751_v38 = vpack.c.bf16 %v7159_v23, %v7156_v16  ;;  %v21799_v1 = vsub.f32 %v7137_v44, %v7183_v32  ;;  %v7261_v59 = vsub.f32 %v21713_v14, %v7260_v11 }
 0xbf1   :  { %19710 = vmatpush3.bf16.msra.mxu1 %v21735_v6  ;;  %v7267_v23 = vand.u32 4294901760, %v21723_v19  ;;  %v7281_v14 = vand.u32 4294901760, %v21737_v51  ;;  %v7309_v44 = vand.u32 4294901760, %v21780_v27 }
 0xbf2   :  { %v19775_v22 = vpack.c.bf16 %v21725_v20, %v21723_v19  ;;  %19712 = vmatprep.subr.bf16.mxu1 %v21751_v38  ;;  %v19791_v3 = vpack.c.bf16 %v21799_v1, %v21796_v63  ;;  %v7262_v16 = vand.u32 4294901760, %v7261_v59  ;;  %v7274_v61 = vand.u32 4294901760, %v21725_v20 }
 0xbf3   :  { %v7310_v54 = vsub.f32 %v21780_v27, %v7309_v44  ;;  %v7344_v27 = vand.u32 4294901760, %v21806_v55 }
 0xbf4   :  { %19776 = vmatprep.subr.bf16.mxu0 %v19775_v22  ;;  %v21840_v21 = vpack.c.bf16 %v7262_v16, %v7255_v42  ;;  %v7275_v24 = vsub.f32 %v21725_v20, %v7274_v61  ;;  %v7302_v20 = vand.u32 4294901760, %v21755_v31  ;;  %v21881_v16 = vpack.c.bf16 %v7260_v11, %v7253_v60 }
 0xbf5   :  { %19778 = vmatpush3.bf16.msra.mxu0 %v19775_v22  ;;  %19714 = vmatpush3.bf16.msra.mxu1 %v21751_v38  ;;  %v7268_v22 = vsub.f32 %v21723_v19, %v7267_v23  ;;  %v7295_v19 = vand.u32 4294901760, %v21753_v41  ;;  %v7311_v43 = vand.u32 4294901760, %v7310_v54 }
 0xbf6   :  { %19780 = vmatprep.subr.bf16.mxu0 %v19779_v29  ;;  %19716 = vmatprep.subr.bf16.mxu1 %v21766_v36  ;;  %v7276_v13 = vand.u32 4294901760, %v7275_v24  ;;  %v7303_v10 = vsub.f32 %v21755_v31, %v7302_v20  ;;  %v7324_v31 = vsub.f32 %v21796_v63, %v7323_v15  ;;  %v7358_v63 = vand.u32 4294901760, %v21814_v48 }
 0xbf7   :  { %v7269_v25 = vand.u32 4294901760, %v7268_v22 }
 0xbf8   :  { %v7304_v58 = vand.u32 4294901760, %v7303_v10  ;;  %v7325_v9 = vand.u32 4294901760, %v7324_v31  ;;  %v7359_v42 = vsub.f32 %v21814_v48, %v7358_v63  ;;  %v16192_v48 = vld [vmem:[%s22940_s15] ss:$0 sm:$0xff] }
 0xbf9   :  { %19782 = vmatpush3.bf16.msra.mxu0 %v19779_v29  ;;  %19718 = vmatpush3.bf16.msra.mxu1 %v21766_v36  ;;  %v21847_v18 = vpack.c.bf16 %v7276_v13, %v7269_v25  ;;  %v7282_v29 = vsub.f32 %v21737_v51, %v7281_v14  ;;  %v7316_v51 = vand.u32 4294901760, %v21782_v47  ;;  %v21889_v13 = vpack.c.bf16 %v7302_v20, %v7295_v19 }
 0xbfa   :  { %19784 = vmatprep.subr.bf16.mxu0 %v19783_v39  ;;  %19720 = vmatprep.subr.bf16.mxu1 %v21778_v46  ;;  %v7360_v24 = vand.u32 4294901760, %v7359_v42 }
 0xbfb   :  { %v7283_v30 = vand.u32 4294901760, %v7282_v29  ;;  %v7317_v12 = vsub.f32 %v21782_v47, %v7316_v51  ;;  %v7338_v47 = vsub.f32 %v21801_v2, %v7337_v0  ;;  %v21885_v2 = vpack.c.bf16 %v7274_v61, %v7267_v23 }
 0xbfc   :  { %v21891_v29 = vpack.c.bf16 %v7316_v51, %v7309_v44 }
 0xbfd   :  { %19786 = vmatpush3.bf16.msra.mxu0 %v19783_v39  ;;  %19722 = vmatpush3.bf16.msra.mxu1 %v21778_v46  ;;  %v21853_v37 = vpack.c.bf16 %v7290_v35, %v7283_v30  ;;  %v7296_v39 = vsub.f32 %v21753_v41, %v7295_v19  ;;  %v7318_v52 = vand.u32 4294901760, %v7317_v12  ;;  %v7330_v41 = vand.u32 4294901760, %v21799_v1 }
 0xbfe   :  { %19788 = vmatprep.subr.bf16.mxu0 %v19787_v62  ;;  %19724 = vmatprep.subr.bf16.mxu1 %v21803_v28  ;;  %v21895_v30 = vpack.c.bf16 %v7344_v27, %v7337_v0 }
 0xbff   :  { %v7297_v33 = vand.u32 4294901760, %v7296_v39  ;;  %v21865_v32 = vpack.c.bf16 %v7318_v52, %v7311_v43  ;;  %v7331_v53 = vsub.f32 %v21799_v1, %v7330_v41  ;;  %v7352_v1 = vsub.f32 %v21812_v56, %v7351_v7 }
 0xc00   :  { %v21893_v57 = vpack.c.bf16 %v7330_v41, %v7323_v15  ;;  %v21897_v56 = vpack.c.bf16 %v7358_v63, %v7351_v7 }
 0xc01   :  { %19790 = vmatpush3.bf16.msra.mxu0 %v19787_v62  ;;  %19726 = vmatpush3.bf16.msra.mxu1 %v21803_v28  ;;  %v21859_v45 = vpack.c.bf16 %v7304_v58, %v7297_v33  ;;  %v7332_v62 = vand.u32 4294901760, %v7331_v53  ;;  %v7353_v22 = vand.u32 4294901760, %v7352_v1 }
 0xc02   :  { %19792 = vmatprep.subr.bf16.mxu0 %v19791_v3  ;;  %19728 = vmatprep.subr.bf16.mxu1 %v21817_v4 }
 0xc03   :  { %v21871_v34 = vpack.c.bf16 %v7332_v62, %v7325_v9  ;;  %v21883_v25 = vpack.c.bf16 %v7360_v24, %v7353_v22 }
 0xc05   :  { %19794 = vmatpush3.bf16.msra.mxu0 %v19791_v3  ;;  %19730 = vmatpush3.bf16.msra.mxu1 %v21817_v4  ;;  %v7345_v3 = vsub.f32 %v21806_v55, %v7344_v27  ;;  %v21887_v55 = vpack.c.bf16 %v7288_v26, %v7281_v14 }
 0xc06   :  { %19796 = vmatprep.subr.bf16.mxu0 %v19795_v49  ;;  %19732 = vmatprep.subr.bf16.mxu1 %v21823_v8 }
 0xc09   :  { %19798 = vmatpush3.bf16.msra.mxu0 %v19795_v49  ;;  %19734 = vmatpush3.bf16.msra.mxu1 %v21823_v8  ;;  %v7339_v49 = vand.u32 4294901760, %v7338_v47 }
 0xc0a   :  { %19800 = vmatprep.subr.bf16.mxu0 %v19799_v5  ;;  %19736 = vmatprep.subr.bf16.mxu1 %v21827_v40 }
 0xc0d   :  { %19802 = vmatpush3.bf16.msra.mxu0 %v19799_v5  ;;  %19738 = vmatpush3.bf16.msra.mxu1 %v21827_v40  ;;  %v7346_v5 = vand.u32 4294901760, %v7345_v3 }
 0xc0e   :  { %19804 = vmatprep.subr.bf16.mxu0 %v21735_v6  ;;  %19740 = vmatprep.subr.bf16.mxu1 %v21840_v21 }
 0xc0f   :  { %v21877_v59 = vpack.c.bf16 %v7346_v5, %v7339_v49 }
 0xcc3   :  { %v18026_v60 = vpop.f32.mrb[12].mxu1 }
 0xcc4   :  { %v20633_v11 = vadd.f32 %v18026_v60, %v16192_v48  ;;  %v7098_v23 = vpop.f32.mrb[13].mxu1 }
 0xcc5   :  { %v20634_v61 = vadd.f32 %v16192_v48, %v7098_v23  ;;  %v16201_v48 = vld [vmem:[%s22971_s26 + $0x58] sm:$0xff] }
 0xcc6   :  { %v7111_v14 = vmul.f32 0.044715, %v20633_v11  ;;  %v7109_v12 = vmul.f32 0.5, %v20633_v11 }
 0xcc7   :  { %v7110_v26 = vmul.f32 0.044715, %v20634_v61  ;;  %v7108_v52 = vmul.f32 0.5, %v20634_v61 }
 0xcc8   :  { %v7113_v35 = vmul.f32 %v20633_v11, %v7111_v14 }
 0xcc9   :  { %v7112_v19 = vmul.f32 %v20634_v61, %v7110_v26 }
 0xcca   :  { %v7115_v20 = vmul.f32 %v20633_v11, %v7113_v35 }
 0xccb   :  { %v7114_v39 = vmul.f32 %v20634_v61, %v7112_v19 }
 0xccc   :  { %v7117_v10 = vadd.f32 %v20633_v11, %v7115_v20  ;;  %v7924_v11 = vand.u32 4294901760, %v16201_v48 }
 0xccd   :  { %v7116_v33 = vadd.f32 %v20634_v61, %v7114_v39 }
 0xcce   :  { %v7119_v58 = vmul.f32 0.7978846, %v7117_v10  ;;  %v8026_v20 = vsub.f32 %v16201_v48, %v7924_v11 }
 0xccf   :  { %v7118_v44 = vmul.f32 0.7978846, %v7116_v33 }
 0xcd0   :  { %20979 = vtanh.f32 %v7119_v58  ;;  %v8027_v58 = vand.u32 4294901760, %v8026_v20 }
 0xcd1   :  { %20981 = vtanh.f32 %v7118_v44 }
 0xcda   :  { %v20980_v51 = vpop.eup %20979 }
 0xcdb   :  { %v20982_v54 = vpop.eup %20981  ;;  %v7123_v43 = vadd.f32 1.0, %v20980_v51 }
 0xcdc   :  { %v7122_v15 = vadd.f32 1.0, %v20982_v54  ;;  %v8028_v54 = vsub.f32 %v8026_v20, %v8027_v58 }
 0xcdd   :  { %v7125_v41 = vmul.f32 %v7123_v43, %v7109_v12 }
 0xcde   :  { %v7124_v31 = vmul.f32 %v7122_v15, %v7108_v52  ;;  %v8029_v43 = vand.u32 4294901760, %v8028_v54 }
 0xcdf   :  { %v21902_v53 = vand.u32 4294901760, %v7125_v41 }
 0xce0   :  { %v21904_v9 = vand.u32 4294901760, %v7124_v31 }
 0xce1   :  { %v7241_v62 = vsub.f32 %v7125_v41, %v21902_v53 }
 0xce2   :  { %v7231_v0 = vsub.f32 %v7124_v31, %v21904_v9 }
 0xce3   :  { %v7242_v27 = vand.u32 4294901760, %v7241_v62 }
 0xce4   :  { %18129 = vmatprep.mubr.f32.mxu0 %v7231_v0  ;;  %v7232_v47 = vand.u32 4294901760, %v7231_v0 }
 0xce5   :  { %18130 = vmatmul.mubr.f32.vlgmr.msra.gmra.mrb[12].mxu0 %v7241_v62  ;;  %v7243_v3 = vsub.f32 %v7241_v62, %v7242_v27 }
 0xce6   :  { %19806 = vmatpush3.bf16.msra.mxu0 %v21735_v6  ;;  %18164 = vmatprep.mubr.f32.mxu0 %v7232_v47  ;;  %v7233_v49 = vsub.f32 %v7231_v0, %v7232_v47 }
 0xce7   :  { %19808 = vmatprep.subr.bf16.mxu0 %v21751_v38  ;;  %v7244_v7 = vand.u32 4294901760, %v7243_v3 }
 0xce8   :  { %v7234_v5 = vand.u32 4294901760, %v7233_v49 }
 0xcea   :  { %19810 = vmatpush3.bf16.msra.mxu0 %v21751_v38  ;;  %18059 = vmatprep.mubr.f32.mxu1 %v7234_v5 }
 0xceb   :  { %18060 = vmatmul.mubr.f32.vlgmr.msra.gmra.mrb[14].mxu1 %v7244_v7  ;;  %19812 = vmatprep.subr.bf16.mxu0 %v21766_v36 }
 0xcec   :  { %19742 = vmatpush3.bf16.msra.mxu1 %v21840_v21  ;;  %18094 = vmatprep.mubr.f32.mxu1 %v21904_v9 }
 0xced   :  { %19744 = vmatprep.subr.bf16.mxu1 %v21847_v18 }
 0xcee   :  { %19814 = vmatpush3.bf16.msra.mxu0 %v21766_v36 }
 0xcef   :  { %19816 = vmatprep.subr.bf16.mxu0 %v21778_v46 }
 0xcf0   :  { %19746 = vmatpush3.bf16.msra.mxu1 %v21847_v18 }
 0xcf1   :  { %19748 = vmatprep.subr.bf16.mxu1 %v21853_v37 }
 0xcf2   :  { %19818 = vmatpush3.bf16.msra.mxu0 %v21778_v46 }
 0xcf3   :  { %19820 = vmatprep.subr.bf16.mxu0 %v21803_v28 }
 0xcf4   :  { %19750 = vmatpush3.bf16.msra.mxu1 %v21853_v37 }
 0xcf5   :  { %19752 = vmatprep.subr.bf16.mxu1 %v21859_v45 }
 0xcf6   :  { %19822 = vmatpush3.bf16.msra.mxu0 %v21803_v28 }
 0xcf7   :  { %19824 = vmatprep.subr.bf16.mxu0 %v21817_v4 }
 0xcf8   :  { %19754 = vmatpush3.bf16.msra.mxu1 %v21859_v45 }
 0xcf9   :  { %19756 = vmatprep.subr.bf16.mxu1 %v21865_v32 }
 0xcfa   :  { %19826 = vmatpush3.bf16.msra.mxu0 %v21817_v4 }
 0xcfb   :  { %19828 = vmatprep.subr.bf16.mxu0 %v21823_v8 }
 0xcfc   :  { %19758 = vmatpush3.bf16.msra.mxu1 %v21865_v32 }
 0xcfd   :  { %19760 = vmatprep.subr.bf16.mxu1 %v21871_v34 }
 0xcfe   :  { %19830 = vmatpush3.bf16.msra.mxu0 %v21823_v8 }
 0xcff   :  { %19832 = vmatprep.subr.bf16.mxu0 %v21827_v40 }
 0xd00   :  { %19762 = vmatpush3.bf16.msra.mxu1 %v21871_v34 }
 0xd01   :  { %19764 = vmatprep.subr.bf16.mxu1 %v21877_v59 }
 0xd02   :  { %19834 = vmatpush3.bf16.msra.mxu0 %v21827_v40 }
 0xd03   :  { %19836 = vmatprep.subr.bf16.mxu0 %v21881_v16 }
 0xd04   :  { %19766 = vmatpush3.bf16.msra.mxu1 %v21877_v59 }
 0xd05   :  { %18165 = vmatmul.mubr.f32.vlgmr.msra.gmra.mrb[12].mxu0 %v7242_v27  ;;  %19768 = vmatprep.subr.bf16.mxu1 %v21883_v25 }
 0xd06   :  { %19838 = vmatpush3.bf16.msra.mxu0 %v21881_v16  ;;  %18199 = vmatprep.mubr.f32.mxu0 %v21904_v9 }
 0xd07   :  { %19840 = vmatprep.subr.bf16.mxu0 %v21885_v2 }
 0xd08   :  { %19770 = vmatpush3.bf16.msra.mxu1 %v21883_v25  ;;  %v16198_v25 = vld [vmem:[%s22971_s26 + $0x40] sm:$0xff] }
 0xd0a   :  { %19842 = vmatpush3.bf16.msra.mxu0 %v21885_v2  ;;  %v16199_v2 = vld [vmem:[%s22971_s26 + $0x48] sm:$0xff] }
 0xd0b   :  { %18095 = vmatmul.mubr.f32.vlgmr.msra.gmra.mrb[14].mxu1 %v21902_v53  ;;  %19844 = vmatprep.subr.bf16.mxu0 %v21887_v55 }
 0xd0e   :  { %19846 = vmatpush3.bf16.msra.mxu0 %v21887_v55  ;;  %v7915_v55 = vand.u32 4294901760, %v16198_v25 }
 0xd0f   :  { %19848 = vmatprep.subr.bf16.mxu0 %v21889_v13 }
 0xd12   :  { %19850 = vmatpush3.bf16.msra.mxu0 %v21889_v13  ;;  %v7918_v13 = vand.u32 4294901760, %v16199_v2 }
 0xd13   :  { %19852 = vmatprep.subr.bf16.mxu0 %v21891_v29 }
 0xd16   :  { %19854 = vmatpush3.bf16.msra.mxu0 %v21891_v29  ;;  %v22007_v29 = vpack.c.bf16 %v7918_v13, %v7915_v55 }
 0xd17   :  { %19856 = vmatprep.subr.bf16.mxu0 %v21893_v57 }
 0xd18   :  { %19900 = vmatprep.subr.bf16.mxu1 %v22007_v29 }
 0xd19   :  { %19902 = vmatpush3.bf16.msra.mxu1 %v22007_v29 }
 0xd1a   :  { %19858 = vmatpush3.bf16.msra.mxu0 %v21893_v57  ;;  %v8005_v57 = vsub.f32 %v16198_v25, %v7915_v55 }
 0xd1b   :  { %19860 = vmatprep.subr.bf16.mxu0 %v21895_v30 }
 0xd1c   :  { %v8006_v23 = vand.u32 4294901760, %v8005_v57 }
 0xd1e   :  { %19862 = vmatpush3.bf16.msra.mxu0 %v21895_v30  ;;  %v8012_v30 = vsub.f32 %v16199_v2, %v7918_v13  ;;  %v8007_v26 = vsub.f32 %v8005_v57, %v8006_v23 }
 0xd1f   :  { %19864 = vmatprep.subr.bf16.mxu0 %v21897_v56 }
 0xd20   :  { %v8013_v61 = vand.u32 4294901760, %v8012_v30  ;;  %v8008_v39 = vand.u32 4294901760, %v8007_v26  ;;  %v19915_v15 = vpack.c.bf16 %v8012_v30, %v8005_v57  ;;  %v16206_v26 = vld [vmem:[%s22972_s22 + $0x50] sm:$0xff] }
 0xd22   :  { %19866 = vmatpush3.bf16.msra.mxu0 %v21897_v56  ;;  %v16200_v56 = vld [vmem:[%s22971_s26 + $0x50] sm:$0xff]  ;;  %v8014_v35 = vsub.f32 %v8012_v30, %v8013_v61  ;;  %v22021_v31 = vpack.c.bf16 %v8013_v61, %v8006_v23 }
 0xd23   :  { %19868 = vmatprep.subr.bf16.mxu0 %v21735_v6  ;;  %v7921_v60 = vand.u32 4294901760, %v16200_v56 }
 0xd24   :  { %v8015_v10 = vand.u32 4294901760, %v8014_v35  ;;  %v16207_v35 = vld [vmem:[%s22972_s22 + $0x58] sm:$0xff] }
 0xd25   :  { %18200 = vmatmul.mubr.f32.vlgmr.msra.gmra.mrb[12].mxu0 %v21902_v53  ;;  %v22017_v14 = vpack.c.bf16 %v7924_v11, %v7921_v60  ;;  %v8019_v19 = vsub.f32 %v16200_v56, %v7921_v60  ;;  %v16204_v60 = vld [vmem:[%s22972_s22 + $0x40] sm:$0xff]  ;;  %v16205_v11 = vld [vmem:[%s22972_s22 + $0x48] sm:$0xff] }
 0xd26   :  { %19870 = vmatpush3.bf16.msra.mxu0 %v21735_v6  ;;  %18234 = vmatprep.mubr.f32.mxu0 %v21904_v9  ;;  %v19907_v44 = vpack.c.bf16 %v8015_v10, %v8008_v39  ;;  %v8456_v23 = vand.u32 4294901760, %v16204_v60  ;;  %v8459_v61 = vand.u32 4294901760, %v16205_v11 }
 0xd27   :  { %19872 = vmatprep.subr.bf16.mxu0 %v21751_v38  ;;  %19904 = vmatprep.subr.bf16.mxu1 %v22017_v14  ;;  %v8020_v33 = vand.u32 4294901760, %v8019_v19  ;;  %v19919_v41 = vpack.c.bf16 %v8026_v20, %v8019_v19  ;;  %v8465_v20 = vand.u32 4294901760, %v16207_v35 }
 0xd28   :  { %19906 = vmatpush3.bf16.msra.mxu1 %v22017_v14  ;;  %v8546_v39 = vsub.f32 %v16204_v60, %v8456_v23  ;;  %v8553_v10 = vsub.f32 %v16205_v11, %v8459_v61  ;;  %v22092_v54 = vpack.c.bf16 %v8459_v61, %v8456_v23 }
 0xd29   :  { %v8021_v51 = vsub.f32 %v8019_v19, %v8020_v33  ;;  %19908 = vmatprep.subr.bf16.mxu1 %v19907_v44  ;;  %v8462_v19 = vand.u32 4294901760, %v16206_v26 }
 0xd2a   :  { %19874 = vmatpush3.bf16.msra.mxu0 %v21751_v38 }
 0xd2b   :  { %19876 = vmatprep.subr.bf16.mxu0 %v21766_v36  ;;  %v8022_v12 = vand.u32 4294901760, %v8021_v51  ;;  %v8567_v51 = vsub.f32 %v16207_v35, %v8465_v20 }
 0xd2d   :  { %v19911_v52 = vpack.c.bf16 %v8029_v43, %v8022_v12 }
 0xd2e   :  { %19878 = vmatpush3.bf16.msra.mxu0 %v21766_v36  ;;  %v16193_v36 = vld [vmem:[%s22941_s17] ss:$0 sm:$0xff] }
 0xd2f   :  { %19880 = vmatprep.subr.bf16.mxu0 %v21778_v46 }
 0xd32   :  { %19882 = vmatpush3.bf16.msra.mxu0 %v21778_v46 }
 0xd33   :  { %19884 = vmatprep.subr.bf16.mxu0 %v21803_v28 }
 0xd36   :  { %19886 = vmatpush3.bf16.msra.mxu0 %v21803_v28 }
 0xd37   :  { %19888 = vmatprep.subr.bf16.mxu0 %v21817_v4 }
 0xd3a   :  { %19890 = vmatpush3.bf16.msra.mxu0 %v21817_v4 }
 0xd3b   :  { %19892 = vmatprep.subr.bf16.mxu0 %v21823_v8 }
 0xd3e   :  { %19894 = vmatpush3.bf16.msra.mxu0 %v21823_v8 }
 0xd3f   :  { %19896 = vmatprep.subr.bf16.mxu0 %v21827_v40 }
 0xd42   :  { %19898 = vmatpush3.bf16.msra.mxu0 %v21827_v40 }
 0xd45   :  { %18235 = vmatmul.mubr.f32.vlgmr.msra.gmra.mrb[12].mxu0 %v21902_v53  ;;  %v22023_v53 = vpack.c.bf16 %v8027_v58, %v8020_v33  ;;  %v8547_v33 = vand.u32 4294901760, %v8546_v39  ;;  %v8554_v58 = vand.u32 4294901760, %v8553_v10 }
 0xd47   :  { %v8548_v12 = vsub.f32 %v8546_v39, %v8547_v33  ;;  %v8555_v43 = vsub.f32 %v8553_v10, %v8554_v58 }
 0xdde   :  { %v18096_v6 = vpop.f32.mrb[14].mxu1 }
 0xddf   :  { %v7397_v38 = vpop.f32.mrb[15].mxu1  ;;  %v20635_v46 = vadd.f32 %v18096_v6, %v16193_v36 }
 0xde0   :  { %v20637_v28 = vadd.f32 %v16193_v36, %v7397_v38 }
 0xe18   :  { %v18236_v21 = vpop.f32.mrb[12].mxu0 }
 0xe19   :  { %v20636_v4 = vadd.f32 %v20635_v46, %v18236_v21  ;;  %v7823_v18 = vpop.f32.mrb[13].mxu0 }
 0xe1a   :  { %v20638_v37 = vadd.f32 %v20637_v28, %v7823_v18  ;;  %v16196_v18 = vld [vmem:[%s22973_s27 + $0x1] ss:$0 sm:$0xff] }
 0xe1b   :  { %v21980_v8 = vadd.f32 %v20636_v4, %v21639_v17 }
 0xe1c   :  { %v21983_v45 = vadd.f32 %v20638_v37, %v21641_v50 }
 0xe1d   :  { %v7842_v40 = vsel %vm71_vm0, %v21980_v8, 0.0 }
 0xe1e   :  { %7843 = vadd.xlane.f32.xlu1 %v7842_v40  ;;  %v7839_v32 = vsel %vm71_vm0, %v21983_v45, 0.0 }
 0xe1f   :  { %7840 = vadd.xlane.f32.xlu0 %v7839_v32 }
 0xeab   :  { %v7844_v34 = vpop.xlane.xlu1 %7843 }
 0xeac   :  { %v7846_v63 = vmul.f32 0.03125, %v7844_v34  ;;  %v7841_v59 = vpop.xlane.xlu0 %7840  ;;  %v16197_v34 = vld [vmem:[%s22974_s29 + $0x1] ss:$0 sm:$0xff] }
 0xead   :  { %v7845_v1 = vmul.f32 0.03125, %v7841_v59 }
 0xeae   :  { %v21990_v42 = vsub.f32 %v21980_v8, %v7846_v63 }
 0xeaf   :  { %v21993_v17 = vsub.f32 %v21983_v45, %v7845_v1 }
 0xeb0   :  { %v7850_v50 = vmul.f32 %v21990_v42, %v21990_v42  ;;  %v7866_v37 = vmul.f32 %v16196_v18, %v21990_v42 }
 0xeb1   :  { %v7849_v16 = vmul.f32 %v21993_v17, %v21993_v17  ;;  %v7865_v32 = vmul.f32 %v16196_v18, %v21993_v17 }
 0xeb2   :  { %v7854_v22 = vsel %vm71_vm0, %v7850_v50, 0.0 }
 0xeb3   :  { %7855 = vadd.xlane.f32.xlu1 %v7854_v22  ;;  %v7851_v24 = vsel %vm71_vm0, %v7849_v16, 0.0 }
 0xeb4   :  { %7852 = vadd.xlane.f32.xlu0 %v7851_v24 }
 0xf40   :  { %v7856_v9 = vpop.xlane.xlu1 %7855 }
 0xf41   :  { %v7858_v62 = vmul.f32 0.032258064, %v7856_v9  ;;  %v7853_v0 = vpop.xlane.xlu0 %7852 }
 0xf42   :  { %v7857_v27 = vmul.f32 0.032258064, %v7853_v0 }
 0xf43   :  { %20983 = vrsqrt.f32 %v7858_v62  ;;  %vm7876_vm10 = vcmp.eq.f32.partialorder %v7858_v62, inf  ;;  %v7879_v5 = vand.u32 2147483648, %v7858_v62  ;;  %vm7878_vm11 = vcmp.eq.f32.partialorder %v7858_v62, 0.0 }
 0xf44   :  { %20985 = vrsqrt.f32 %v7857_v27  ;;  %vm7869_vm12 = vcmp.eq.f32.partialorder %v7857_v27, inf  ;;  %v7872_v38 = vand.u32 2147483648, %v7857_v27  ;;  %vm7871_vm13 = vcmp.eq.f32.partialorder %v7857_v27, 0.0 }
 0xf4d   :  { %v20984_v47 = vpop.eup %20983 }
 0xf4e   :  { %v20986_v3 = vpop.eup %20985  ;;  %v7875_v49 = vmul.f32 %v20984_v47, %v7858_v62  ;;  %v19963_v47 = vpack.c.bf16 %v8553_v10, %v8546_v39 }
 0xf4f   :  { %v7868_v7 = vmul.f32 %v20986_v3, %v7857_v27 }
 0xf50   :  { %v7877_v6 = vsel %vm7876_vm10, %v7858_v62, %v7875_v49  ;;  %v19979_v49 = vpack.c.bf16 %v8554_v58, %v8547_v33  ;;  %v16203_v33 = vld [vmem:[%s22930_s5 + $0x2] ss:$0 sm:$0xff] }
 0xf51   :  { %v7880_v36 = vsel %vm7878_vm11, %v7879_v5, %v7877_v6  ;;  %v7870_v46 = vsel %vm7869_vm12, %v7857_v27, %v7868_v7  ;;  %v16210_v5 = vld [vmem:[%s22929_s8 + $0x40] sm:$0xff]  ;;  %v16211_v7 = vld [vmem:[%s22929_s8 + $0x48] sm:$0xff] }
 0xf52   :  { %v7882_v28 = vadd.f32 1e-06, %v7880_v36  ;;  %v7873_v21 = vsel %vm7871_vm13, %v7872_v38, %v7870_v46  ;;  %v8997_v38 = vand.u32 4294901760, %v16210_v5  ;;  %v9000_v36 = vand.u32 4294901760, %v16211_v7  ;;  %v16212_v46 = vld [vmem:[%s22929_s8 + $0x50] sm:$0xff] }
 0xf53   :  { %v7881_v4 = vadd.f32 1e-06, %v7873_v21  ;;  %v9003_v21 = vand.u32 4294901760, %v16212_v46 }
 0xf54   :  { %20987 = vrcp.f32 %v7882_v28  ;;  %v16213_v28 = vld [vmem:[%s22929_s8 + $0x58] sm:$0xff]  ;;  %v9087_v18 = vsub.f32 %v16210_v5, %v8997_v38 }
 0xf55   :  { %20989 = vrcp.f32 %v7881_v4  ;;  %v9006_v4 = vand.u32 4294901760, %v16213_v28 }
 0xf5e   :  { %v20988_v40 = vpop.eup %20987 }
 0xf5f   :  { %v20990_v63 = vpop.eup %20989  ;;  %v7886_v59 = vmul.f32 %v20988_v40, %v7866_v37  ;;  %v9094_v37 = vsub.f32 %v16211_v7, %v9000_v36  ;;  %v9088_v40 = vand.u32 4294901760, %v9087_v18 }
 0xf60   :  { %v7884_v1 = vmul.f32 %v20990_v63, %v7865_v32  ;;  %v9108_v63 = vsub.f32 %v16213_v28, %v9006_v4 }
 0xf61   :  { %v7894_v50 = vadd.f32 %v16197_v34, %v7886_v59  ;;  %v9095_v32 = vand.u32 4294901760, %v9094_v37  ;;  %v19995_v59 = vpack.c.bf16 %v9000_v36, %v8997_v38 }
 0xf62   :  { %v7893_v16 = vadd.f32 %v16197_v34, %v7884_v1  ;;  %v9101_v34 = vsub.f32 %v16212_v46, %v9003_v21  ;;  %v9089_v1 = vsub.f32 %v9087_v18, %v9088_v40 }
 0xf63   :  { %v7912_v22 = vsel %vm71_vm0, %v7894_v50, 0  ;;  %v9096_v50 = vsub.f32 %v9094_v37, %v9095_v32  ;;  %v20027_v39 = vpack.c.bf16 %v9095_v32, %v9088_v40 }
 0xf64   :  { %v22034_v24 = vand.u32 4294901760, %v7912_v22  ;;  %v7909_v25 = vsel %vm71_vm0, %v7893_v16, 0  ;;  %v9102_v16 = vand.u32 4294901760, %v9101_v34 }
 0xf65   :  { %v22037_v2 = vand.u32 4294901760, %v7909_v25 }
 0xf66   :  { %v22040_v42 = vsub.f32 %v7912_v22, %v22034_v24  ;;  %v9109_v22 = vand.u32 4294901760, %v9108_v63  ;;  %v9103_v60 = vsub.f32 %v9101_v34, %v9102_v16 }
 0xf67   :  { %v22043_v17 = vsub.f32 %v7909_v25, %v22037_v2  ;;  %v19999_v25 = vpack.c.bf16 %v9006_v4, %v9003_v21 }
 0xf68   :  { %v22046_v55 = vand.u32 4294901760, %v22040_v42  ;;  %v9110_v11 = vsub.f32 %v9108_v63, %v9109_v22  ;;  %v9104_v61 = vand.u32 4294901760, %v9103_v60  ;;  %v20031_v10 = vpack.c.bf16 %v9109_v22, %v9102_v16  ;;  %v16219_v16 = vld [vmem:[%s22971_s26 + $0x68] sm:$0xff] }
 0xf69   :  { %v22049_v13 = vand.u32 4294901760, %v22043_v17 }
 0xf6a   :  { %v7996_v57 = vsub.f32 %v22040_v42, %v22046_v55 }
 0xf6b   :  { %v7986_v30 = vsub.f32 %v22043_v17, %v22049_v13 }
 0xf6c   :  { %v22057_v48 = vand.u32 4294901760, %v7996_v57  ;;  %v9090_v57 = vand.u32 4294901760, %v9089_v1 }
 0xf6d   :  { %v22055_v56 = vand.u32 4294901760, %v7986_v30  ;;  %v9097_v30 = vand.u32 4294901760, %v9096_v50  ;;  %v16218_v50 = vld [vmem:[%s22971_s26 + $0x60] sm:$0xff] }
 0xf6e   :  { %v10589_v22 = vand.u32 4294901760, %v16218_v50 }
 0xf6f   :  { %18245 = vmatprep.mubr.f32.mxu1 %v22055_v56  ;;  %v20003_v23 = vpack.c.bf16 %v9097_v30, %v9090_v57  ;;  %v16220_v57 = vld [vmem:[%s22971_s26 + $0x70] sm:$0xff]  ;;  %v16221_v30 = vld [vmem:[%s22971_s26 + $0x78] sm:$0xff] }
 0xf70   :  { %18246 = vmatmul.mubr.f32.vlgmr.msra.gmra.mrb[16].mxu1 %v22057_v48  ;;  %v22178_v60 = vsub.f32 %v16218_v50, %v10589_v22 }
 0xf71   :  { %19910 = vmatpush3.bf16.msra.mxu1 %v19907_v44  ;;  %18256 = vmatprep.mubr.f32.mxu1 %v22037_v2  ;;  %v8560_v44 = vsub.f32 %v16206_v26, %v8462_v19  ;;  %v9111_v26 = vand.u32 4294901760, %v9110_v11  ;;  %v10595_v11 = vand.u32 4294901760, %v16220_v57 }
 0xf72   :  { %19912 = vmatprep.subr.bf16.mxu1 %v19911_v52 }
 0xf73   :  { %v19967_v3 = vpack.c.bf16 %v8567_v51, %v8560_v44  ;;  %v20007_v35 = vpack.c.bf16 %v9111_v26, %v9104_v61  ;;  %v16215_v26 = vld [vmem:[%s22932_s9 + $0x2] ss:$0 sm:$0xff] }
 0xf75   :  { %19914 = vmatpush3.bf16.msra.mxu1 %v19911_v52  ;;  %v8561_v52 = vand.u32 4294901760, %v8560_v44 }
 0xf76   :  { %19916 = vmatprep.subr.bf16.mxu1 %v19915_v15 }
 0xf77   :  { %v8562_v9 = vsub.f32 %v8560_v44, %v8561_v52 }
 0xf78   :  { %18257 = vmatmul.mubr.f32.vlgmr.msra.gmra.mrb[16].mxu1 %v22034_v24 }
 0xf79   :  { %19918 = vmatpush3.bf16.msra.mxu1 %v19915_v15  ;;  %18267 = vmatprep.mubr.f32.mxu1 %v22043_v17  ;;  %v8568_v15 = vand.u32 4294901760, %v8567_v51  ;;  %v8563_v0 = vand.u32 4294901760, %v8562_v9  ;;  %v16209_v9 = vld [vmem:[%s22931_s7 + $0x2] ss:$0 sm:$0xff] }
 0xf7a   :  { %19920 = vmatprep.subr.bf16.mxu1 %v19919_v41 }
 0xf7b   :  { %v19983_v6 = vpack.c.bf16 %v8568_v15, %v8561_v52 }
 0xf7d   :  { %19922 = vmatpush3.bf16.msra.mxu1 %v19919_v41  ;;  %v22096_v41 = vpack.c.bf16 %v8465_v20, %v8462_v19  ;;  %v20011_v19 = vpack.c.bf16 %v9094_v37, %v9087_v18  ;;  %v20015_v20 = vpack.c.bf16 %v9108_v63, %v9101_v34 }
 0xf7e   :  { %19924 = vmatprep.subr.bf16.mxu1 %v22007_v29 }
 0xf80   :  { %18268 = vmatmul.mubr.f32.vlgmr.msra.gmra.mrb[16].mxu1 %v22040_v42 }
 0xf81   :  { %19926 = vmatpush3.bf16.msra.mxu1 %v22007_v29  ;;  %18278 = vmatprep.mubr.f32.mxu1 %v22049_v13 }
 0xf82   :  { %19928 = vmatprep.subr.bf16.mxu1 %v22017_v14 }
 0xf85   :  { %19930 = vmatpush3.bf16.msra.mxu1 %v22017_v14 }
 0xf86   :  { %19932 = vmatprep.subr.bf16.mxu1 %v22021_v31 }
 0xf88   :  { %18279 = vmatmul.mubr.f32.vlgmr.msra.gmra.mrb[16].mxu1 %v22046_v55 }
 0xf89   :  { %19934 = vmatpush3.bf16.msra.mxu1 %v22021_v31  ;;  %18289 = vmatprep.mubr.f32.mxu1 %v22037_v2  ;;  %v8549_v31 = vand.u32 4294901760, %v8548_v12 }
 0xf8a   :  { %19936 = vmatprep.subr.bf16.mxu1 %v22023_v53 }
 0xf8d   :  { %19938 = vmatpush3.bf16.msra.mxu1 %v22023_v53  ;;  %v8556_v53 = vand.u32 4294901760, %v8555_v43 }
 0xf8e   :  { %19940 = vmatprep.subr.bf16.mxu1 %v22007_v29 }
 0xf8f   :  { %v19955_v62 = vpack.c.bf16 %v8556_v53, %v8549_v31 }
 0xf90   :  { %18290 = vmatmul.mubr.f32.vlgmr.msra.gmra.mrb[16].mxu1 %v22034_v24 }
 0xf91   :  { %19942 = vmatpush3.bf16.msra.mxu1 %v22007_v29  ;;  %18300 = vmatprep.mubr.f32.mxu1 %v22037_v2  ;;  %v8569_v29 = vsub.f32 %v8567_v51, %v8568_v15 }
 0xf92   :  { %19944 = vmatprep.subr.bf16.mxu1 %v22017_v14 }
 0xf93   :  { %v8570_v27 = vand.u32 4294901760, %v8569_v29 }
 0xf95   :  { %19946 = vmatpush3.bf16.msra.mxu1 %v22017_v14  ;;  %v19959_v14 = vpack.c.bf16 %v8570_v27, %v8563_v0 }
 0xf96   :  { %19948 = vmatprep.subr.bf16.mxu1 %v22092_v54 }
 0xf98   :  { %18301 = vmatmul.mubr.f32.vlgmr.msra.gmra.mrb[16].mxu1 %v22034_v24 }
 0xf99   :  { %19950 = vmatpush3.bf16.msra.mxu1 %v22092_v54  ;;  %18311 = vmatprep.mubr.f32.mxu1 %v22055_v56 }
 0xf9a   :  { %19952 = vmatprep.subr.bf16.mxu1 %v22096_v41 }
 0xf9d   :  { %19954 = vmatpush3.bf16.msra.mxu1 %v22096_v41 }
 0xf9e   :  { %19956 = vmatprep.subr.bf16.mxu1 %v19955_v62 }
 0xfa0   :  { %18312 = vmatmul.mubr.f32.vlgmr.msra.gmra.mrb[18].mxu1 %v22057_v48 }
 0xfa1   :  { %19958 = vmatpush3.bf16.msra.mxu1 %v19955_v62  ;;  %18322 = vmatprep.mubr.f32.mxu1 %v22037_v2 }
 0xfa2   :  { %19960 = vmatprep.subr.bf16.mxu1 %v19959_v14 }
 0xfa5   :  { %19962 = vmatpush3.bf16.msra.mxu1 %v19959_v14 }
 0xfa6   :  { %19964 = vmatprep.subr.bf16.mxu1 %v19963_v47 }
 0xfa8   :  { %18323 = vmatmul.mubr.f32.vlgmr.msra.gmra.mrb[18].mxu1 %v22034_v24 }
 0xfa9   :  { %19966 = vmatpush3.bf16.msra.mxu1 %v19963_v47  ;;  %18333 = vmatprep.mubr.f32.mxu1 %v22043_v17 }
 0xfaa   :  { %19968 = vmatprep.subr.bf16.mxu1 %v19967_v3 }
 0xfad   :  { %19970 = vmatpush3.bf16.msra.mxu1 %v19967_v3 }
 0xfae   :  { %19972 = vmatprep.subr.bf16.mxu1 %v22092_v54 }
 0xfb0   :  { %18334 = vmatmul.mubr.f32.vlgmr.msra.gmra.mrb[18].mxu1 %v22040_v42 }
 0xfb1   :  { %19974 = vmatpush3.bf16.msra.mxu1 %v22092_v54  ;;  %18344 = vmatprep.mubr.f32.mxu1 %v22049_v13 }
 0xfb2   :  { %19976 = vmatprep.subr.bf16.mxu1 %v22096_v41 }
 0xfb5   :  { %19978 = vmatpush3.bf16.msra.mxu1 %v22096_v41 }
 0xfb6   :  { %19980 = vmatprep.subr.bf16.mxu1 %v19979_v49 }
 0xfb8   :  { %18345 = vmatmul.mubr.f32.vlgmr.msra.gmra.mrb[18].mxu1 %v22046_v55 }
 0xfb9   :  { %19982 = vmatpush3.bf16.msra.mxu1 %v19979_v49  ;;  %18355 = vmatprep.mubr.f32.mxu1 %v22037_v2 }
 0xfba   :  { %19984 = vmatprep.subr.bf16.mxu1 %v19983_v6 }
 0xfbd   :  { %19986 = vmatpush3.bf16.msra.mxu1 %v19983_v6 }
 0xfbe   :  { %19988 = vmatprep.subr.bf16.mxu1 %v22092_v54 }
 0xfc0   :  { %18356 = vmatmul.mubr.f32.vlgmr.msra.gmra.mrb[18].mxu1 %v22034_v24 }
 0xfc1   :  { %19990 = vmatpush3.bf16.msra.mxu1 %v22092_v54  ;;  %18366 = vmatprep.mubr.f32.mxu1 %v22037_v2 }
 0xfc2   :  { %19992 = vmatprep.subr.bf16.mxu1 %v22096_v41 }
 0xfc5   :  { %19994 = vmatpush3.bf16.msra.mxu1 %v22096_v41 }
 0xfc6   :  { %19996 = vmatprep.subr.bf16.mxu1 %v19995_v59 }
 0xfc8   :  { %18367 = vmatmul.mubr.f32.vlgmr.msra.gmra.mrb[18].mxu1 %v22034_v24 }
 0xfc9   :  { %19998 = vmatpush3.bf16.msra.mxu1 %v19995_v59  ;;  %18377 = vmatprep.mubr.f32.mxu1 %v22055_v56 }
 0xfca   :  { %20000 = vmatprep.subr.bf16.mxu1 %v19999_v25 }
 0xfcd   :  { %20002 = vmatpush3.bf16.msra.mxu1 %v19999_v25 }
 0xfce   :  { %20004 = vmatprep.subr.bf16.mxu1 %v20003_v23 }
 0xfd0   :  { %18378 = vmatmul.mubr.f32.vlgmr.msra.gmra.mrb[20].mxu1 %v22057_v48 }
 0xfd1   :  { %20006 = vmatpush3.bf16.msra.mxu1 %v20003_v23  ;;  %18388 = vmatprep.mubr.f32.mxu1 %v22037_v2  ;;  %v10598_v23 = vand.u32 4294901760, %v16221_v30 }
 0xfd2   :  { %20008 = vmatprep.subr.bf16.mxu1 %v20007_v35 }
 0xfd5   :  { %20010 = vmatpush3.bf16.msra.mxu1 %v20007_v35  ;;  %v10680_v35 = vand.u32 4294901760, %v22178_v60 }
 0xfd6   :  { %20012 = vmatprep.subr.bf16.mxu1 %v20011_v19 }
 0xfd8   :  { %18389 = vmatmul.mubr.f32.vlgmr.msra.gmra.mrb[20].mxu1 %v22034_v24 }
 0xfd9   :  { %20014 = vmatpush3.bf16.msra.mxu1 %v20011_v19  ;;  %18399 = vmatprep.mubr.f32.mxu1 %v22043_v17 }
 0xfda   :  { %20016 = vmatprep.subr.bf16.mxu1 %v20015_v20 }
 0xfdd   :  { %20018 = vmatpush3.bf16.msra.mxu1 %v20015_v20 }
 0xfde   :  { %20020 = vmatprep.subr.bf16.mxu1 %v19995_v59 }
 0xfe0   :  { %18400 = vmatmul.mubr.f32.vlgmr.msra.gmra.mrb[20].mxu1 %v22040_v42 }
 0xfe1   :  { %20022 = vmatpush3.bf16.msra.mxu1 %v19995_v59  ;;  %18410 = vmatprep.mubr.f32.mxu1 %v22049_v13 }
 0xfe2   :  { %20024 = vmatprep.subr.bf16.mxu1 %v19999_v25 }
 0xfe5   :  { %20026 = vmatpush3.bf16.msra.mxu1 %v19999_v25 }
 0xfe6   :  { %20028 = vmatprep.subr.bf16.mxu1 %v20027_v39 }
 0xfe8   :  { %18411 = vmatmul.mubr.f32.vlgmr.msra.gmra.mrb[20].mxu1 %v22046_v55 }
 0xfe9   :  { %20030 = vmatpush3.bf16.msra.mxu1 %v20027_v39  ;;  %18421 = vmatprep.mubr.f32.mxu1 %v22037_v2  ;;  %v22189_v39 = vsub.f32 %v16220_v57, %v10595_v11 }
 0xfea   :  { %20032 = vmatprep.subr.bf16.mxu1 %v20031_v10 }
 0xfed   :  { %20034 = vmatpush3.bf16.msra.mxu1 %v20031_v10  ;;  %v22191_v10 = vsub.f32 %v16221_v30, %v10598_v23 }
 0xfee   :  { %20036 = vmatprep.subr.bf16.mxu1 %v19995_v59 }
 0xff0   :  { %18422 = vmatmul.mubr.f32.vlgmr.msra.gmra.mrb[20].mxu1 %v22034_v24 }
 0xff1   :  { %20038 = vmatpush3.bf16.msra.mxu1 %v19995_v59  ;;  %18432 = vmatprep.mubr.f32.mxu1 %v22037_v2 }
 0xff2   :  { %20040 = vmatprep.subr.bf16.mxu1 %v19999_v25 }
 0xff5   :  { %20042 = vmatpush3.bf16.msra.mxu1 %v19999_v25  ;;  %v10592_v25 = vand.u32 4294901760, %v16219_v16 }
 0xff7   :  { %v22180_v61 = vsub.f32 %v16219_v16, %v10592_v25  ;;  %v22186_v19 = vpack.c.bf16 %v10592_v25, %v10589_v22  ;;  %v16232_v16 = vld [vmem:[%s22929_s8 + $0x70] sm:$0xff]  ;;  %v16233_v22 = vld [vmem:[%s22929_s8 + $0x78] sm:$0xff] }
 0xff8   :  { %18433 = vmatmul.mubr.f32.vlgmr.msra.gmra.mrb[20].mxu1 %v22034_v24  ;;  %v11677_v25 = vand.u32 4294901760, %v16232_v16  ;;  %v11680_v57 = vand.u32 4294901760, %v16233_v22 }
 0xff9   :  { %v10687_v20 = vand.u32 4294901760, %v22180_v61 }
0x106b   :  { %v18302_v58 = vpop.f32.mrb[16].mxu1 }
0x106c   :  { %v8432_v44 = vpop.f32.mrb[17].mxu1  ;;  %v20639_v31 = vadd.f32 %v18302_v58, %v16203_v33 }
0x106d   :  { %v20640_v51 = vadd.f32 %v16203_v33, %v8432_v44 }
0x106e   :  { %v9528_v53 = vsel %vm1753_vm5, %v20639_v31, 0 }
0x106f   :  { %v9525_v54 = vsel %vm1753_vm5, %v20640_v51, 0  ;;  %v22158_v29 = vand.u32 4294901760, %v9528_v53 }
0x1070   :  { %v22151_v12 = vand.u32 4294901760, %v9525_v54 }
0x1071   :  { %v9614_v47 = vsub.f32 %v9528_v53, %v22158_v29 }
0x1072   :  { %v9604_v43 = vsub.f32 %v9525_v54, %v22151_v12  ;;  %v10681_v54 = vsub.f32 %v22178_v60, %v10680_v35 }
0x1073   :  { %v9615_v38 = vand.u32 4294901760, %v9614_v47 }
0x1074   :  { %v9605_v52 = vand.u32 4294901760, %v9604_v43 }
0x1075   :  { %v9616_v37 = vsub.f32 %v9614_v47, %v9615_v38 }
0x1076   :  { %v9606_v15 = vsub.f32 %v9604_v43, %v9605_v52 }
0x1077   :  { %v9617_v59 = vand.u32 4294901760, %v9616_v37  ;;  %v20107_v37 = vpack.c.bf16 %v22180_v61, %v22178_v60 }
0x1078   :  { %v9607_v41 = vand.u32 4294901760, %v9606_v15  ;;  %v10694_v15 = vand.u32 4294901760, %v22189_v39 }
0x107a   :  { %18439 = vmatprep.mubr.f32.mxu1 %v9607_v41  ;;  %v10701_v41 = vand.u32 4294901760, %v22191_v10 }
0x109b   :  { %v18368_v62 = vpop.f32.mrb[18].mxu1 }
0x109c   :  { %v20641_v0 = vadd.f32 %v18368_v62, %v16209_v9  ;;  %v8973_v27 = vpop.f32.mrb[19].mxu1  ;;  %v22206_v62 = vpack.c.bf16 %v10598_v23, %v10595_v11 }
0x109d   :  { %v20642_v14 = vadd.f32 %v16209_v9, %v8973_v27 }
0x109e   :  { %v9534_v3 = vsel %vm1753_vm5, %v20641_v0, 0  ;;  %v10682_v0 = vand.u32 4294901760, %v10681_v54 }
0x109f   :  { %v9540_v49 = vand.u32 4294901760, %v9534_v3  ;;  %v9531_v5 = vsel %vm1753_vm5, %v20642_v14, 0 }
0x10a0   :  { %v9537_v7 = vand.u32 4294901760, %v9531_v5 }
0x10a1   :  { %v9632_v6 = vsub.f32 %v9534_v3, %v9540_v49  ;;  %v10702_v3 = vsub.f32 %v22191_v10, %v10701_v41 }
0x10a2   :  { %v20043_v36 = vpack.c.bf16 %v9540_v49, %v9537_v7  ;;  %v9625_v46 = vsub.f32 %v9531_v5, %v9537_v7 }
0x10a3   :  { %v9633_v28 = vand.u32 4294901760, %v9632_v6 }
0x10a4   :  { %v9626_v21 = vand.u32 4294901760, %v9625_v46  ;;  %20044 = vmatprep.subr.bf16.mxu1 %v20043_v36  ;;  %v20051_v4 = vpack.c.bf16 %v9632_v6, %v9625_v46 }
0x10a5   :  { %20046 = vmatpush3.bf16.xpose.msra.mxu1 %v20043_v36  ;;  %v9634_v18 = vsub.f32 %v9632_v6, %v9633_v28 }
0x10a6   :  { %v9627_v40 = vsub.f32 %v9625_v46, %v9626_v21  ;;  %v20059_v32 = vpack.c.bf16 %v9633_v28, %v9626_v21  ;;  %v10703_v21 = vand.u32 4294901760, %v10702_v3  ;;  %v22278_v3 = vld [vmem:[%s22933_s1 + $0x8] sm:$0xff] }
0x10a7   :  { %v9635_v34 = vand.u32 4294901760, %v9634_v18 }
0x10a8   :  { %v9628_v63 = vand.u32 4294901760, %v9627_v40  ;;  %v20111_v40 = vpack.c.bf16 %v22191_v10, %v22189_v39 }
0x10aa   :  { %v20047_v1 = vpack.c.bf16 %v9635_v34, %v9628_v63  ;;  %v16230_v34 = vld [vmem:[%s22929_s8 + $0x60] sm:$0xff]  ;;  %v16231_v63 = vld [vmem:[%s22929_s8 + $0x68] sm:$0xff] }
0x10ab   :  { %v11674_v50 = vand.u32 4294901760, %v16231_v63 }
0x10ac   :  { %18440 = vmatmul.mubr.f32.vlgmr.msra.gmra.mrb[22].mxu1 %v9617_v59  ;;  %20048 = vmatprep.subr.bf16.mxu1 %v20047_v1  ;;  %v20127_v59 = vpack.c.bf16 %v10701_v41, %v10694_v15 }
0x10ad   :  { %20050 = vmatpush3.bf16.xpose.msra.mxu1 %v20047_v1  ;;  %18446 = vmatprep.mubr.f32.mxu1 %v22151_v12  ;;  %v11671_v1 = vand.u32 4294901760, %v16230_v34  ;;  %v11768_v60 = vsub.f32 %v16231_v63, %v11674_v50 }
0x10ae   :  { %20052 = vmatprep.subr.bf16.mxu1 %v20051_v4 }
0x10af   :  { %v11761_v30 = vsub.f32 %v16230_v34, %v11671_v1  ;;  %v11769_v23 = vand.u32 4294901760, %v11768_v60 }
0x10b1   :  { %v11762_v11 = vand.u32 4294901760, %v11761_v30 }
0x10b4   :  { %18447 = vmatmul.mubr.f32.vlgmr.msra.gmra.mrb[22].mxu1 %v22158_v29 }
0x10b5   :  { %20054 = vmatpush3.bf16.xpose.msra.mxu1 %v20051_v4  ;;  %18453 = vmatprep.mubr.f32.mxu1 %v9604_v43 }
0x10b6   :  { %20056 = vmatprep.subr.bf16.mxu1 %v20043_v36 }
0x10bc   :  { %18454 = vmatmul.mubr.f32.vlgmr.msra.gmra.mrb[22].mxu1 %v9614_v47  ;;  %v10695_v47 = vsub.f32 %v22189_v39, %v10694_v15  ;;  %v11770_v39 = vsub.f32 %v11768_v60, %v11769_v23 }
0x10bd   :  { %20058 = vmatpush3.bf16.xpose.msra.mxu1 %v20043_v36  ;;  %18460 = vmatprep.mubr.f32.mxu1 %v9605_v52  ;;  %v10688_v52 = vsub.f32 %v22180_v61, %v10687_v20  ;;  %v11775_v61 = vsub.f32 %v16232_v16, %v11677_v25 }
0x10be   :  { %20060 = vmatprep.subr.bf16.mxu1 %v20059_v32  ;;  %v10696_v28 = vand.u32 4294901760, %v10695_v47 }
0x10bf   :  { %v10689_v14 = vand.u32 4294901760, %v10688_v52  ;;  %v11776_v10 = vand.u32 4294901760, %v11775_v61 }
0x10c0   :  { %v20103_v18 = vpack.c.bf16 %v10703_v21, %v10696_v28  ;;  %v22292_v28 = vld [vmem:[%s22930_s5 + $0x3] ss:$0 sm:$0xff] }
0x10c1   :  { %v20099_v46 = vpack.c.bf16 %v10689_v14, %v10682_v0  ;;  %v11777_v54 = vsub.f32 %v11775_v61, %v11776_v10 }
0x10c3   :  { %v11778_v52 = vand.u32 4294901760, %v11777_v54 }
0x10c4   :  { %18461 = vmatmul.mubr.f32.vlgmr.msra.gmra.mrb[22].mxu1 %v9615_v38 }
0x10c5   :  { %20062 = vmatpush3.bf16.xpose.msra.mxu1 %v20059_v32  ;;  %18467 = vmatprep.mubr.f32.mxu1 %v22151_v12  ;;  %v20123_v32 = vpack.c.bf16 %v10687_v20, %v10680_v35  ;;  %v20187_v35 = vpack.c.bf16 %v11674_v50, %v11671_v1  ;;  %v11763_v20 = vsub.f32 %v11761_v30, %v11762_v11 }
0x10c6   :  { %20064 = vmatprep.subr.bf16.mxu1 %v20043_v36 }
0x10cb   :  { %v18434_v33 = vpop.f32.mrb[20].mxu1 }
0x10cc   :  { %v20643_v58 = vadd.f32 %v18434_v33, %v16215_v26  ;;  %v9514_v44 = vpop.f32.mrb[21].mxu1  ;;  %18468 = vmatmul.mubr.f32.vlgmr.msra.gmra.mrb[22].mxu1 %v22158_v29 }
0x10cd   :  { %v20644_v51 = vadd.f32 %v16215_v26, %v9514_v44  ;;  %20066 = vmatpush3.bf16.xpose.msra.mxu1 %v20043_v36  ;;  %18474 = vmatprep.mubr.f32.mxu1 %v22151_v12  ;;  %v11782_v26 = vsub.f32 %v16233_v22, %v11680_v57  ;;  %v11764_v44 = vand.u32 4294901760, %v11763_v20 }
0x10ce   :  { %v10074_v43 = vand.u32 4294901760, %v20643_v58  ;;  %20092 = vmatprep.subr.bf16.mxu1 %v22186_v19 }
0x10cf   :  { %v10071_v31 = vand.u32 4294901760, %v20644_v51  ;;  %v11783_v33 = vand.u32 4294901760, %v11782_v26 }
0x10d0   :  { %v10166_v53 = vsub.f32 %v20643_v58, %v10074_v43  ;;  %v20191_v58 = vpack.c.bf16 %v11680_v57, %v11677_v25 }
0x10d1   :  { %v22204_v9 = vpack.c.bf16 %v10074_v43, %v10071_v31  ;;  %v10159_v12 = vsub.f32 %v20644_v51, %v10071_v31  ;;  %v11771_v51 = vand.u32 4294901760, %v11770_v39  ;;  %v11784_v43 = vsub.f32 %v11782_v26, %v11783_v33 }
0x10d2   :  { %v10167_v27 = vand.u32 4294901760, %v10166_v53  ;;  %v20203_v31 = vpack.c.bf16 %v11768_v60, %v11761_v30 }
0x10d3   :  { %v10160_v49 = vand.u32 4294901760, %v10159_v12  ;;  %20068 = vmatprep.subr.bf16.mxu0 %v22204_v9  ;;  %v22211_v5 = vpack.c.bf16 %v10166_v53, %v10159_v12  ;;  %v11785_v15 = vand.u32 4294901760, %v11784_v43 }
0x10d4   :  { %18475 = vmatmul.mubr.f32.vlgmr.msra.gmra.mrb[22].mxu1 %v22158_v29  ;;  %20070 = vmatpush3.bf16.msra.mxu0 %v22204_v9  ;;  %v10168_v7 = vsub.f32 %v10166_v53, %v10167_v27  ;;  %v20207_v53 = vpack.c.bf16 %v11782_v26, %v11775_v61 }
0x10d5   :  { %20094 = vmatpush3.bf16.msra.mxu1 %v22186_v19  ;;  %18527 = vmatprep.mubr.f32.mxu1 %v22055_v56  ;;  %v10161_v6 = vsub.f32 %v10159_v12, %v10160_v49  ;;  %v22217_v38 = vpack.c.bf16 %v10167_v27, %v10160_v49  ;;  %v20199_v41 = vpack.c.bf16 %v11785_v15, %v11778_v52 }
0x10d6   :  { %20096 = vmatprep.subr.bf16.mxu1 %v22206_v62  ;;  %v10169_v36 = vand.u32 4294901760, %v10168_v7  ;;  %v20219_v12 = vpack.c.bf16 %v11769_v23, %v11762_v11  ;;  %v22284_v7 = vld [vmem:[%s22933_s1] sm:$0xff] }
0x10d7   :  { %v10162_v4 = vand.u32 4294901760, %v10161_v6 }
0x10d9   :  { %20098 = vmatpush3.bf16.msra.mxu1 %v22206_v62  ;;  %v22221_v29 = vpack.c.bf16 %v10169_v36, %v10162_v4 }
0x10da   :  { %20100 = vmatprep.subr.bf16.mxu1 %v20099_v46 }
0x10db   :  { %20072 = vmatprep.subr.bf16.mxu0 %v22221_v29 }
0x10dc   :  { %18528 = vmatmul.mubr.f32.vlgmr.msra.gmra.mrb[24].mxu1 %v22057_v48 }
0x10dd   :  { %20102 = vmatpush3.bf16.msra.mxu1 %v20099_v46  ;;  %18538 = vmatprep.mubr.f32.mxu1 %v22037_v2 }
0x10de   :  { %20104 = vmatprep.subr.bf16.mxu1 %v20103_v18 }
0x10e1   :  { %20106 = vmatpush3.bf16.msra.mxu1 %v20103_v18 }
0x10e2   :  { %20108 = vmatprep.subr.bf16.mxu1 %v20107_v37 }
0x10e4   :  { %18539 = vmatmul.mubr.f32.vlgmr.msra.gmra.mrb[24].mxu1 %v22034_v24 }
0x10e5   :  { %20110 = vmatpush3.bf16.msra.mxu1 %v20107_v37  ;;  %18549 = vmatprep.mubr.f32.mxu1 %v22043_v17  ;;  %v16235_v37 = vld [vmem:[%s22932_s9 + $0x3] ss:$0 sm:$0xff] }
0x10e6   :  { %20112 = vmatprep.subr.bf16.mxu1 %v20111_v40 }
0x10e9   :  { %20114 = vmatpush3.bf16.msra.mxu1 %v20111_v40 }
0x10ea   :  { %20116 = vmatprep.subr.bf16.mxu1 %v22186_v19 }
0x10ec   :  { %18550 = vmatmul.mubr.f32.vlgmr.msra.gmra.mrb[24].mxu1 %v22040_v42 }
0x10ed   :  { %20118 = vmatpush3.bf16.msra.mxu1 %v22186_v19  ;;  %18560 = vmatprep.mubr.f32.mxu1 %v22049_v13 }
0x10ee   :  { %20120 = vmatprep.subr.bf16.mxu1 %v22206_v62 }
0x10f1   :  { %20122 = vmatpush3.bf16.msra.mxu1 %v22206_v62 }
0x10f2   :  { %20124 = vmatprep.subr.bf16.mxu1 %v20123_v32 }
0x10f4   :  { %18561 = vmatmul.mubr.f32.vlgmr.msra.gmra.mrb[24].mxu1 %v22046_v55 }
0x10f5   :  { %20126 = vmatpush3.bf16.msra.mxu1 %v20123_v32  ;;  %18571 = vmatprep.mubr.f32.mxu1 %v22037_v2 }
0x10f6   :  { %20128 = vmatprep.subr.bf16.mxu1 %v20127_v59 }
0x10f9   :  { %20130 = vmatpush3.bf16.msra.mxu1 %v20127_v59 }
0x10fa   :  { %20132 = vmatprep.subr.bf16.mxu1 %v22186_v19 }
0x10fc   :  { %18572 = vmatmul.mubr.f32.vlgmr.msra.gmra.mrb[24].mxu1 %v22034_v24 }
0x10fd   :  { %20134 = vmatpush3.bf16.msra.mxu1 %v22186_v19  ;;  %18582 = vmatprep.mubr.f32.mxu1 %v22037_v2  ;;  %v20195_v19 = vpack.c.bf16 %v11771_v51, %v11764_v44 }
0x10fe   :  { %20136 = vmatprep.subr.bf16.mxu1 %v22206_v62 }
0x1101   :  { %20138 = vmatpush3.bf16.msra.mxu1 %v22206_v62  ;;  %v20223_v62 = vpack.c.bf16 %v11783_v33, %v11776_v10 }
0x1102   :  { %20188 = vmatprep.subr.bf16.mxu1 %v20187_v35 }
0x1104   :  { %18583 = vmatmul.mubr.f32.vlgmr.msra.gmra.mrb[24].mxu1 %v22034_v24 }
0x1105   :  { %20190 = vmatpush3.bf16.msra.mxu1 %v20187_v35  ;;  %18659 = vmatprep.mubr.f32.mxu1 %v22055_v56 }
0x1106   :  { %20192 = vmatprep.subr.bf16.mxu1 %v20191_v58 }
0x1109   :  { %20194 = vmatpush3.bf16.msra.mxu1 %v20191_v58 }
0x110a   :  { %20196 = vmatprep.subr.bf16.mxu1 %v20195_v19 }
0x110c   :  { %18660 = vmatmul.mubr.f32.vlgmr.msra.gmra.mrb[26].mxu1 %v22057_v48 }
0x110d   :  { %20198 = vmatpush3.bf16.msra.mxu1 %v20195_v19  ;;  %18670 = vmatprep.mubr.f32.mxu1 %v22037_v2 }
0x110e   :  { %20200 = vmatprep.subr.bf16.mxu1 %v20199_v41 }
0x1111   :  { %20202 = vmatpush3.bf16.msra.mxu1 %v20199_v41 }
0x1112   :  { %20204 = vmatprep.subr.bf16.mxu1 %v20203_v31 }
0x1114   :  { %18671 = vmatmul.mubr.f32.vlgmr.msra.gmra.mrb[26].mxu1 %v22034_v24 }
0x1115   :  { %20206 = vmatpush3.bf16.msra.mxu1 %v20203_v31  ;;  %18681 = vmatprep.mubr.f32.mxu1 %v22043_v17 }
0x1116   :  { %20208 = vmatprep.subr.bf16.mxu1 %v20207_v53 }
0x1119   :  { %20210 = vmatpush3.bf16.msra.mxu1 %v20207_v53 }
0x111a   :  { %20212 = vmatprep.subr.bf16.mxu1 %v20187_v35 }
0x111c   :  { %18682 = vmatmul.mubr.f32.vlgmr.msra.gmra.mrb[26].mxu1 %v22040_v42 }
0x111d   :  { %20214 = vmatpush3.bf16.msra.mxu1 %v20187_v35  ;;  %18692 = vmatprep.mubr.f32.mxu1 %v22049_v13 }
0x111e   :  { %20216 = vmatprep.subr.bf16.mxu1 %v20191_v58 }
0x1121   :  { %20218 = vmatpush3.bf16.msra.mxu1 %v20191_v58 }
0x1122   :  { %20220 = vmatprep.subr.bf16.mxu1 %v20219_v12 }
0x1124   :  { %18693 = vmatmul.mubr.f32.vlgmr.msra.gmra.mrb[26].mxu1 %v22046_v55 }
0x1125   :  { %20222 = vmatpush3.bf16.msra.mxu1 %v20219_v12  ;;  %18703 = vmatprep.mubr.f32.mxu1 %v22037_v2 }
0x1126   :  { %20224 = vmatprep.subr.bf16.mxu1 %v20223_v62 }
0x1129   :  { %20226 = vmatpush3.bf16.msra.mxu1 %v20223_v62 }
0x112a   :  { %20228 = vmatprep.subr.bf16.mxu1 %v20187_v35 }
0x112c   :  { %18704 = vmatmul.mubr.f32.vlgmr.msra.gmra.mrb[26].mxu1 %v22034_v24 }
0x112d   :  { %20230 = vmatpush3.bf16.msra.mxu1 %v20187_v35  ;;  %18714 = vmatprep.mubr.f32.mxu1 %v22037_v2 }
0x112e   :  { %20232 = vmatprep.subr.bf16.mxu1 %v20191_v58 }
0x1131   :  { %20234 = vmatpush3.bf16.msra.mxu1 %v20191_v58 }
0x1134   :  { %18715 = vmatmul.mubr.f32.vlgmr.msra.gmra.mrb[26].mxu1 %v22034_v24 }
0x11a7   :  { %v18476_v0 = vpop.f32.mrb[22].mxu1 }
0x11a8   :  { %v10039_v27 = vmul.f32 0.25, %v18476_v0  ;;  %v10028_v14 = vpop.f32.mrb[23].mxu1 }
0x11a9   :  { %v10038_v47 = vmul.f32 0.25, %v10028_v14 }
0x11aa   :  { %v10041_v49 = vadd.f32 %v22278_v3, %v10039_v27 }
0x11ab   :  { %v10040_v6 = vadd.f32 %v22284_v7, %v10038_v47 }
0x11ac   :  { %v10045_v36 = vsel %vm1753_vm5, %v10041_v49, -inf }
0x11ad   :  { %10046 = vmax.xlane.f32.xlu1 %v10045_v36  ;;  %v10042_v46 = vsel %vm1753_vm5, %v10040_v6, -inf }
0x11ae   :  { %10043 = vmax.xlane.f32.xlu0 %v10042_v46 }
0x11d7   :  { %v18584_v21 = vpop.f32.mrb[24].mxu1 }
0x11d8   :  { %v22295_v4 = vadd.f32 %v18584_v21, %v22292_v28  ;;  %v22297_v18 = vpop.f32.mrb[25].mxu1 }
0x1207   :  { %v18716_v40 = vpop.f32.mrb[26].mxu1 }
0x1208   :  { %v20649_v32 = vadd.f32 %v18716_v40, %v16235_v37  ;;  %v12188_v34 = vpop.f32.mrb[27].mxu1 }
0x1209   :  { %v20650_v63 = vadd.f32 %v16235_v37, %v12188_v34 }
0x120a   :  { %v12748_v59 = vand.u32 4294901760, %v20649_v32 }
0x120b   :  { %v12745_v1 = vand.u32 4294901760, %v20650_v63 }
0x120c   :  { %v12840_v50 = vsub.f32 %v20649_v32, %v12748_v59  ;;  %v16224_v32 = vld [vmem:[%s22972_s22 + $0x60] sm:$0xff] }
0x120d   :  { %v22302_v16 = vpack.c.bf16 %v12748_v59, %v12745_v1  ;;  %v12833_v22 = vsub.f32 %v20650_v63, %v12745_v1  ;;  %v11130_v34 = vand.u32 4294901760, %v16224_v32  ;;  %v16227_v59 = vld [vmem:[%s22972_s22 + $0x78] sm:$0xff] }
0x120e   :  { %v12841_v25 = vand.u32 4294901760, %v12840_v50 }
0x120f   :  { %v12834_v57 = vand.u32 4294901760, %v12833_v22  ;;  %20260 = vmatprep.subr.bf16.mxu1 %v22302_v16  ;;  %v22305_v30 = vpack.c.bf16 %v12840_v50, %v12833_v22 }
0x1210   :  { %20262 = vmatpush3.bf16.msra.mxu1 %v22302_v16  ;;  %v12842_v60 = vsub.f32 %v12840_v50, %v12841_v25  ;;  %v11139_v50 = vand.u32 4294901760, %v16227_v59 }
0x1211   :  { %v12835_v11 = vsub.f32 %v12833_v22, %v12834_v57  ;;  %v22308_v23 = vpack.c.bf16 %v12841_v25, %v12834_v57  ;;  %v11220_v22 = vsub.f32 %v16224_v32, %v11130_v34 }
0x1212   :  { %v12843_v61 = vand.u32 4294901760, %v12842_v60 }
0x1213   :  { %v12836_v26 = vand.u32 4294901760, %v12835_v11  ;;  %v11221_v60 = vand.u32 4294901760, %v11220_v22 }
0x1215   :  { %v22310_v35 = vpack.c.bf16 %v12843_v61, %v12836_v26  ;;  %v11241_v26 = vsub.f32 %v16227_v59, %v11139_v50 }
0x1217   :  { %20264 = vmatprep.subr.bf16.mxu1 %v22310_v35 }
0x123a   :  { %v10047_v20 = vpop.xlane.xlu1 %10046 }
0x123b   :  { %v10049_v39 = vsub.f32 %v10041_v49, %v10047_v20  ;;  %v10044_v10 = vpop.xlane.xlu0 %10043  ;;  %v11222_v20 = vsub.f32 %v11220_v22, %v11221_v60 }
0x123c   :  { %v10048_v33 = vsub.f32 %v10040_v6, %v10044_v10  ;;  %v11242_v10 = vand.u32 4294901760, %v11241_v26 }
0x123d   :  { %v10052_v58 = vmul.f32 1.442695, %v10049_v39 }
0x123e   :  { %v10050_v44 = vmul.f32 1.442695, %v10048_v33 }
0x123f   :  { %20991 = vpow2.f32 %v10052_v58  ;;  %v11223_v58 = vand.u32 4294901760, %v11222_v20 }
0x1240   :  { %20993 = vpow2.f32 %v10050_v44 }
0x1249   :  { %v20992_v51 = vpop.eup %20991 }
0x124a   :  { %v20994_v54 = vpop.eup %20993  ;;  %v10057_v43 = vsel %vm1753_vm5, %v20992_v51, 0.0 }
0x124b   :  { %10058 = vadd.xlane.f32.xlu1 %v10057_v43  ;;  %v10054_v19 = vsel %vm1753_vm5, %v20994_v54, 0.0 }
0x124c   :  { %10055 = vadd.xlane.f32.xlu0 %v10054_v19 }
0x12d8   :  { %v10059_v52 = vpop.xlane.xlu1 %10058 }
0x12d9   :  { %20995 = vrcp.f32 %v10059_v52  ;;  %v10056_v15 = vpop.xlane.xlu0 %10055 }
0x12da   :  { %20997 = vrcp.f32 %v10056_v15 }
0x12e3   :  { %v20996_v41 = vpop.eup %20995 }
0x12e4   :  { %v20998_v31 = vpop.eup %20997  ;;  %v10063_v53 = vmul.f32 %v20996_v41, %v20992_v51 }
0x12e5   :  { %v10062_v12 = vmul.f32 %v20998_v31, %v20994_v54  ;;  %v11243_v54 = vsub.f32 %v11241_v26, %v11242_v10 }
0x12e6   :  { %v10068_v62 = vsel %vm1753_vm5, %v10063_v53, 0 }
0x12e7   :  { %v10065_v0 = vsel %vm1753_vm5, %v10062_v12, 0  ;;  %v10147_v27 = vand.u32 4294901760, %v10068_v62  ;;  %v11244_v52 = vand.u32 4294901760, %v11243_v54 }
0x12e8   :  { %v10137_v14 = vand.u32 4294901760, %v10065_v0 }
0x12e9   :  { %v10148_v47 = vsub.f32 %v10068_v62, %v10147_v27  ;;  %v12202_v62 = vsel %vm1753_vm5, %v22295_v4, 0 }
0x12ea   :  { %v10138_v49 = vsub.f32 %v10065_v0, %v10137_v14  ;;  %v16229_v0 = vld [vmem:[%s22931_s7 + $0x3] ss:$0 sm:$0xff] }
0x12eb   :  { %v10149_v6 = vand.u32 4294901760, %v10148_v47 }
0x12ec   :  { %v10139_v36 = vand.u32 4294901760, %v10138_v49 }
0x12ed   :  { %v10150_v46 = vsub.f32 %v10148_v47, %v10149_v6 }
0x12ee   :  { %v10140_v21 = vsub.f32 %v10138_v49, %v10139_v36 }
0x12ef   :  { %v10151_v40 = vand.u32 4294901760, %v10150_v46 }
0x12f0   :  { %v10141_v37 = vand.u32 4294901760, %v10140_v21 }
0x12f2   :  { %18481 = vmatprep.mubr.f32.mxu0 %v10141_v37 }
0x12f3   :  { %18482 = vmatmul.mubr.f32.vlgmr.msra.gmra.mrb[14].mxu0 %v10151_v40 }
0x12f4   :  { %20074 = vmatpush3.bf16.msra.mxu0 %v22221_v29  ;;  %18488 = vmatprep.mubr.f32.mxu0 %v10137_v14  ;;  %v16225_v29 = vld [vmem:[%s22972_s22 + $0x68] sm:$0xff] }
0x12f5   :  { %20076 = vmatprep.subr.bf16.mxu0 %v22211_v5  ;;  %v11133_v63 = vand.u32 4294901760, %v16225_v29 }
0x12f7   :  { %v11227_v25 = vsub.f32 %v16225_v29, %v11133_v63  ;;  %v20139_v57 = vpack.c.bf16 %v11133_v63, %v11130_v34 }
0x12f9   :  { %v11228_v11 = vand.u32 4294901760, %v11227_v25  ;;  %v20155_v15 = vpack.c.bf16 %v11227_v25, %v11220_v22 }
0x12fb   :  { %18489 = vmatmul.mubr.f32.vlgmr.msra.gmra.mrb[14].mxu0 %v10147_v27  ;;  %v11229_v39 = vsub.f32 %v11227_v25, %v11228_v11 }
0x12fc   :  { %20078 = vmatpush3.bf16.msra.mxu0 %v22211_v5  ;;  %18495 = vmatprep.mubr.f32.mxu0 %v10138_v49  ;;  %v16226_v5 = vld [vmem:[%s22972_s22 + $0x70] sm:$0xff] }
0x12fd   :  { %20080 = vmatprep.subr.bf16.mxu0 %v22204_v9  ;;  %v11136_v1 = vand.u32 4294901760, %v16226_v5  ;;  %v11230_v44 = vand.u32 4294901760, %v11229_v39 }
0x12ff   :  { %v11234_v61 = vsub.f32 %v16226_v5, %v11136_v1  ;;  %v20143_v33 = vpack.c.bf16 %v11139_v50, %v11136_v1  ;;  %v20147_v43 = vpack.c.bf16 %v11230_v44, %v11223_v58 }
0x1301   :  { %v20159_v41 = vpack.c.bf16 %v11241_v26, %v11234_v61 }
0x1303   :  { %18496 = vmatmul.mubr.f32.vlgmr.msra.gmra.mrb[14].mxu0 %v10148_v47 }
0x1304   :  { %20082 = vmatpush3.bf16.msra.mxu0 %v22204_v9  ;;  %18502 = vmatprep.mubr.f32.mxu0 %v10139_v36 }
0x1305   :  { %20084 = vmatprep.subr.bf16.mxu0 %v22217_v38 }
0x130b   :  { %18503 = vmatmul.mubr.f32.vlgmr.msra.gmra.mrb[14].mxu0 %v10149_v6 }
0x130c   :  { %20086 = vmatpush3.bf16.msra.mxu0 %v22217_v38  ;;  %18509 = vmatprep.mubr.f32.mxu0 %v10137_v14  ;;  %v11235_v38 = vand.u32 4294901760, %v11234_v61 }
0x130d   :  { %20088 = vmatprep.subr.bf16.mxu0 %v22204_v9 }
0x130e   :  { %v11236_v51 = vsub.f32 %v11234_v61, %v11235_v38  ;;  %v20175_v53 = vpack.c.bf16 %v11242_v10, %v11235_v38 }
0x1310   :  { %v11237_v19 = vand.u32 4294901760, %v11236_v51 }
0x1313   :  { %18510 = vmatmul.mubr.f32.vlgmr.msra.gmra.mrb[14].mxu0 %v10147_v27 }
0x1314   :  { %20090 = vmatpush3.bf16.msra.mxu0 %v22204_v9  ;;  %18516 = vmatprep.mubr.f32.mxu0 %v10137_v14  ;;  %v20151_v9 = vpack.c.bf16 %v11244_v52, %v11237_v19 }
0x1315   :  { %20140 = vmatprep.subr.bf16.mxu0 %v20139_v57 }
0x131b   :  { %18517 = vmatmul.mubr.f32.vlgmr.msra.gmra.mrb[14].mxu0 %v10147_v27  ;;  %v12287_v27 = vand.u32 4294901760, %v12202_v62 }
0x131c   :  { %20142 = vmatpush3.bf16.msra.mxu0 %v20139_v57  ;;  %18593 = vmatprep.mubr.f32.mxu0 %v22055_v56  ;;  %v20646_v56 = vadd.f32 %v22292_v28, %v22297_v18 }
0x131d   :  { %20144 = vmatprep.subr.bf16.mxu0 %v20143_v33  ;;  %v12288_v6 = vsub.f32 %v12202_v62, %v12287_v27 }
0x131e   :  { %v12199_v31 = vsel %vm1753_vm5, %v20646_v56, 0 }
0x131f   :  { %v22348_v12 = vand.u32 4294901760, %v12199_v31  ;;  %v12289_v40 = vand.u32 4294901760, %v12288_v6 }
0x1320   :  { %20146 = vmatpush3.bf16.msra.mxu0 %v20143_v33 }
0x1321   :  { %20148 = vmatprep.subr.bf16.mxu0 %v20147_v43  ;;  %v12290_v59 = vsub.f32 %v12288_v6, %v12289_v40 }
0x1323   :  { %18594 = vmatmul.mubr.f32.vlgmr.msra.gmra.mrb[16].mxu0 %v22057_v48  ;;  %v20171_v48 = vpack.c.bf16 %v11228_v11, %v11221_v60 }
0x1324   :  { %20150 = vmatpush3.bf16.msra.mxu0 %v20147_v43  ;;  %18604 = vmatprep.mubr.f32.mxu0 %v22037_v2 }
0x1325   :  { %20152 = vmatprep.subr.bf16.mxu0 %v20151_v9 }
0x1328   :  { %20154 = vmatpush3.bf16.msra.mxu0 %v20151_v9 }
0x1329   :  { %20156 = vmatprep.subr.bf16.mxu0 %v20155_v15 }
0x132b   :  { %18605 = vmatmul.mubr.f32.vlgmr.msra.gmra.mrb[16].mxu0 %v22034_v24 }
0x132c   :  { %20158 = vmatpush3.bf16.msra.mxu0 %v20155_v15  ;;  %18615 = vmatprep.mubr.f32.mxu0 %v22043_v17 }
0x132d   :  { %20160 = vmatprep.subr.bf16.mxu0 %v20159_v41 }
0x1330   :  { %20162 = vmatpush3.bf16.msra.mxu0 %v20159_v41 }
0x1331   :  { %20164 = vmatprep.subr.bf16.mxu0 %v20139_v57 }
0x1333   :  { %18616 = vmatmul.mubr.f32.vlgmr.msra.gmra.mrb[16].mxu0 %v22040_v42  ;;  %v12278_v42 = vsub.f32 %v12199_v31, %v22348_v12 }
0x1334   :  { %20166 = vmatpush3.bf16.msra.mxu0 %v20139_v57  ;;  %18626 = vmatprep.mubr.f32.mxu0 %v22049_v13 }
0x1335   :  { %20168 = vmatprep.subr.bf16.mxu0 %v20143_v33  ;;  %v12279_v17 = vand.u32 4294901760, %v12278_v42 }
0x1337   :  { %v12280_v13 = vsub.f32 %v12278_v42, %v12279_v17 }
0x1338   :  { %20170 = vmatpush3.bf16.msra.mxu0 %v20143_v33 }
0x1339   :  { %20172 = vmatprep.subr.bf16.mxu0 %v20171_v48  ;;  %v12281_v28 = vand.u32 4294901760, %v12280_v13 }
0x133b   :  { %18627 = vmatmul.mubr.f32.vlgmr.msra.gmra.mrb[16].mxu0 %v22046_v55 }
0x133c   :  { %20174 = vmatpush3.bf16.msra.mxu0 %v20171_v48  ;;  %18637 = vmatprep.mubr.f32.mxu0 %v22037_v2 }
0x133d   :  { %20176 = vmatprep.subr.bf16.mxu0 %v20175_v53 }
0x1340   :  { %20178 = vmatpush3.bf16.msra.mxu0 %v20175_v53 }
0x1341   :  { %20180 = vmatprep.subr.bf16.mxu0 %v20139_v57 }
0x1343   :  { %18638 = vmatmul.mubr.f32.vlgmr.msra.gmra.mrb[16].mxu0 %v22034_v24 }
0x1344   :  { %20182 = vmatpush3.bf16.msra.mxu0 %v20139_v57  ;;  %18648 = vmatprep.mubr.f32.mxu0 %v22037_v2  ;;  %v12291_v57 = vand.u32 4294901760, %v12290_v59 }
0x1345   :  { %20184 = vmatprep.subr.bf16.mxu0 %v20143_v33 }
0x1348   :  { %20186 = vmatpush3.bf16.msra.mxu0 %v20143_v33 }
0x134b   :  { %18649 = vmatmul.mubr.f32.vlgmr.msra.gmra.mrb[16].mxu0 %v22034_v24 }
0x134c   :  { %18721 = vmatprep.mubr.f32.mxu0 %v12281_v28 }
0x13ee   :  { %v22356_v55 = vpop.f32.mrb[14].mxu0 }
0x13ef   :  { %v22358_v18 = vpop.f32.mrb[15].mxu0 }
0x141e   :  { %v18650_v2 = vpop.f32.mrb[16].mxu0 }
0x141f   :  { %v20647_v14 = vadd.f32 %v18650_v2, %v16229_v0  ;;  %v11647_v47 = vpop.f32.mrb[17].mxu0 }
0x1420   :  { %v20648_v49 = vadd.f32 %v16229_v0, %v11647_v47 }
0x1421   :  { %v12208_v24 = vsel %vm1753_vm5, %v20647_v14, 0 }
0x1422   :  { %v12214_v36 = vand.u32 4294901760, %v12208_v24  ;;  %v12205_v46 = vsel %vm1753_vm5, %v20648_v49, 0 }
0x1423   :  { %v12211_v21 = vand.u32 4294901760, %v12205_v46 }
0x1424   :  { %v12306_v37 = vsub.f32 %v12208_v24, %v12214_v36 }
0x1425   :  { %v20235_v32 = vpack.c.bf16 %v12214_v36, %v12211_v21  ;;  %v12299_v4 = vsub.f32 %v12205_v46, %v12211_v21 }
0x1426   :  { %v12307_v29 = vand.u32 4294901760, %v12306_v37 }
0x1427   :  { %v12300_v34 = vand.u32 4294901760, %v12299_v4  ;;  %20236 = vmatprep.subr.bf16.mxu0 %v20235_v32  ;;  %v20243_v63 = vpack.c.bf16 %v12306_v37, %v12299_v4 }
0x1428   :  { %20238 = vmatpush3.bf16.xpose.msra.mxu0 %v20235_v32  ;;  %v12308_v5 = vsub.f32 %v12306_v37, %v12307_v29 }
0x1429   :  { %v12301_v1 = vsub.f32 %v12299_v4, %v12300_v34  ;;  %v20251_v50 = vpack.c.bf16 %v12307_v29, %v12300_v34 }
0x142a   :  { %v12309_v22 = vand.u32 4294901760, %v12308_v5 }
0x142b   :  { %v12302_v25 = vand.u32 4294901760, %v12301_v1 }
0x142d   :  { %v20239_v60 = vpack.c.bf16 %v12309_v22, %v12302_v25 }
0x142f   :  { %18722 = vmatmul.mubr.f32.vlgmr.msra.gmra.mrb[18].mxu0 %v12291_v57  ;;  %20240 = vmatprep.subr.bf16.mxu0 %v20239_v60 }
0x1430   :  { %20242 = vmatpush3.bf16.xpose.msra.mxu0 %v20239_v60  ;;  %18728 = vmatprep.mubr.f32.mxu0 %v22348_v12 }
0x1431   :  { %20244 = vmatprep.subr.bf16.mxu0 %v20243_v63 }
0x1437   :  { %18729 = vmatmul.mubr.f32.vlgmr.msra.gmra.mrb[18].mxu0 %v12287_v27 }
0x1438   :  { %20246 = vmatpush3.bf16.xpose.msra.mxu0 %v20243_v63  ;;  %18735 = vmatprep.mubr.f32.mxu0 %v12278_v42 }
0x1439   :  { %20248 = vmatprep.subr.bf16.mxu0 %v20235_v32 }
0x143f   :  { %18736 = vmatmul.mubr.f32.vlgmr.msra.gmra.mrb[18].mxu0 %v12288_v6 }
0x1440   :  { %20250 = vmatpush3.bf16.xpose.msra.mxu0 %v20235_v32  ;;  %18742 = vmatprep.mubr.f32.mxu0 %v12279_v17 }
0x1441   :  { %20252 = vmatprep.subr.bf16.mxu0 %v20251_v50 }
0x1447   :  { %18743 = vmatmul.mubr.f32.vlgmr.msra.gmra.mrb[18].mxu0 %v12289_v40 }
0x1448   :  { %20254 = vmatpush3.bf16.xpose.msra.mxu0 %v20251_v50  ;;  %18749 = vmatprep.mubr.f32.mxu0 %v22348_v12 }
0x1449   :  { %20256 = vmatprep.subr.bf16.mxu0 %v20235_v32 }
0x144f   :  { %18750 = vmatmul.mubr.f32.vlgmr.msra.gmra.mrb[18].mxu0 %v12287_v27 }
0x1450   :  { %20258 = vmatpush3.bf16.xpose.msra.mxu0 %v20235_v32  ;;  %18756 = vmatprep.mubr.f32.mxu0 %v22348_v12 }
0x1457   :  { %18757 = vmatmul.mubr.f32.vlgmr.msra.gmra.mrb[18].mxu0 %v12287_v27 }
0x152a   :  { %v18758_v11 = vpop.f32.mrb[18].mxu0 }
0x152b   :  { %v12713_v61 = vmul.f32 0.25, %v18758_v11  ;;  %v12702_v26 = vpop.f32.mrb[19].mxu0 }
0x152c   :  { %v12712_v20 = vmul.f32 0.25, %v12702_v26 }
0x152d   :  { %v12715_v39 = vadd.f32 %v22278_v3, %v12713_v61 }
0x152e   :  { %v12714_v38 = vadd.f32 %v22284_v7, %v12712_v20 }
0x152f   :  { %v12719_v10 = vsel %vm1753_vm5, %v12715_v39, -inf }
0x1530   :  { %12720 = vmax.xlane.f32.xlu1 %v12719_v10  ;;  %v12716_v33 = vsel %vm1753_vm5, %v12714_v38, -inf  ;;  %v16216_v10 = vld [vmem:[%s22934_s10 + $0x20] sm:$0xff] }
0x1531   :  { %12717 = vmax.xlane.f32.xlu0 %v12716_v33  ;;  %v16217_v33 = vld [vmem:[%s22934_s10 + $0x28] sm:$0xff] }
0x15bd   :  { %v12721_v58 = vpop.xlane.xlu1 %12720 }
0x15be   :  { %v12723_v44 = vsub.f32 %v12715_v39, %v12721_v58  ;;  %v12718_v51 = vpop.xlane.xlu0 %12717  ;;  %v13764_v58 = vand.u32 4294901760, %v16216_v10 }
0x15bf   :  { %v12722_v54 = vsub.f32 %v12714_v38, %v12718_v51  ;;  %v13758_v51 = vsel %vm1753_vm5, %v22358_v18, 0 }
0x15c0   :  { %v12726_v43 = vmul.f32 1.442695, %v12723_v44  ;;  %v13767_v44 = vand.u32 4294901760, %v16217_v33 }
0x15c1   :  { %v12724_v19 = vmul.f32 1.442695, %v12722_v54  ;;  %v13852_v54 = vsub.f32 %v16216_v10, %v13764_v58 }
0x15c2   :  { %20999 = vpow2.f32 %v12726_v43  ;;  %v13859_v43 = vsub.f32 %v16217_v33, %v13767_v44 }
0x15c3   :  { %21001 = vpow2.f32 %v12724_v19  ;;  %v13830_v19 = vand.u32 4294901760, %v13758_v51 }
0x15cc   :  { %v21000_v52 = vpop.eup %20999 }
0x15cd   :  { %v21002_v9 = vpop.eup %21001  ;;  %v12731_v3 = vsel %vm1753_vm5, %v21000_v52, 0.0 }
0x15ce   :  { %12732 = vadd.xlane.f32.xlu1 %v12731_v3  ;;  %v12728_v7 = vsel %vm1753_vm5, %v21002_v9, 0.0  ;;  %v13761_v3 = vsel %vm1753_vm5, %v22356_v55, 0 }
0x15cf   :  { %12729 = vadd.xlane.f32.xlu0 %v12728_v7  ;;  %v13831_v7 = vsub.f32 %v13758_v51, %v13830_v19 }
0x165b   :  { %v12733_v15 = vpop.xlane.xlu1 %12732 }
0x165c   :  { %21003 = vrcp.f32 %v12733_v15  ;;  %v12730_v41 = vpop.xlane.xlu0 %12729  ;;  %v13840_v15 = vand.u32 4294901760, %v13761_v3 }
0x165d   :  { %21005 = vrcp.f32 %v12730_v41  ;;  %v20307_v41 = vpack.c.bf16 %v13767_v44, %v13764_v58 }
0x165e   :  { %v13841_v18 = vsub.f32 %v13761_v3, %v13840_v15 }
0x1666   :  { %v21004_v56 = vpop.eup %21003 }
0x1667   :  { %v21006_v48 = vpop.eup %21005  ;;  %v12737_v31 = vmul.f32 %v21004_v56, %v21000_v52  ;;  %v13853_v52 = vand.u32 4294901760, %v13852_v54 }
0x1668   :  { %v12736_v53 = vmul.f32 %v21006_v48, %v21002_v9  ;;  %v13860_v9 = vand.u32 4294901760, %v13859_v43 }
0x1669   :  { %v12742_v12 = vsel %vm1753_vm5, %v12737_v31, 0  ;;  %v13854_v56 = vsub.f32 %v13852_v54, %v13853_v52  ;;  %v13832_v31 = vand.u32 4294901760, %v13831_v7 }
0x166a   :  { %v12739_v42 = vsel %vm1753_vm5, %v12736_v53, 0  ;;  %v12821_v17 = vand.u32 4294901760, %v12742_v12  ;;  %v13861_v48 = vsub.f32 %v13859_v43, %v13860_v9 }
0x166b   :  { %v12811_v13 = vand.u32 4294901760, %v12739_v42  ;;  %v13855_v53 = vand.u32 4294901760, %v13854_v56 }
0x166c   :  { %v12822_v28 = vsub.f32 %v12742_v12, %v12821_v17  ;;  %v13862_v12 = vand.u32 4294901760, %v13861_v48 }
0x166d   :  { %v12812_v62 = vsub.f32 %v12739_v42, %v12811_v13  ;;  %v13833_v42 = vsub.f32 %v13831_v7, %v13832_v31 }
0x166e   :  { %v12823_v0 = vand.u32 4294901760, %v12822_v28 }
0x166f   :  { %v12813_v27 = vand.u32 4294901760, %v12812_v62 }
0x1670   :  { %v12824_v2 = vsub.f32 %v12822_v28, %v12823_v0 }
0x1671   :  { %v12814_v14 = vsub.f32 %v12812_v62, %v12813_v27 }
0x1672   :  { %v12825_v49 = vand.u32 4294901760, %v12824_v2 }
0x1673   :  { %v12815_v47 = vand.u32 4294901760, %v12814_v14  ;;  %v16239_v14 = vld [vmem:[%s22935_s11 + $0x1] ss:$0 sm:$0xff] }
0x1675   :  { %18763 = vmatprep.mubr.f32.mxu1 %v12815_v47 }
0x1676   :  { %18764 = vmatmul.mubr.f32.vlgmr.msra.gmra.mrb[28].mxu1 %v12825_v49 }
0x1677   :  { %20266 = vmatpush3.bf16.msra.mxu1 %v22310_v35  ;;  %18770 = vmatprep.mubr.f32.mxu1 %v12811_v13  ;;  %v16237_v35 = vld [vmem:[%s22934_s10 + $0x38] sm:$0xff] }
0x1678   :  { %20268 = vmatprep.subr.bf16.mxu1 %v22305_v30  ;;  %v13259_v24 = vand.u32 4294901760, %v16237_v35 }
0x167a   :  { %v13351_v46 = vsub.f32 %v16237_v35, %v13259_v24 }
0x167e   :  { %18771 = vmatmul.mubr.f32.vlgmr.msra.gmra.mrb[28].mxu1 %v12821_v17 }
0x167f   :  { %20270 = vmatpush3.bf16.msra.mxu1 %v22305_v30  ;;  %18777 = vmatprep.mubr.f32.mxu1 %v12812_v62  ;;  %v16236_v30 = vld [vmem:[%s22934_s10 + $0x30] sm:$0xff] }
0x1680   :  { %20272 = vmatprep.subr.bf16.mxu1 %v22302_v16  ;;  %v13256_v6 = vand.u32 4294901760, %v16236_v30 }
0x1682   :  { %v22393_v36 = vpack.c.bf16 %v13259_v24, %v13256_v6 }
0x1684   :  { %20284 = vmatprep.subr.bf16.mxu0 %v22393_v36 }
0x1685   :  { %20286 = vmatpush3.bf16.msra.mxu0 %v22393_v36 }
0x1686   :  { %18778 = vmatmul.mubr.f32.vlgmr.msra.gmra.mrb[28].mxu1 %v12822_v28  ;;  %v13834_v28 = vand.u32 4294901760, %v13833_v42 }
0x1687   :  { %20274 = vmatpush3.bf16.msra.mxu1 %v22302_v16  ;;  %18784 = vmatprep.mubr.f32.mxu1 %v12813_v27  ;;  %v20323_v27 = vpack.c.bf16 %v13860_v9, %v13853_v52 }
0x1688   :  { %20276 = vmatprep.subr.bf16.mxu1 %v22308_v23 }
0x168e   :  { %18785 = vmatmul.mubr.f32.vlgmr.msra.gmra.mrb[28].mxu1 %v12823_v0  ;;  %v20315_v0 = vpack.c.bf16 %v13859_v43, %v13852_v54 }
0x168f   :  { %20278 = vmatpush3.bf16.msra.mxu1 %v22308_v23  ;;  %18791 = vmatprep.mubr.f32.mxu1 %v12811_v13  ;;  %v13344_v23 = vsub.f32 %v16236_v30, %v13256_v6 }
0x1690   :  { %20280 = vmatprep.subr.bf16.mxu1 %v22302_v16 }
0x1691   :  { %v13345_v21 = vand.u32 4294901760, %v13344_v23  ;;  %v20291_v34 = vpack.c.bf16 %v13351_v46, %v13344_v23 }
0x1693   :  { %v13346_v37 = vsub.f32 %v13344_v23, %v13345_v21 }
0x1695   :  { %v13347_v32 = vand.u32 4294901760, %v13346_v37 }
0x1696   :  { %18792 = vmatmul.mubr.f32.vlgmr.msra.gmra.mrb[28].mxu1 %v12821_v17 }
0x1697   :  { %20282 = vmatpush3.bf16.msra.mxu1 %v22302_v16  ;;  %18798 = vmatprep.mubr.f32.mxu1 %v12811_v13  ;;  %v13352_v16 = vand.u32 4294901760, %v13351_v46  ;;  %v20311_v13 = vpack.c.bf16 %v13862_v12, %v13855_v53 }
0x1699   :  { %v13353_v40 = vsub.f32 %v13351_v46, %v13352_v16  ;;  %v20299_v63 = vpack.c.bf16 %v13352_v16, %v13345_v21 }
0x169b   :  { %v13354_v4 = vand.u32 4294901760, %v13353_v40 }
0x169d   :  { %v20287_v29 = vpack.c.bf16 %v13354_v4, %v13347_v32 }
0x169e   :  { %18799 = vmatmul.mubr.f32.vlgmr.msra.gmra.mrb[28].mxu1 %v12821_v17  ;;  %v13842_v17 = vand.u32 4294901760, %v13841_v18 }
0x169f   :  { %20288 = vmatprep.subr.bf16.mxu0 %v20287_v29 }
0x16a0   :  { %v13843_v55 = vsub.f32 %v13841_v18, %v13842_v17 }
0x16a2   :  { %v13844_v62 = vand.u32 4294901760, %v13843_v55 }
0x1771   :  { %v18800_v5 = vpop.f32.mrb[28].mxu1 }
0x1772   :  { %v13253_v59 = vsel %vm1753_vm5, %v18800_v5, 0  ;;  %v13236_v1 = vpop.f32.mrb[29].mxu1 }
0x1773   :  { %v13332_v50 = vand.u32 4294901760, %v13253_v59  ;;  %v13250_v22 = vsel %vm1753_vm5, %v13236_v1, 0  ;;  %v16247_v1 = vld [vmem:[%s22936_s14 + $0x38] sm:$0xff] }
0x1774   :  { %v13322_v25 = vand.u32 4294901760, %v13250_v22 }
0x1775   :  { %v13333_v57 = vsub.f32 %v13253_v59, %v13332_v50 }
0x1776   :  { %v13323_v60 = vsub.f32 %v13250_v22, %v13322_v25  ;;  %v14366_v22 = vand.u32 4294901760, %v16247_v1 }
0x1777   :  { %v13334_v11 = vand.u32 4294901760, %v13333_v57 }
0x1778   :  { %v13324_v61 = vand.u32 4294901760, %v13323_v60  ;;  %v14468_v10 = vsub.f32 %v16247_v1, %v14366_v22 }
0x1779   :  { %v13335_v26 = vsub.f32 %v13333_v57, %v13334_v11 }
0x177a   :  { %v13325_v20 = vsub.f32 %v13323_v60, %v13324_v61  ;;  %v14469_v51 = vand.u32 4294901760, %v14468_v10 }
0x177b   :  { %v13336_v38 = vand.u32 4294901760, %v13335_v26 }
0x177c   :  { %v13326_v39 = vand.u32 4294901760, %v13325_v20 }
0x177e   :  { %18805 = vmatprep.mubr.f32.mxu0 %v13326_v39 }
0x177f   :  { %18806 = vmatmul.mubr.f32.vlgmr.msra.gmra.mrb[20].mxu0 %v13336_v38 }
0x1780   :  { %20290 = vmatpush3.bf16.msra.mxu0 %v20287_v29  ;;  %18812 = vmatprep.mubr.f32.mxu0 %v13322_v25  ;;  %v16244_v29 = vld [vmem:[%s22936_s14 + $0x20] sm:$0xff] }
0x1781   :  { %20292 = vmatprep.subr.bf16.mxu0 %v20291_v34  ;;  %v14357_v5 = vand.u32 4294901760, %v16244_v29 }
0x1787   :  { %18813 = vmatmul.mubr.f32.vlgmr.msra.gmra.mrb[20].mxu0 %v13332_v50 }
0x1788   :  { %20294 = vmatpush3.bf16.msra.mxu0 %v20291_v34  ;;  %18819 = vmatprep.mubr.f32.mxu0 %v13323_v60  ;;  %v16245_v34 = vld [vmem:[%s22936_s14 + $0x28] sm:$0xff]  ;;  %v14447_v60 = vsub.f32 %v16244_v29, %v14357_v5 }
0x1789   :  { %20296 = vmatprep.subr.bf16.mxu0 %v22393_v36  ;;  %v14360_v59 = vand.u32 4294901760, %v16245_v34 }
0x178f   :  { %18820 = vmatmul.mubr.f32.vlgmr.msra.gmra.mrb[20].mxu0 %v13333_v57 }
0x1790   :  { %20298 = vmatpush3.bf16.msra.mxu0 %v22393_v36  ;;  %18826 = vmatprep.mubr.f32.mxu0 %v13324_v61  ;;  %v14448_v61 = vand.u32 4294901760, %v14447_v60 }
0x1791   :  { %20300 = vmatprep.subr.bf16.mxu0 %v20299_v63 }
0x1792   :  { %v14449_v20 = vsub.f32 %v14447_v60, %v14448_v61 }
0x1794   :  { %v14450_v33 = vand.u32 4294901760, %v14449_v20 }
0x1797   :  { %18827 = vmatmul.mubr.f32.vlgmr.msra.gmra.mrb[20].mxu0 %v13334_v11  ;;  %v14454_v11 = vsub.f32 %v16245_v34, %v14360_v59 }
0x1798   :  { %20302 = vmatpush3.bf16.msra.mxu0 %v20299_v63  ;;  %18833 = vmatprep.mubr.f32.mxu0 %v13322_v25  ;;  %v16246_v63 = vld [vmem:[%s22936_s14 + $0x30] sm:$0xff] }
0x1799   :  { %20304 = vmatprep.subr.bf16.mxu0 %v22393_v36  ;;  %v14455_v26 = vand.u32 4294901760, %v14454_v11 }
0x179b   :  { %v14456_v39 = vsub.f32 %v14454_v11, %v14455_v26 }
0x179d   :  { %v14457_v58 = vand.u32 4294901760, %v14456_v39 }
0x179f   :  { %18834 = vmatmul.mubr.f32.vlgmr.msra.gmra.mrb[20].mxu0 %v13332_v50  ;;  %v20339_v54 = vpack.c.bf16 %v14457_v58, %v14450_v33  ;;  %v16254_v33 = vld [vmem:[%s22939_s16 + $0xa0] sm:$0xff]  ;;  %v16255_v58 = vld [vmem:[%s22939_s16 + $0xa8] sm:$0xff] }
0x17a0   :  { %20306 = vmatpush3.bf16.msra.mxu0 %v22393_v36  ;;  %18840 = vmatprep.mubr.f32.mxu0 %v13322_v25  ;;  %v22450_v25 = vpack.c.bf16 %v14360_v59, %v14357_v5 }
0x17a1   :  { %20308 = vmatprep.subr.bf16.mxu0 %v20307_v41 }
0x17a2   :  { %20332 = vmatprep.subr.bf16.mxu1 %v22450_v25 }
0x17a3   :  { %20334 = vmatpush3.bf16.msra.mxu1 %v22450_v25 }
0x17a7   :  { %18841 = vmatmul.mubr.f32.vlgmr.msra.gmra.mrb[20].mxu0 %v13332_v50  ;;  %v14363_v50 = vand.u32 4294901760, %v16246_v63 }
0x17a8   :  { %20310 = vmatpush3.bf16.msra.mxu0 %v20307_v41  ;;  %18847 = vmatprep.mubr.f32.mxu0 %v13834_v28 }
0x17a9   :  { %20312 = vmatprep.subr.bf16.mxu0 %v20311_v13  ;;  %v22452_v57 = vpack.c.bf16 %v14366_v22, %v14363_v50  ;;  %v14461_v38 = vsub.f32 %v16246_v63, %v14363_v50 }
0x17ab   :  { %20336 = vmatprep.subr.bf16.mxu1 %v22452_v57  ;;  %v14462_v44 = vand.u32 4294901760, %v14461_v38 }
0x17ac   :  { %20338 = vmatpush3.bf16.msra.mxu1 %v22452_v57 }
0x17ad   :  { %v14463_v43 = vsub.f32 %v14461_v38, %v14462_v44  ;;  %20340 = vmatprep.subr.bf16.mxu1 %v20339_v54  ;;  %v22460_v56 = vpack.c.bf16 %v14469_v51, %v14462_v44  ;;  %v14940_v44 = vand.u32 4294901760, %v16254_v33 }
0x17af   :  { %18848 = vmatmul.mubr.f32.vlgmr.msra.gmra.mrb[20].mxu0 %v13844_v62  ;;  %v14464_v52 = vand.u32 4294901760, %v14463_v43  ;;  %v16256_v43 = vld [vmem:[%s22939_s16 + $0xb0] sm:$0xff] }
0x17b0   :  { %20314 = vmatpush3.bf16.msra.mxu0 %v20311_v13  ;;  %18854 = vmatprep.mubr.f32.mxu0 %v13830_v19 }
0x17b1   :  { %20316 = vmatprep.subr.bf16.mxu0 %v20315_v0 }
0x17b7   :  { %18855 = vmatmul.mubr.f32.vlgmr.msra.gmra.mrb[20].mxu0 %v13840_v15 }
0x17b8   :  { %20318 = vmatpush3.bf16.msra.mxu0 %v20315_v0  ;;  %18861 = vmatprep.mubr.f32.mxu0 %v13831_v7  ;;  %v20347_v7 = vpack.c.bf16 %v14454_v11, %v14447_v60  ;;  %v16250_v60 = vld [vmem:[%s22939_s16 + $0x80] sm:$0xff]  ;;  %v16251_v11 = vld [vmem:[%s22939_s16 + $0x88] sm:$0xff] }
0x17b9   :  { %20320 = vmatprep.subr.bf16.mxu0 %v20307_v41 }
0x17bf   :  { %18862 = vmatmul.mubr.f32.vlgmr.msra.gmra.mrb[20].mxu0 %v13841_v18 }
0x17c0   :  { %20322 = vmatpush3.bf16.msra.mxu0 %v20307_v41  ;;  %18868 = vmatprep.mubr.f32.mxu0 %v13832_v31 }
0x17c1   :  { %20324 = vmatprep.subr.bf16.mxu0 %v20323_v27 }
0x17c7   :  { %18869 = vmatmul.mubr.f32.vlgmr.msra.gmra.mrb[20].mxu0 %v13842_v17 }
0x17c8   :  { %20326 = vmatpush3.bf16.msra.mxu0 %v20323_v27  ;;  %18875 = vmatprep.mubr.f32.mxu0 %v13830_v19 }
0x17c9   :  { %20328 = vmatprep.subr.bf16.mxu0 %v20307_v41 }
0x17cf   :  { %18876 = vmatmul.mubr.f32.vlgmr.msra.gmra.mrb[20].mxu0 %v13840_v15 }
0x17d0   :  { %20330 = vmatpush3.bf16.msra.mxu0 %v20307_v41  ;;  %18882 = vmatprep.mubr.f32.mxu0 %v13830_v19  ;;  %v14470_v19 = vsub.f32 %v14468_v10, %v14469_v51  ;;  %v22458_v41 = vpack.c.bf16 %v14455_v26, %v14448_v61  ;;  %v14928_v61 = vand.u32 4294901760, %v16250_v60  ;;  %v14931_v26 = vand.u32 4294901760, %v16251_v11 }
0x17d1   :  { %v14943_v51 = vand.u32 4294901760, %v16255_v58 }
0x17d2   :  { %v14471_v9 = vand.u32 4294901760, %v14470_v19  ;;  %v22490_v20 = vpack.c.bf16 %v14931_v26, %v14928_v61  ;;  %v16257_v19 = vld [vmem:[%s22939_s16 + $0xb8] sm:$0xff] }
0x17d4   :  { %v20343_v3 = vpack.c.bf16 %v14471_v9, %v14464_v52  ;;  %20380 = vmatprep.subr.bf16.mxu0 %v22490_v20  ;;  %v22521_v52 = vld [vmem:[%s22939_s16 + $0xc0] sm:$0xff]  ;;  %v14946_v9 = vand.u32 4294901760, %v16256_v43 }
0x17d7   :  { %18883 = vmatmul.mubr.f32.vlgmr.msra.gmra.mrb[20].mxu0 %v13840_v15  ;;  %v20351_v15 = vpack.c.bf16 %v14468_v10, %v14461_v38 }
0x17d8   :  { %20382 = vmatpush3.bf16.msra.mxu0 %v22490_v20 }
0x18aa   :  { %v18884_v2 = vpop.f32.mrb[20].mxu0 }
0x18ab   :  { %v14266_v47 = vadd.f32 %v18884_v2, %v21980_v8  ;;  %v14255_v49 = vpop.f32.mrb[21].mxu0 }
0x18ac   :  { %v14265_v30 = vadd.f32 %v14255_v49, %v21983_v45  ;;  %v16242_v49 = vld [vmem:[%s22937_s12 + $0x1] ss:$0 sm:$0xff] }
0x18ad   :  { %v22418_v35 = vadd.f32 %v16239_v14, %v14266_v47 }
0x18ae   :  { %v22420_v6 = vadd.f32 %v16239_v14, %v14265_v30 }
0x18af   :  { %v14284_v24 = vsel %vm71_vm0, %v22418_v35, 0.0 }
0x18b0   :  { %14285 = vadd.xlane.f32.xlu1 %v14284_v24  ;;  %v14281_v36 = vsel %vm71_vm0, %v22420_v6, 0.0 }
0x18b1   :  { %14282 = vadd.xlane.f32.xlu0 %v14281_v36 }
0x193d   :  { %v14286_v23 = vpop.xlane.xlu1 %14285 }
0x193e   :  { %v14288_v46 = vmul.f32 0.03125, %v14286_v23  ;;  %v14283_v21 = vpop.xlane.xlu0 %14282  ;;  %v16243_v23 = vld [vmem:[%s22938_s13 + $0x1] ss:$0 sm:$0xff] }
0x193f   :  { %v14287_v16 = vmul.f32 0.03125, %v14283_v21 }
0x1940   :  { %v22427_v8 = vsub.f32 %v22418_v35, %v14288_v46 }
0x1941   :  { %v22430_v45 = vsub.f32 %v22420_v6, %v14287_v16 }
0x1942   :  { %v14292_v37 = vmul.f32 %v22427_v8, %v22427_v8  ;;  %v14308_v30 = vmul.f32 %v16242_v49, %v22427_v8 }
0x1943   :  { %v14291_v40 = vmul.f32 %v22430_v45, %v22430_v45  ;;  %v14307_v36 = vmul.f32 %v16242_v49, %v22430_v45  ;;  %v22599_v49 = vsub.f32 %v16250_v60, %v14928_v61 }
0x1944   :  { %v14296_v32 = vsel %vm71_vm0, %v14292_v37, 0.0 }
0x1945   :  { %14297 = vadd.xlane.f32.xlu1 %v14296_v32  ;;  %v14293_v4 = vsel %vm71_vm0, %v14291_v40, 0.0 }
0x1946   :  { %14294 = vadd.xlane.f32.xlu0 %v14293_v4 }
0x19d2   :  { %v14298_v48 = vpop.xlane.xlu1 %14297 }
0x19d3   :  { %v14300_v31 = vmul.f32 0.032258064, %v14298_v48  ;;  %v14295_v18 = vpop.xlane.xlu0 %14294 }
0x19d4   :  { %v14299_v53 = vmul.f32 0.032258064, %v14295_v18 }
0x19d5   :  { %21007 = vrsqrt.f32 %v14300_v31  ;;  %vm14318_vm14 = vcmp.eq.f32.partialorder %v14300_v31, inf  ;;  %v14321_v13 = vand.u32 2147483648, %v14300_v31  ;;  %vm14320_vm15 = vcmp.eq.f32.partialorder %v14300_v31, 0.0 }
0x19d6   :  { %21009 = vrsqrt.f32 %v14299_v53  ;;  %vm14311_vm1 = vcmp.eq.f32.partialorder %v14299_v53, inf  ;;  %v14314_v62 = vand.u32 2147483648, %v14299_v53  ;;  %vm14313_vm2 = vcmp.eq.f32.partialorder %v14299_v53, 0.0 }
0x19df   :  { %v21008_v12 = vpop.eup %21007 }
0x19e0   :  { %v21010_v42 = vpop.eup %21009  ;;  %v14317_v17 = vmul.f32 %v21008_v12, %v14300_v31 }
0x19e1   :  { %v14310_v28 = vmul.f32 %v21010_v42, %v14299_v53  ;;  %v22554_v42 = vld [vmem:[%s22939_s16 + $0xe0] sm:$0xff] }
0x19e2   :  { %v14319_v55 = vsel %vm14318_vm14, %v14300_v31, %v14317_v17  ;;  %v22559_v17 = vld [vmem:[%s22939_s16 + $0xe8] sm:$0xff] }
0x19e3   :  { %v14322_v0 = vsel %vm14320_vm15, %v14321_v13, %v14319_v55  ;;  %v14312_v27 = vsel %vm14311_vm1, %v14299_v53, %v14310_v28  ;;  %v14964_v28 = vand.u32 4294901760, %v22554_v42  ;;  %v14967_v55 = vand.u32 4294901760, %v22559_v17 }
0x19e4   :  { %v14324_v2 = vadd.f32 1e-06, %v14322_v0  ;;  %v14315_v14 = vsel %vm14313_vm2, %v14314_v62, %v14312_v27  ;;  %v22574_v62 = vld [vmem:[%s22939_s16 + $0xf0] sm:$0xff]  ;;  %v22579_v0 = vld [vmem:[%s22939_s16 + $0xf8] sm:$0xff] }
0x19e5   :  { %v14323_v47 = vadd.f32 1e-06, %v14315_v14  ;;  %v22587_v27 = vpack.c.bf16 %v14967_v55, %v14964_v28  ;;  %v14973_v14 = vand.u32 4294901760, %v22579_v0 }
0x19e6   :  { %21011 = vrcp.f32 %v14324_v2  ;;  %v14970_v2 = vand.u32 4294901760, %v22574_v62 }
0x19e7   :  { %21013 = vrcp.f32 %v14323_v47 }
0x19e8   :  { %v22597_v47 = vpack.c.bf16 %v14973_v14, %v14970_v2 }
0x19f0   :  { %v21012_v24 = vpop.eup %21011 }
0x19f1   :  { %v21014_v46 = vpop.eup %21013  ;;  %v14328_v21 = vmul.f32 %v21012_v24, %v14308_v30  ;;  %v22601_v30 = vsub.f32 %v16251_v11, %v14931_v26  ;;  %v15031_v24 = vand.u32 4294901760, %v22599_v49  ;;  %v22640_v11 = vsub.f32 %v16256_v43, %v14946_v9 }
0x19f2   :  { %v14326_v16 = vmul.f32 %v21014_v46, %v14307_v36 }
0x19f3   :  { %v14336_v37 = vadd.f32 %v16243_v23, %v14328_v21  ;;  %v22964_v36 = vand.u32 4294901760, %v22601_v30 }
0x19f4   :  { %v14335_v40 = vadd.f32 %v16243_v23, %v14326_v16  ;;  %v15032_v23 = vsub.f32 %v22599_v49, %v15031_v24 }
0x19f5   :  { %v14354_v32 = vsel %vm71_vm0, %v14336_v37, 0  ;;  %v15039_v46 = vsub.f32 %v22601_v30, %v22964_v36 }
0x19f6   :  { %v14351_v4 = vsel %vm71_vm0, %v14335_v40, 0  ;;  %v14435_v29 = vand.u32 4294901760, %v14354_v32  ;;  %v15033_v37 = vand.u32 4294901760, %v15032_v23 }
0x19f7   :  { %v14425_v34 = vand.u32 4294901760, %v14351_v4  ;;  %v15040_v40 = vand.u32 4294901760, %v15039_v46 }
0x19f8   :  { %v14436_v63 = vsub.f32 %v14354_v32, %v14435_v29 }
0x19f9   :  { %v14426_v8 = vsub.f32 %v14351_v4, %v14425_v34 }
0x19fa   :  { %v14437_v5 = vand.u32 4294901760, %v14436_v63 }
0x19fb   :  { %v14427_v59 = vand.u32 4294901760, %v14426_v8 }
0x19fc   :  { %v14438_v45 = vsub.f32 %v14436_v63, %v14437_v5 }
0x19fd   :  { %v14428_v1 = vsub.f32 %v14426_v8, %v14427_v59 }
0x19fe   :  { %v14439_v22 = vand.u32 4294901760, %v14438_v45 }
0x19ff   :  { %v14429_v50 = vand.u32 4294901760, %v14428_v1 }
0x1a01   :  { %18893 = vmatprep.mubr.f32.mxu1 %v14429_v50 }
0x1a02   :  { %18894 = vmatmul.mubr.f32.vlgmr.msra.gmra.mrb[30].mxu1 %v14439_v22 }
0x1a03   :  { %20342 = vmatpush3.bf16.msra.mxu1 %v20339_v54  ;;  %18904 = vmatprep.mubr.f32.mxu1 %v14425_v34  ;;  %v22510_v54 = vpack.c.bf16 %v14943_v51, %v14940_v44 }
0x1a04   :  { %20344 = vmatprep.subr.bf16.mxu1 %v20343_v3 }
0x1a07   :  { %20346 = vmatpush3.bf16.msra.mxu1 %v20343_v3  ;;  %v14949_v3 = vand.u32 4294901760, %v16257_v19 }
0x1a08   :  { %20348 = vmatprep.subr.bf16.mxu1 %v20347_v7 }
0x1a09   :  { %v22542_v31 = vpack.c.bf16 %v14949_v3, %v14946_v9  ;;  %v22642_v61 = vsub.f32 %v16257_v19, %v14949_v3 }
0x1a0a   :  { %18905 = vmatmul.mubr.f32.vlgmr.msra.gmra.mrb[30].mxu1 %v14435_v29 }
0x1a0b   :  { %20350 = vmatpush3.bf16.msra.mxu1 %v20347_v7  ;;  %18915 = vmatprep.mubr.f32.mxu1 %v14426_v8  ;;  %v22526_v7 = vld [vmem:[%s22939_s16 + $0xc8] sm:$0xff]  ;;  %v22628_v8 = vsub.f32 %v16254_v33, %v14940_v44 }
0x1a0c   :  { %20352 = vmatprep.subr.bf16.mxu1 %v20351_v15  ;;  %v14955_v48 = vand.u32 4294901760, %v22526_v7 }
0x1a0d   :  { %v22961_v1 = vand.u32 4294901760, %v22628_v8 }
0x1a0f   :  { %20354 = vmatpush3.bf16.msra.mxu1 %v20351_v15  ;;  %v14952_v15 = vand.u32 4294901760, %v22521_v52  ;;  %v15060_v60 = vsub.f32 %v22628_v8, %v22961_v1 }
0x1a10   :  { %20356 = vmatprep.subr.bf16.mxu1 %v22450_v25 }
0x1a11   :  { %v22546_v18 = vpack.c.bf16 %v14955_v48, %v14952_v15  ;;  %v22658_v44 = vsub.f32 %v22521_v52, %v14952_v15 }
0x1a12   :  { %18916 = vmatmul.mubr.f32.vlgmr.msra.gmra.mrb[30].mxu1 %v14436_v63 }
0x1a13   :  { %20358 = vmatpush3.bf16.msra.mxu1 %v22450_v25  ;;  %18926 = vmatprep.mubr.f32.mxu1 %v14427_v59  ;;  %v22957_v3 = vand.u32 4294901760, %v22658_v44 }
0x1a14   :  { %20360 = vmatprep.subr.bf16.mxu1 %v22452_v57 }
0x1a17   :  { %20362 = vmatpush3.bf16.msra.mxu1 %v22452_v57 }
0x1a18   :  { %20364 = vmatprep.subr.bf16.mxu1 %v22458_v41 }
0x1a1a   :  { %18927 = vmatmul.mubr.f32.vlgmr.msra.gmra.mrb[30].mxu1 %v14437_v5  ;;  %v22630_v5 = vsub.f32 %v16255_v58, %v14943_v51  ;;  %v22661_v51 = vsub.f32 %v22526_v7, %v14955_v48 }
0x1a1b   :  { %20366 = vmatpush3.bf16.msra.mxu1 %v22458_v41  ;;  %18937 = vmatprep.mubr.f32.mxu1 %v14425_v34  ;;  %v22532_v41 = vld [vmem:[%s22939_s16 + $0xd0] sm:$0xff] }
0x1a1c   :  { %20368 = vmatprep.subr.bf16.mxu1 %v22460_v56  ;;  %v14958_v53 = vand.u32 4294901760, %v22532_v41  ;;  %v22960_v50 = vand.u32 4294901760, %v22630_v5  ;;  %v22956_v23 = vand.u32 4294901760, %v22661_v51 }
0x1a1e   :  { %v15067_v26 = vsub.f32 %v22630_v5, %v22960_v50  ;;  %v15095_v52 = vsub.f32 %v22661_v51, %v22956_v23  ;;  %v22678_v7 = vsub.f32 %v22532_v41, %v14958_v53  ;;  %v22695_v41 = vsub.f32 %v22554_v42, %v14964_v28 }
0x1a1f   :  { %20370 = vmatpush3.bf16.msra.mxu1 %v22460_v56  ;;  %v22537_v56 = vld [vmem:[%s22939_s16 + $0xd8] sm:$0xff] }
0x1a20   :  { %20372 = vmatprep.subr.bf16.mxu1 %v22450_v25  ;;  %v14961_v12 = vand.u32 4294901760, %v22537_v56 }
0x1a22   :  { %18938 = vmatmul.mubr.f32.vlgmr.msra.gmra.mrb[30].mxu1 %v14435_v29  ;;  %v22567_v13 = vpack.c.bf16 %v14961_v12, %v14958_v53  ;;  %v22683_v15 = vsub.f32 %v22537_v56, %v14961_v12  ;;  %v22700_v56 = vsub.f32 %v22559_v17, %v14967_v55  ;;  %v22716_v17 = vsub.f32 %v22574_v62, %v14970_v2 }
0x1a23   :  { %20374 = vmatpush3.bf16.msra.mxu1 %v22450_v25  ;;  %18948 = vmatprep.mubr.f32.mxu1 %v14425_v34  ;;  %v16252_v25 = vld [vmem:[%s22939_s16 + $0x90] sm:$0xff]  ;;  %v22721_v55 = vsub.f32 %v22579_v0, %v14973_v14 }
0x1a24   :  { %20376 = vmatprep.subr.bf16.mxu1 %v22452_v57  ;;  %v14934_v39 = vand.u32 4294901760, %v16252_v25 }
0x1a26   :  { %v22613_v21 = vsub.f32 %v16252_v25, %v14934_v39  ;;  %v15061_v25 = vand.u32 4294901760, %v15060_v60  ;;  %v22953_v60 = vand.u32 4294901760, %v22695_v41 }
0x1a27   :  { %20378 = vmatpush3.bf16.msra.mxu1 %v22452_v57  ;;  %v16253_v57 = vld [vmem:[%s22939_s16 + $0x98] sm:$0xff] }
0x1a28   :  { %v14937_v38 = vand.u32 4294901760, %v16253_v57  ;;  %v22963_v32 = vand.u32 4294901760, %v22613_v21  ;;  %v15116_v42 = vsub.f32 %v22695_v41, %v22953_v60 }
0x1a2a   :  { %18949 = vmatmul.mubr.f32.vlgmr.msra.gmra.mrb[30].mxu1 %v14435_v29  ;;  %v22500_v10 = vpack.c.bf16 %v14937_v38, %v14934_v39  ;;  %v22615_v16 = vsub.f32 %v16253_v57, %v14937_v38  ;;  %v22620_v29 = vpack.c.bf16 %v15040_v40, %v15033_v37  ;;  %v15046_v34 = vsub.f32 %v22613_v21, %v22963_v32 }
0x1a2b   :  { %v22959_v57 = vand.u32 4294901760, %v22640_v11  ;;  %v22958_v39 = vand.u32 4294901760, %v22642_v61  ;;  %v15068_v38 = vand.u32 4294901760, %v15067_v26  ;;  %v15088_v37 = vsub.f32 %v22658_v44, %v22957_v3 }
0x1a2c   :  { %20384 = vmatprep.subr.bf16.mxu0 %v22500_v10  ;;  %v22962_v4 = vand.u32 4294901760, %v22615_v16  ;;  %v15047_v59 = vand.u32 4294901760, %v15046_v34  ;;  %v15096_v40 = vand.u32 4294901760, %v15095_v52  ;;  %v22955_v34 = vand.u32 4294901760, %v22678_v7 }
0x1a2d   :  { %20386 = vmatpush3.bf16.msra.mxu0 %v22500_v10  ;;  %v15074_v33 = vsub.f32 %v22640_v11, %v22959_v57  ;;  %v15081_v58 = vsub.f32 %v22642_v61, %v22958_v39  ;;  %v22663_v43 = vpack.c.bf16 %v15068_v38, %v15061_v25  ;;  %v15089_v48 = vand.u32 4294901760, %v15088_v37 }
0x1a2e   :  { %20388 = vmatprep.subr.bf16.mxu0 %v22510_v54  ;;  %v15053_v63 = vsub.f32 %v22615_v16, %v22962_v4  ;;  %v22952_v26 = vand.u32 4294901760, %v22700_v56 }
0x1a2f   :  { %v15075_v19 = vand.u32 4294901760, %v15074_v33  ;;  %v15082_v9 = vand.u32 4294901760, %v15081_v58  ;;  %v15117_v33 = vand.u32 4294901760, %v15116_v42  ;;  %v22759_v42 = vpack.c.bf16 %v22700_v56, %v22695_v41 }
0x1a30   :  { %v15054_v45 = vand.u32 4294901760, %v15053_v63  ;;  %v22954_v63 = vand.u32 4294901760, %v22683_v15  ;;  %v15123_v28 = vsub.f32 %v22700_v56, %v22952_v26 }
0x1a31   :  { %20390 = vmatpush3.bf16.msra.mxu0 %v22510_v54  ;;  %v22667_v46 = vpack.c.bf16 %v15082_v9, %v15075_v19  ;;  %v22951_v19 = vand.u32 4294901760, %v22716_v17  ;;  %v22950_v9 = vand.u32 4294901760, %v22721_v55 }
0x1a32   :  { %20392 = vmatprep.subr.bf16.mxu0 %v22542_v31  ;;  %v22635_v22 = vpack.c.bf16 %v15054_v45, %v15047_v59  ;;  %v22687_v59 = vpack.c.bf16 %v15096_v40, %v15089_v48  ;;  %v15102_v45 = vsub.f32 %v22678_v7, %v22955_v34  ;;  %v15109_v53 = vsub.f32 %v22683_v15, %v22954_v63 }
0x1a33   :  { %v15124_v58 = vand.u32 4294901760, %v15123_v28  ;;  %v15130_v62 = vsub.f32 %v22716_v17, %v22951_v19  ;;  %v15137_v2 = vsub.f32 %v22721_v55, %v22950_v9  ;;  %v20443_v48 = vpack.c.bf16 %v22601_v30, %v22599_v49 }
0x1a34   :  { %v15103_v12 = vand.u32 4294901760, %v15102_v45  ;;  %v15110_v25 = vand.u32 4294901760, %v15109_v53  ;;  %v22739_v40 = vpack.c.bf16 %v22615_v16, %v22613_v21  ;;  %v22743_v45 = vpack.c.bf16 %v22630_v5, %v22628_v8 }
0x1a35   :  { %20394 = vmatpush3.bf16.msra.mxu0 %v22542_v31  ;;  %v22727_v37 = vpack.c.bf16 %v15124_v58, %v15117_v33  ;;  %v15131_v0 = vand.u32 4294901760, %v15130_v62  ;;  %v15138_v14 = vand.u32 4294901760, %v15137_v2  ;;  %v22747_v53 = vpack.c.bf16 %v22642_v61, %v22640_v11  ;;  %v16249_v33 = vld [vmem:[%s22940_s15 + $0x1] ss:$0 sm:$0xff] }
0x1a36   :  { %20396 = vmatprep.subr.bf16.mxu0 %v22546_v18  ;;  %v22723_v38 = vpack.c.bf16 %v15110_v25, %v15103_v12  ;;  %v22751_v12 = vpack.c.bf16 %v22661_v51, %v22658_v44  ;;  %v22755_v25 = vpack.c.bf16 %v22683_v15, %v22678_v7  ;;  %v22763_v28 = vpack.c.bf16 %v22721_v55, %v22716_v17 }
0x1a37   :  { %v20439_v52 = vpack.c.bf16 %v15138_v14, %v15131_v0  ;;  %v22978_v49 = vand.u32 4294901760, %v22628_v8  ;;  %v22984_v8 = vand.u32 4294901760, %v22678_v7  ;;  %v15616_v7 = vld [vmem:[%s22942_s18 + $0x18] sm:$0xff] }
0x1a39   :  { %20398 = vmatpush3.bf16.msra.mxu0 %v22546_v18 }
0x1a3a   :  { %20400 = vmatprep.subr.bf16.mxu0 %v22567_v13 }
0x1a3d   :  { %20402 = vmatpush3.bf16.msra.mxu0 %v22567_v13 }
0x1a3e   :  { %20404 = vmatprep.subr.bf16.mxu0 %v22587_v27 }
0x1a41   :  { %20406 = vmatpush3.bf16.msra.mxu0 %v22587_v27 }
0x1a42   :  { %20408 = vmatprep.subr.bf16.mxu0 %v22597_v47 }
0x1a45   :  { %20410 = vmatpush3.bf16.msra.mxu0 %v22597_v47 }
0x1a46   :  { %20412 = vmatprep.subr.bf16.mxu0 %v22620_v29 }
0x1afd   :  { %v18950_v58 = vpop.f32.mrb[30].mxu1 }
0x1afe   :  { %v20651_v62 = vadd.f32 %v18950_v58, %v16249_v33  ;;  %v14874_v2 = vpop.f32.mrb[31].mxu1 }
0x1aff   :  { %v20652_v0 = vadd.f32 %v16249_v33, %v14874_v2 }
0x1b00   :  { %v14887_v14 = vmul.f32 0.044715, %v20651_v62  ;;  %v14885_v1 = vmul.f32 0.5, %v20651_v62 }
0x1b01   :  { %v14886_v9 = vmul.f32 0.044715, %v20652_v0  ;;  %v14884_v32 = vmul.f32 0.5, %v20652_v0 }
0x1b02   :  { %v14889_v19 = vmul.f32 %v20651_v62, %v14887_v14 }
0x1b03   :  { %v14888_v26 = vmul.f32 %v20652_v0, %v14886_v9 }
0x1b04   :  { %v14891_v60 = vmul.f32 %v20651_v62, %v14889_v19 }
0x1b05   :  { %v14890_v63 = vmul.f32 %v20652_v0, %v14888_v26 }
0x1b06   :  { %v14893_v34 = vadd.f32 %v20651_v62, %v14891_v60 }
0x1b07   :  { %v14892_v23 = vadd.f32 %v20652_v0, %v14890_v63  ;;  %v22983_v63 = vand.u32 4294901760, %v22661_v51  ;;  %v22989_v51 = vand.u32 4294901760, %v22721_v55 }
0x1b08   :  { %v14895_v3 = vmul.f32 0.7978846, %v14893_v34 }
0x1b09   :  { %v14894_v39 = vmul.f32 0.7978846, %v14892_v23 }
0x1b0a   :  { %21015 = vtanh.f32 %v14895_v3 }
0x1b0b   :  { %21017 = vtanh.f32 %v14894_v39 }
0x1b14   :  { %v21016_v57 = vpop.eup %21015 }
0x1b15   :  { %v21018_v50 = vpop.eup %21017  ;;  %v14899_v4 = vadd.f32 1.0, %v21016_v57 }
0x1b16   :  { %v14898_v58 = vadd.f32 1.0, %v21018_v50 }
0x1b17   :  { %v14901_v36 = vmul.f32 %v14899_v4, %v14885_v1  ;;  %v22977_v1 = vand.u32 4294901760, %v22615_v16 }
0x1b18   :  { %v14900_v33 = vmul.f32 %v14898_v58, %v14884_v32 }
0x1b19   :  { %v22768_v2 = vand.u32 4294901760, %v14901_v36 }
0x1b1a   :  { %v22770_v14 = vand.u32 4294901760, %v14900_v33 }
0x1b1b   :  { %v22773_v26 = vsub.f32 %v14901_v36, %v22768_v2  ;;  %v22975_v36 = vand.u32 4294901760, %v22601_v30  ;;  %v22979_v30 = vand.u32 4294901760, %v22630_v5  ;;  %v22985_v5 = vand.u32 4294901760, %v22683_v15 }
0x1b1c   :  { %v15009_v34 = vsub.f32 %v14900_v33, %v22770_v14 }
0x1b1d   :  { %v15020_v3 = vand.u32 4294901760, %v22773_v26  ;;  %v20507_v32 = vpack.c.bf16 %v22975_v36, %v15031_v24  ;;  %v20515_v24 = vpack.c.bf16 %v22979_v30, %v22978_v49  ;;  %v20527_v60 = vpack.c.bf16 %v22985_v5, %v22984_v8 }
0x1b1e   :  { %v15010_v39 = vand.u32 4294901760, %v15009_v34 }
0x1b1f   :  { %v15021_v57 = vsub.f32 %v22773_v26, %v15020_v3 }
0x1b20   :  { %v15011_v23 = vsub.f32 %v15009_v34, %v15010_v39 }
0x1b21   :  { %v15022_v4 = vand.u32 4294901760, %v15021_v57 }
0x1b22   :  { %v15012_v50 = vand.u32 4294901760, %v15011_v23 }
0x1b24   :  { %18983 = vmatprep.mubr.f32.mxu0 %v15012_v50 }
0x1b25   :  { %18984 = vmatmul.mubr.f32.vlgmr.msra.gmra.mrb[22].mxu0 %v15022_v4 }
0x1b26   :  { %20414 = vmatpush3.bf16.msra.mxu0 %v22620_v29  ;;  %19018 = vmatprep.mubr.f32.mxu0 %v22770_v14  ;;  %v22976_v29 = vand.u32 4294901760, %v22613_v21  ;;  %v22981_v21 = vand.u32 4294901760, %v22642_v61  ;;  %v22987_v61 = vand.u32 4294901760, %v22700_v56 }
0x1b27   :  { %20416 = vmatprep.subr.bf16.mxu0 %v22635_v22 }
0x1b2a   :  { %20418 = vmatpush3.bf16.msra.mxu0 %v22635_v22  ;;  %v20511_v22 = vpack.c.bf16 %v22977_v1, %v22976_v29 }
0x1b2b   :  { %20420 = vmatprep.subr.bf16.mxu0 %v22663_v43 }
0x1b2e   :  { %20422 = vmatpush3.bf16.msra.mxu0 %v22663_v43  ;;  %v22980_v43 = vand.u32 4294901760, %v22640_v11  ;;  %v22986_v11 = vand.u32 4294901760, %v22695_v41  ;;  %v15640_v41 = vand.u32 4294901760, %v15616_v7 }
0x1b2f   :  { %20424 = vmatprep.subr.bf16.mxu0 %v22667_v46 }
0x1b30   :  { %v20519_v16 = vpack.c.bf16 %v22981_v21, %v22980_v43 }
0x1b32   :  { %20426 = vmatpush3.bf16.msra.mxu0 %v22667_v46  ;;  %v22982_v46 = vand.u32 4294901760, %v22658_v44  ;;  %v22988_v44 = vand.u32 4294901760, %v22716_v17 }
0x1b33   :  { %20428 = vmatprep.subr.bf16.mxu0 %v22687_v59 }
0x1b34   :  { %v20535_v19 = vpack.c.bf16 %v22989_v51, %v22988_v44 }
0x1b36   :  { %20430 = vmatpush3.bf16.msra.mxu0 %v22687_v59  ;;  %v20523_v59 = vpack.c.bf16 %v22983_v63, %v22982_v46 }
0x1b37   :  { %20432 = vmatprep.subr.bf16.mxu0 %v22723_v38 }
0x1b3a   :  { %20434 = vmatpush3.bf16.msra.mxu0 %v22723_v38  ;;  %v20531_v38 = vpack.c.bf16 %v22987_v61, %v22986_v11 }
0x1b3b   :  { %20436 = vmatprep.subr.bf16.mxu0 %v22727_v37 }
0x1b3e   :  { %20438 = vmatpush3.bf16.msra.mxu0 %v22727_v37 }
0x1b3f   :  { %20440 = vmatprep.subr.bf16.mxu0 %v20439_v52 }
0x1b42   :  { %20442 = vmatpush3.bf16.msra.mxu0 %v20439_v52 }
0x1b43   :  { %20444 = vmatprep.subr.bf16.mxu0 %v20443_v48 }
0x1b45   :  { %19019 = vmatmul.mubr.f32.vlgmr.msra.gmra.mrb[22].mxu0 %v22768_v2 }
0x1b46   :  { %20446 = vmatpush3.bf16.msra.mxu0 %v20443_v48  ;;  %19053 = vmatprep.mubr.f32.mxu0 %v15009_v34  ;;  %v15742_v48 = vsub.f32 %v15616_v7, %v15640_v41  ;;  %v16267_v34 = vld [vmem:[%s22941_s17 + $0x1] ss:$0 sm:$0xff] }
0x1b47   :  { %20448 = vmatprep.subr.bf16.mxu0 %v22739_v40 }
0x1b4a   :  { %20450 = vmatpush3.bf16.msra.mxu0 %v22739_v40 }
0x1b4b   :  { %20452 = vmatprep.subr.bf16.mxu0 %v22743_v45 }
0x1b4e   :  { %20454 = vmatpush3.bf16.msra.mxu0 %v22743_v45 }
0x1b4f   :  { %20456 = vmatprep.subr.bf16.mxu0 %v22747_v53 }
0x1b52   :  { %20458 = vmatpush3.bf16.msra.mxu0 %v22747_v53 }
0x1b53   :  { %20460 = vmatprep.subr.bf16.mxu0 %v22751_v12 }
0x1b56   :  { %20462 = vmatpush3.bf16.msra.mxu0 %v22751_v12  ;;  %v15743_v12 = vand.u32 4294901760, %v15742_v48 }
0x1b57   :  { %20464 = vmatprep.subr.bf16.mxu0 %v22755_v25 }
0x1b5a   :  { %20466 = vmatpush3.bf16.msra.mxu0 %v22755_v25 }
0x1b5b   :  { %20468 = vmatprep.subr.bf16.mxu0 %v22759_v42 }
0x1b5e   :  { %20470 = vmatpush3.bf16.msra.mxu0 %v22759_v42 }
0x1b5f   :  { %20472 = vmatprep.subr.bf16.mxu0 %v22763_v28 }
0x1b62   :  { %20474 = vmatpush3.bf16.msra.mxu0 %v22763_v28  ;;  %v15744_v28 = vsub.f32 %v15742_v48, %v15743_v12 }
0x1b63   :  { %20476 = vmatprep.subr.bf16.mxu0 %v22490_v20 }
0x1b64   :  { %v15745_v0 = vand.u32 4294901760, %v15744_v28 }
0x1b65   :  { %19054 = vmatmul.mubr.f32.vlgmr.msra.gmra.mrb[22].mxu0 %v22773_v26 }
0x1b66   :  { %20478 = vmatpush3.bf16.msra.mxu0 %v22490_v20  ;;  %19088 = vmatprep.mubr.f32.mxu0 %v15010_v39 }
0x1b67   :  { %20480 = vmatprep.subr.bf16.mxu0 %v22500_v10 }
0x1b6a   :  { %20482 = vmatpush3.bf16.msra.mxu0 %v22500_v10 }
0x1b6b   :  { %20484 = vmatprep.subr.bf16.mxu0 %v22510_v54 }
0x1b6e   :  { %20486 = vmatpush3.bf16.msra.mxu0 %v22510_v54 }
0x1b6f   :  { %20488 = vmatprep.subr.bf16.mxu0 %v22542_v31 }
0x1b72   :  { %20490 = vmatpush3.bf16.msra.mxu0 %v22542_v31 }
0x1b73   :  { %20492 = vmatprep.subr.bf16.mxu0 %v22546_v18 }
0x1b76   :  { %20494 = vmatpush3.bf16.msra.mxu0 %v22546_v18 }
0x1b77   :  { %20496 = vmatprep.subr.bf16.mxu0 %v22567_v13 }
0x1b7a   :  { %20498 = vmatpush3.bf16.msra.mxu0 %v22567_v13 }
0x1b7b   :  { %20500 = vmatprep.subr.bf16.mxu0 %v22587_v27 }
0x1b7e   :  { %20502 = vmatpush3.bf16.msra.mxu0 %v22587_v27 }
0x1b7f   :  { %20504 = vmatprep.subr.bf16.mxu0 %v22597_v47 }
0x1b82   :  { %20506 = vmatpush3.bf16.msra.mxu0 %v22597_v47 }
0x1b83   :  { %20508 = vmatprep.subr.bf16.mxu0 %v20507_v32 }
0x1b85   :  { %19089 = vmatmul.mubr.f32.vlgmr.msra.gmra.mrb[22].mxu0 %v15020_v3 }
0x1b86   :  { %20510 = vmatpush3.bf16.msra.mxu0 %v20507_v32  ;;  %19123 = vmatprep.mubr.f32.mxu0 %v22770_v14 }
0x1b87   :  { %20512 = vmatprep.subr.bf16.mxu0 %v20511_v22 }
0x1b8a   :  { %20514 = vmatpush3.bf16.msra.mxu0 %v20511_v22 }
0x1b8b   :  { %20516 = vmatprep.subr.bf16.mxu0 %v20515_v24 }
0x1b8e   :  { %20518 = vmatpush3.bf16.msra.mxu0 %v20515_v24 }
0x1b8f   :  { %20520 = vmatprep.subr.bf16.mxu0 %v20519_v16 }
0x1b92   :  { %20522 = vmatpush3.bf16.msra.mxu0 %v20519_v16 }
0x1b93   :  { %20524 = vmatprep.subr.bf16.mxu0 %v20523_v59 }
0x1b96   :  { %20526 = vmatpush3.bf16.msra.mxu0 %v20523_v59 }
0x1b97   :  { %20528 = vmatprep.subr.bf16.mxu0 %v20527_v60 }
0x1b9a   :  { %20530 = vmatpush3.bf16.msra.mxu0 %v20527_v60 }
0x1b9b   :  { %20532 = vmatprep.subr.bf16.mxu0 %v20531_v38 }
0x1b9e   :  { %20534 = vmatpush3.bf16.msra.mxu0 %v20531_v38 }
0x1b9f   :  { %20536 = vmatprep.subr.bf16.mxu0 %v20535_v19 }
0x1ba2   :  { %20538 = vmatpush3.bf16.msra.mxu0 %v20535_v19 }
0x1ba3   :  { %20540 = vmatprep.subr.bf16.mxu0 %v22490_v20 }
0x1ba5   :  { %19124 = vmatmul.mubr.f32.vlgmr.msra.gmra.mrb[22].mxu0 %v22768_v2 }
0x1ba6   :  { %20542 = vmatpush3.bf16.msra.mxu0 %v22490_v20  ;;  %19158 = vmatprep.mubr.f32.mxu0 %v22770_v14  ;;  %v15613_v20 = vld [vmem:[%s22942_s18] sm:$0xff] }
0x1ba7   :  { %20544 = vmatprep.subr.bf16.mxu0 %v22500_v10 }
0x1baa   :  { %20546 = vmatpush3.bf16.msra.mxu0 %v22500_v10  ;;  %v15614_v10 = vld [vmem:[%s22942_s18 + $0x8] sm:$0xff] }
0x1bab   :  { %20548 = vmatprep.subr.bf16.mxu0 %v22510_v54 }
0x1bae   :  { %20550 = vmatpush3.bf16.msra.mxu0 %v22510_v54  ;;  %v15631_v54 = vand.u32 4294901760, %v15613_v20 }
0x1baf   :  { %20552 = vmatprep.subr.bf16.mxu0 %v22542_v31 }
0x1bb2   :  { %20554 = vmatpush3.bf16.msra.mxu0 %v22542_v31  ;;  %v15634_v31 = vand.u32 4294901760, %v15614_v10 }
0x1bb3   :  { %20556 = vmatprep.subr.bf16.mxu0 %v22546_v18 }
0x1bb6   :  { %20558 = vmatpush3.bf16.msra.mxu0 %v22546_v18  ;;  %v22886_v18 = vpack.c.bf16 %v15634_v31, %v15631_v54 }
0x1bb7   :  { %20560 = vmatprep.subr.bf16.mxu0 %v22567_v13 }
0x1bb8   :  { %20572 = vmatprep.subr.bf16.mxu1 %v22886_v18 }
0x1bb9   :  { %20574 = vmatpush3.bf16.msra.mxu1 %v22886_v18 }
0x1bba   :  { %20562 = vmatpush3.bf16.msra.mxu0 %v22567_v13  ;;  %v15721_v13 = vsub.f32 %v15613_v20, %v15631_v54 }
0x1bbb   :  { %20564 = vmatprep.subr.bf16.mxu0 %v22587_v27 }
0x1bbc   :  { %v15722_v56 = vand.u32 4294901760, %v15721_v13 }
0x1bbe   :  { %20566 = vmatpush3.bf16.msra.mxu0 %v22587_v27  ;;  %v15728_v27 = vsub.f32 %v15614_v10, %v15634_v31  ;;  %v15723_v9 = vsub.f32 %v15721_v13, %v15722_v56 }
0x1bbf   :  { %20568 = vmatprep.subr.bf16.mxu0 %v22597_v47 }
0x1bc0   :  { %v15729_v17 = vand.u32 4294901760, %v15728_v27  ;;  %v15724_v40 = vand.u32 4294901760, %v15723_v9  ;;  %v20587_v33 = vpack.c.bf16 %v15728_v27, %v15721_v13 }
0x1bc2   :  { %20570 = vmatpush3.bf16.msra.mxu0 %v22597_v47  ;;  %v15615_v47 = vld [vmem:[%s22942_s18 + $0x10] sm:$0xff]  ;;  %v15730_v37 = vsub.f32 %v15728_v27, %v15729_v17  ;;  %v20603_v14 = vpack.c.bf16 %v15729_v17, %v15722_v56 }
0x1bc3   :  { %v15637_v15 = vand.u32 4294901760, %v15615_v47 }
0x1bc4   :  { %v15731_v45 = vand.u32 4294901760, %v15730_v37 }
0x1bc5   :  { %19159 = vmatmul.mubr.f32.vlgmr.msra.gmra.mrb[22].mxu0 %v22768_v2  ;;  %v22896_v55 = vpack.c.bf16 %v15640_v41, %v15637_v15  ;;  %v15735_v52 = vsub.f32 %v15615_v47, %v15637_v15 }
0x1bc6   :  { %v20579_v25 = vpack.c.bf16 %v15731_v45, %v15724_v40 }
0x1bc7   :  { %20576 = vmatprep.subr.bf16.mxu1 %v22896_v55  ;;  %v15736_v53 = vand.u32 4294901760, %v15735_v52  ;;  %v20591_v2 = vpack.c.bf16 %v15742_v48, %v15735_v52 }
0x1bc8   :  { %20578 = vmatpush3.bf16.msra.mxu1 %v22896_v55 }
0x1bc9   :  { %v15737_v42 = vsub.f32 %v15735_v52, %v15736_v53  ;;  %20580 = vmatprep.subr.bf16.mxu1 %v20579_v25  ;;  %v20607_v26 = vpack.c.bf16 %v15743_v12, %v15736_v53 }
0x1bcb   :  { %v15738_v62 = vand.u32 4294901760, %v15737_v42 }
0x1bcd   :  { %v20583_v58 = vpack.c.bf16 %v15745_v0, %v15738_v62 }
0x1c98   :  { %v19160_v3 = vpop.f32.mrb[22].mxu0 }
0x1c99   :  { %v20653_v39 = vadd.f32 %v19160_v3, %v16267_v34  ;;  %v15601_v57 = vpop.f32.mrb[23].mxu0 }
0x1c9a   :  { %v20654_v23 = vadd.f32 %v16267_v34, %v15601_v57 }
0x1c9b   :  { %v15612_v50 = vadd.f32 %v20653_v39, %v22418_v35  ;;  %v16268_v35 = vld [vmem:[%s22943_s19] ss:$0 sm:$0xff] }
0x1c9c   :  { %v15611_v4 = vadd.f32 %v20654_v23, %v22420_v6 }
0x1c9d   :  { %v15628_v36 = vsel %vm71_vm0, %v15612_v50, 0 }
0x1c9e   :  { %v15709_v32 = vand.u32 4294901760, %v15628_v36  ;;  %v15625_v29 = vsel %vm71_vm0, %v15611_v4, 0 }
0x1c9f   :  { %v15699_v1 = vand.u32 4294901760, %v15625_v29 }
0x1ca0   :  { %v15710_v22 = vsub.f32 %v15628_v36, %v15709_v32 }
0x1ca1   :  { %v15700_v49 = vsub.f32 %v15625_v29, %v15699_v1 }
0x1ca2   :  { %v15711_v30 = vand.u32 4294901760, %v15710_v22 }
0x1ca3   :  { %v15701_v24 = vand.u32 4294901760, %v15700_v49 }
0x1ca4   :  { %v15712_v43 = vsub.f32 %v15710_v22, %v15711_v30 }
0x1ca5   :  { %v15702_v21 = vsub.f32 %v15700_v49, %v15701_v24 }
0x1ca6   :  { %v15713_v46 = vand.u32 4294901760, %v15712_v43 }
0x1ca7   :  { %v15703_v16 = vand.u32 4294901760, %v15702_v21 }
0x1ca9   :  { %19169 = vmatprep.mubr.f32.mxu1 %v15703_v16 }
0x1caa   :  { %19170 = vmatmul.mubr.f32.vlgmr.msra.gmra.mrb[32].mxu1 %v15713_v46 }
0x1cab   :  { %20582 = vmatpush3.bf16.msra.mxu1 %v20579_v25  ;;  %19180 = vmatprep.mubr.f32.mxu1 %v15699_v1 }
0x1cac   :  { %20584 = vmatprep.subr.bf16.mxu1 %v20583_v58 }
0x1caf   :  { %20586 = vmatpush3.bf16.msra.mxu1 %v20583_v58 }
0x1cb0   :  { %20588 = vmatprep.subr.bf16.mxu1 %v20587_v33 }
0x1cb2   :  { %19181 = vmatmul.mubr.f32.vlgmr.msra.gmra.mrb[32].mxu1 %v15709_v32 }
0x1cb3   :  { %20590 = vmatpush3.bf16.msra.mxu1 %v20587_v33  ;;  %19191 = vmatprep.mubr.f32.mxu1 %v15700_v49 }
0x1cb4   :  { %20592 = vmatprep.subr.bf16.mxu1 %v20591_v2 }
0x1cb7   :  { %20594 = vmatpush3.bf16.msra.mxu1 %v20591_v2 }
0x1cb8   :  { %20596 = vmatprep.subr.bf16.mxu1 %v22886_v18 }
0x1cba   :  { %19192 = vmatmul.mubr.f32.vlgmr.msra.gmra.mrb[32].mxu1 %v15710_v22 }
0x1cbb   :  { %20598 = vmatpush3.bf16.msra.mxu1 %v22886_v18  ;;  %19202 = vmatprep.mubr.f32.mxu1 %v15701_v24 }
0x1cbc   :  { %20600 = vmatprep.subr.bf16.mxu1 %v22896_v55 }
0x1cbf   :  { %20602 = vmatpush3.bf16.msra.mxu1 %v22896_v55 }
0x1cc0   :  { %20604 = vmatprep.subr.bf16.mxu1 %v20603_v14 }
0x1cc2   :  { %19203 = vmatmul.mubr.f32.vlgmr.msra.gmra.mrb[32].mxu1 %v15711_v30 }
0x1cc3   :  { %20606 = vmatpush3.bf16.msra.mxu1 %v20603_v14  ;;  %19213 = vmatprep.mubr.f32.mxu1 %v15699_v1 }
0x1cc4   :  { %20608 = vmatprep.subr.bf16.mxu1 %v20607_v26 }
0x1cc7   :  { %20610 = vmatpush3.bf16.msra.mxu1 %v20607_v26 }
0x1cc8   :  { %20612 = vmatprep.subr.bf16.mxu1 %v22886_v18 }
0x1cca   :  { %19214 = vmatmul.mubr.f32.vlgmr.msra.gmra.mrb[32].mxu1 %v15709_v32 }
0x1ccb   :  { %20614 = vmatpush3.bf16.msra.mxu1 %v22886_v18  ;;  %19224 = vmatprep.mubr.f32.mxu1 %v15699_v1 }
0x1ccc   :  { %20616 = vmatprep.subr.bf16.mxu1 %v22896_v55 }
0x1ccf   :  { %20618 = vmatpush3.bf16.msra.mxu1 %v22896_v55 }
0x1cd2   :  { %19225 = vmatmul.mubr.f32.vlgmr.msra.gmra.mrb[32].mxu1 %v15709_v32 }
0x1da5   :  { %v19226_v6 = vpop.f32.mrb[32].mxu1 }
0x1da6   :  { %v20655_v63 = vadd.f32 %v19226_v6, %v16268_v35  ;;  %v16148_v59 = vpop.f32.mrb[33].mxu1 }
0x1da7   :  { %v20656_v8 = vadd.f32 %v16268_v35, %v16148_v59 }
0x1da8   :  { %16159 = vst [vmem:[%s22944_s20 + $0x8] sm:$0xff] %v20655_v63 }
0x1da9   :  { %16158 = vst [vmem:[%s22944_s20] sm:$0xff] %v20656_v8 }

</bundles_post_ra>
